<compile_context>
chip_gen: v7x
topology: tpu7x:2x2x1
jax: 0.10.0
libtpu: 0.0.40
codegen_flags: <defaults>
</compile_context>

<pallas_src>
import functools

import jax
import jax.numpy as jnp
import numpy as np
from jax import lax
from jax.experimental import pallas as pl
from jax.experimental.pallas import tpu as pltpu

MEANS = [15131.0, 10559.0, 3592.0, 2859.0, 15826.0, 11306.0, 16746.0, 8510.0,
         14498.0, 1492.0, 81744.0, 12914.0, 23296.0, 1400.0, 28223.0]
STDS = [3264.0, 5439.0, 1271.0, 1717.0, 4845.0, 2899.0, 6152.0, 2679.0,
        6524.0, 734.0, 36801.0, 3526.0, 11786.0, 372.0, 9155.0]
SEL_INDEX = [0, 1, 2, 3, 4, 5, 6, 7, 8, 9, 10, 11, 13, 14]   # class 12 dropped
NUM_CLASSES = 15


def _round_up(x, m):
    return ((x + m - 1) // m) * m


def _build_weights(G, stride2):
    """Block-diagonal per-class weights (15G, G) and w/h selectors (2G, G)."""
    inv4 = np.zeros(NUM_CLASSES, np.float64)
    for c in SEL_INDEX:
        inv4[c] = 1.0 / float(STDS[c]) ** 4       # class 12 stays 0
    mu = np.asarray(MEANS, np.float64)
    coef0 = (stride2 ** 2) * inv4                  # multiplies (w*h)^2
    coef1 = -2.0 * stride2 * inv4 * mu             # multiplies (w*h)
    coef2 = inv4 * mu * mu                         # constant term

    w0 = np.zeros((NUM_CLASSES * G, G), np.float32)
    w1 = np.zeros((NUM_CLASSES * G, G), np.float32)
    w2 = np.zeros((NUM_CLASSES * G, G), np.float32)
    pw = np.zeros((2 * G, G), np.float32)
    ph = np.zeros((2 * G, G), np.float32)
    for j in range(G):
        sl = slice(NUM_CLASSES * j, NUM_CLASSES * (j + 1))
        w0[sl, j] = coef0
        w1[sl, j] = coef1
        w2[sl, j] = coef2
        pw[2 * j, j] = 1.0
        ph[2 * j + 1, j] = 1.0
    return w0, w1, w2, pw, ph


def _area_loss_kernel(wh_ref, lbl_ref, pw_ref, ph_ref, w0_ref, w1_ref, w2_ref,
                      out_ref, *, tile_r, rows_valid, ragged):
    """One grid step: tile_r rows of G anchors -> one partial-sum block.

    wh_ref  : (tile_r, 2G)   (w,h) interleaved, G anchors per row
    lbl_ref : (tile_r, 15G)  15 class labels per anchor, G anchors per row
    pw/ph   : (2G, G)        0/1 selection matrices extracting w / h
    w0/1/2  : (15G, G)       block-diagonal per-class quadratic weights
    out_ref : (1, 8, 128)    partial sum (scalar broadcast) for this block
    """
    hp = lax.Precision.HIGHEST    # keep f32 accuracy through the MXU

    wh = wh_ref[...].astype(jnp.float32)              # (TR, 2G)
    lbl = lbl_ref[...].astype(jnp.float32)            # (TR, 15G)
    l2 = lbl * lbl                                     # one wide VPU op

    w = jnp.dot(wh, pw_ref[...], precision=hp, preferred_element_type=jnp.float32)
    h = jnp.dot(wh, ph_ref[...], precision=hp, preferred_element_type=jnp.float32)
    s0 = jnp.dot(l2, w0_ref[...], precision=hp, preferred_element_type=jnp.float32)
    s1 = jnp.dot(l2, w1_ref[...], precision=hp, preferred_element_type=jnp.float32)
    s2 = jnp.dot(l2, w2_ref[...], precision=hp, preferred_element_type=jnp.float32)

    wp = w * h                                         # (TR, G) raw w*h
    contrib = (wp * wp) * s0 + wp * s1 + s2            # per-anchor loss (TR, G)

    if ragged:   # compile-time: only emitted when rows don't divide the tile
        row = (pl.program_id(0) * tile_r
               + lax.broadcasted_iota(jnp.int32, contrib.shape, 0))
        contrib = jnp.where(row < rows_valid, contrib, 0.0)

    out_ref[...] = jnp.full(out_ref.shape, jnp.sum(contrib), jnp.float32)


def area_loss_pallas(pred_wh, pred_label, *, true_w=320.0, loss_weight=1.0,
                     anchors_per_block=32768):
    """Pred_wh: (B, N, 2).  Pred_label: (B, N, 15).  Returns scalar f32 loss."""
    B, N, two = pred_wh.shape
    assert two == 2
    assert pred_label.shape == (B, N, NUM_CLASSES)

    M = B * N
    # stride**2 = true_w**2 / (N/3) = 3 * true_w**2 / N   (compile-time float)
    stride2 = 3.0 * float(true_w) ** 2 / float(N)

    whf = pred_wh.reshape(M, 2)
    lblf = pred_label.reshape(M, NUM_CLASSES)

    # Anchors-per-row grouping G -> lane-dense label rows of 15*G values.
    if M % 16 == 0:
        G = 16
    elif M % 8 == 0:
        G = 8
    else:
        # Rare fallback: pad with zero anchors (zero labels contribute 0).
        G = 8
        pad = (-M) % 8
        whf = jnp.pad(whf, ((0, pad), (0, 0)))
        lblf = jnp.pad(lblf, ((0, pad), (0, 0)))
    MR = whf.shape[0] // G
    whv = whf.reshape(MR, 2 * G)                       # free contiguous view
    lblv = lblf.reshape(MR, NUM_CLASSES * G)           # free contiguous view

    # dtype-aware sublane multiple (8 f32 / 16 bf16 / 32 int8-fp8).
    base = 8
    for dt in (pred_wh.dtype, pred_label.dtype):
        sz = np.dtype(dt).itemsize
        base = max(base, {4: 8, 2: 16, 1: 32}.get(sz, 8))

    tile_r = max(base, (max(1, int(anchors_per_block) // G) // base) * base)
    tile_r = min(tile_r, _round_up(MR, base))
    n_blocks = (MR + tile_r - 1) // tile_r
    ragged = (MR % tile_r) != 0

    w0, w1, w2, pw, ph = _build_weights(G, stride2)

    kernel = functools.partial(_area_loss_kernel, tile_r=tile_r,
                               rows_valid=MR, ragged=ragged)

    full = lambda i: (0, 0)   # constant-index blocks: fetched once, kept in VMEM
    partials = pl.pallas_call(
        kernel,
        out_shape=jax.ShapeDtypeStruct((n_blocks, 8, 128), jnp.float32),
        grid_spec=pltpu.PrefetchScalarGridSpec(
            num_scalar_prefetch=0,
            grid=(n_blocks,),
            in_specs=[
                pl.BlockSpec((tile_r, 2 * G), lambda i: (i, 0)),
                pl.BlockSpec((tile_r, NUM_CLASSES * G), lambda i: (i, 0)),
                pl.BlockSpec((2 * G, G), full),
                pl.BlockSpec((2 * G, G), full),
                pl.BlockSpec((NUM_CLASSES * G, G), full),
                pl.BlockSpec((NUM_CLASSES * G, G), full),
                pl.BlockSpec((NUM_CLASSES * G, G), full),
            ],
            out_specs=pl.BlockSpec((1, 8, 128), lambda i: (i, 0, 0)),
        ),
        compiler_params=pltpu.CompilerParams(
            dimension_semantics=("parallel",)),     # v7x: both TensorCores
    )(whv, lblv, jnp.asarray(pw), jnp.asarray(ph),
      jnp.asarray(w0), jnp.asarray(w1), jnp.asarray(w2))

    # mean over the ORIGINAL B*N anchors + loss_weight.
    return jnp.sum(partials[:, 0, 0]) * (float(loss_weight) / float(M))


def area_loss_ref(pred_wh, pred_label, *, true_w=320.0, loss_weight=1.0):
    """Plain-JAX reference matching the PyTorch module (mean reduction)."""
    B, N, _ = pred_wh.shape
    stride = true_w / jnp.sqrt(N / 3.0)
    w = pred_wh[..., 0:1]
    h = pred_wh[..., 1:2]
    area = stride ** 2 * w * h
    sel = jnp.asarray(SEL_INDEX)
    lbl = jnp.take(pred_label, sel, axis=-1)
    means = jnp.asarray(MEANS, jnp.float32)[sel]
    stds = jnp.asarray(STDS, jnp.float32)[sel]
    per = ((lbl * (area - means) / stds ** 2) ** 2).sum(axis=-1, keepdims=True)
    return loss_weight * per.mean()


if __name__ == "__main__":
    key = jax.random.PRNGKey(0)
    k1, k2 = jax.random.split(key)
    B, S = 2, 8
    N = 3 * S * S                      # 3 anchors per location -> stride = 320/S
    pred_wh = jax.random.uniform(k1, (B, N, 2), jnp.float32, 0.1, 2.0)
    pred_label = jax.random.uniform(k2, (B, N, 15), jnp.float32, 0.0, 1.0)

    loss = jax.block_until_ready(area_loss_pallas(pred_wh, pred_label))
    ref = jax.block_until_ready(area_loss_ref(pred_wh, pred_label))
    assert np.allclose(np.asarray(loss), np.asarray(ref), rtol=5e-4, atol=1e-8), \
        (loss, ref)
    print("KERNEL_OK")
</pallas_src>

<mosaic_0001>
module attributes {stable_mosaic.version = 11 : i64} {
  func.func @_area_loss_kernel(%arg0: i32, %arg1: memref<24x32xf32, #tpu.memory_space<vmem>>, %arg2: memref<24x240xf32, #tpu.memory_space<vmem>>, %arg3: memref<32x16xf32, #tpu.memory_space<vmem>>, %arg4: memref<32x16xf32, #tpu.memory_space<vmem>>, %arg5: memref<240x16xf32, #tpu.memory_space<vmem>>, %arg6: memref<240x16xf32, #tpu.memory_space<vmem>>, %arg7: memref<240x16xf32, #tpu.memory_space<vmem>>, %arg8: memref<1x8x128xf32, #tpu.memory_space<vmem>>) attributes {dimension_semantics = [#tpu.dimension_semantics<parallel>], iteration_bounds = array<i64: 1>, scalar_prefetch = 0 : i64, scratch_operands = 0 : i64, tpu.core_type = #tpu.core_type<tc>, window_params = [{transform_indices = @transform_0, window_bounds = array<i64: 24, 32>}, {transform_indices = @transform_1, window_bounds = array<i64: 24, 240>}, {pipeline_mode = #tpu.pipeline_mode<synchronous>, transform_indices = @transform_2, window_bounds = array<i64: 32, 16>}, {pipeline_mode = #tpu.pipeline_mode<synchronous>, transform_indices = @transform_3, window_bounds = array<i64: 32, 16>}, {pipeline_mode = #tpu.pipeline_mode<synchronous>, transform_indices = @transform_4, window_bounds = array<i64: 240, 16>}, {pipeline_mode = #tpu.pipeline_mode<synchronous>, transform_indices = @transform_5, window_bounds = array<i64: 240, 16>}, {pipeline_mode = #tpu.pipeline_mode<synchronous>, transform_indices = @transform_6, window_bounds = array<i64: 240, 16>}, {transform_indices = @transform_7, window_bounds = array<i64: 1, 8, 128>}]} {
    %c0 = arith.constant 0 : index
    %c0_0 = arith.constant 0 : index
    %0 = vector.load %arg1[%c0, %c0_0] : memref<24x32xf32, #tpu.memory_space<vmem>>, vector<24x32xf32>
    %c0_1 = arith.constant 0 : index
    %c0_2 = arith.constant 0 : index
    %1 = vector.load %arg2[%c0_1, %c0_2] : memref<24x240xf32, #tpu.memory_space<vmem>>, vector<24x240xf32>
    %2 = arith.mulf %1, %1 : vector<24x240xf32>
    %c0_3 = arith.constant 0 : index
    %c0_4 = arith.constant 0 : index
    %3 = vector.load %arg3[%c0_3, %c0_4] : memref<32x16xf32, #tpu.memory_space<vmem>>, vector<32x16xf32>
    %cst = arith.constant dense<0.000000e+00> : vector<24x16xf32>
    %4 = tpu.matmul %0, %3, %cst {dimension_numbers = #tpu.dot_dimension_numbers<[1], [0], [0], [1], [0, 0, 1, 1], [], []>, precision = #tpu.contract_precision<fp32>} : vector<24x32xf32>, vector<32x16xf32>, vector<24x16xf32> -> vector<24x16xf32>
    %c0_5 = arith.constant 0 : index
    %c0_6 = arith.constant 0 : index
    %5 = vector.load %arg4[%c0_5, %c0_6] : memref<32x16xf32, #tpu.memory_space<vmem>>, vector<32x16xf32>
    %cst_7 = arith.constant dense<0.000000e+00> : vector<24x16xf32>
    %6 = tpu.matmul %0, %5, %cst_7 {dimension_numbers = #tpu.dot_dimension_numbers<[1], [0], [0], [1], [0, 0, 1, 1], [], []>, precision = #tpu.contract_precision<fp32>} : vector<24x32xf32>, vector<32x16xf32>, vector<24x16xf32> -> vector<24x16xf32>
    %c0_8 = arith.constant 0 : index
    %c0_9 = arith.constant 0 : index
    %7 = vector.load %arg5[%c0_8, %c0_9] : memref<240x16xf32, #tpu.memory_space<vmem>>, vector<240x16xf32>
    %cst_10 = arith.constant dense<0.000000e+00> : vector<24x16xf32>
    %8 = tpu.matmul %2, %7, %cst_10 {dimension_numbers = #tpu.dot_dimension_numbers<[1], [0], [0], [1], [0, 0, 1, 1], [], []>, precision = #tpu.contract_precision<fp32>} : vector<24x240xf32>, vector<240x16xf32>, vector<24x16xf32> -> vector<24x16xf32>
    %c0_11 = arith.constant 0 : index
    %c0_12 = arith.constant 0 : index
    %9 = vector.load %arg6[%c0_11, %c0_12] : memref<240x16xf32, #tpu.memory_space<vmem>>, vector<240x16xf32>
    %cst_13 = arith.constant dense<0.000000e+00> : vector<24x16xf32>
    %10 = tpu.matmul %2, %9, %cst_13 {dimension_numbers = #tpu.dot_dimension_numbers<[1], [0], [0], [1], [0, 0, 1, 1], [], []>, precision = #tpu.contract_precision<fp32>} : vector<24x240xf32>, vector<240x16xf32>, vector<24x16xf32> -> vector<24x16xf32>
    %c0_14 = arith.constant 0 : index
    %c0_15 = arith.constant 0 : index
    %11 = vector.load %arg7[%c0_14, %c0_15] : memref<240x16xf32, #tpu.memory_space<vmem>>, vector<240x16xf32>
    %cst_16 = arith.constant dense<0.000000e+00> : vector<24x16xf32>
    %12 = tpu.matmul %2, %11, %cst_16 {dimension_numbers = #tpu.dot_dimension_numbers<[1], [0], [0], [1], [0, 0, 1, 1], [], []>, precision = #tpu.contract_precision<fp32>} : vector<24x240xf32>, vector<240x16xf32>, vector<24x16xf32> -> vector<24x16xf32>
    %13 = arith.mulf %4, %6 : vector<24x16xf32>
    %14 = arith.mulf %13, %13 : vector<24x16xf32>
    %15 = arith.mulf %14, %8 : vector<24x16xf32>
    %16 = arith.mulf %13, %10 : vector<24x16xf32>
    %17 = arith.addf %15, %16 : vector<24x16xf32>
    %18 = arith.addf %17, %12 : vector<24x16xf32>
    %19 = vector.shape_cast %18 : vector<24x16xf32> to vector<1x24x16xf32>
    %cst_17 = arith.constant dense<0.000000e+00> : vector<1xf32>
    %20 = vector.multi_reduction <add>, %19, %cst_17 [1, 2] : vector<1x24x16xf32> to vector<1xf32>
    %21 = vector.shape_cast %20 : vector<1xf32> to vector<1x1x1xf32>
    %22 = vector.extract %21[0, 0, 0] : f32 from vector<1x1x1xf32>
    %23 = vector.broadcast %22 : f32 to vector<1x8x128xf32>
    %c0_18 = arith.constant 0 : index
    %c0_19 = arith.constant 0 : index
    %c0_20 = arith.constant 0 : index
    %24 = vector.load %arg8[%c0_18, %c0_19, %c0_20] : memref<1x8x128xf32, #tpu.memory_space<vmem>>, vector<1x8x128xf32>
    tpu.vector_store %arg8[%c0_18, %c0_19, %c0_20], %23 {strides = array<i32>} : memref<1x8x128xf32, #tpu.memory_space<vmem>>, vector<1x8x128xf32>,
    return
  }
  func.func @transform_0(%arg0: i32) -> (i32, i32) {
    %c0_i32 = arith.constant 0 : i32
    %c0_i32_0 = arith.constant 0 : i32
    return %arg0, %c0_i32 : i32, i32
  }
  func.func @transform_1(%arg0: i32) -> (i32, i32) {
    %c0_i32 = arith.constant 0 : i32
    %c0_i32_0 = arith.constant 0 : i32
    return %arg0, %c0_i32 : i32, i32
  }
  func.func @transform_2(%arg0: i32) -> (i32, i32) {
    %c0_i32 = arith.constant 0 : i32
    %c0_i32_0 = arith.constant 0 : i32
    %c0_i32_1 = arith.constant 0 : i32
    return %c0_i32, %c0_i32_0 : i32, i32
  }
  func.func @transform_3(%arg0: i32) -> (i32, i32) {
    %c0_i32 = arith.constant 0 : i32
    %c0_i32_0 = arith.constant 0 : i32
    %c0_i32_1 = arith.constant 0 : i32
    return %c0_i32, %c0_i32_0 : i32, i32
  }
  func.func @transform_4(%arg0: i32) -> (i32, i32) {
    %c0_i32 = arith.constant 0 : i32
    %c0_i32_0 = arith.constant 0 : i32
    %c0_i32_1 = arith.constant 0 : i32
    return %c0_i32, %c0_i32_0 : i32, i32
  }
  func.func @transform_5(%arg0: i32) -> (i32, i32) {
    %c0_i32 = arith.constant 0 : i32
    %c0_i32_0 = arith.constant 0 : i32
    %c0_i32_1 = arith.constant 0 : i32
    return %c0_i32, %c0_i32_0 : i32, i32
  }
  func.func @transform_6(%arg0: i32) -> (i32, i32) {
    %c0_i32 = arith.constant 0 : i32
    %c0_i32_0 = arith.constant 0 : i32
    %c0_i32_1 = arith.constant 0 : i32
    return %c0_i32, %c0_i32_0 : i32, i32
  }
  func.func @transform_7(%arg0: i32) -> (i32, i32, i32) {
    %c0_i32 = arith.constant 0 : i32
    %c0_i32_0 = arith.constant 0 : i32
    %c0_i32_1 = arith.constant 0 : i32
    return %arg0, %c0_i32, %c0_i32_0 : i32, i32, i32
  }
}

</mosaic_0001>

<bundles_post_ra>
// kernel: tpu_custom_call.1
= control target key start
LH: loop header
LB: loop body
LE: loop exit
PB: predicated region body
PF: predicated region fallthrough
CT: control target
= control target key end

     0   :  { %v8057_v3 = vmov 0.0|0.0   ;;  %vm5516_vm0 = vmmov 0   ;;  %v5517_v15 = vmov 0.0   ;;  %vm46_vm1 = vcmask 261120   ;;  %s8049_s0 = inlined_call_operand.vmem [shape: f32[24,32], index: 0, kind: input, shape index: {}]   ;;  %s8050_s1 = inlined_call_operand.vmem [shape: f32[24,240], index: 1, kind: input, shape index: {}]   ;;  %s8051_s2 = inlined_call_operand.vmem [shape: f32[32,16], index: 2, kind: input, shape index: {}]   ;;  %s8052_s3 = inlined_call_operand.vmem [shape: f32[32,16], index: 3, kind: input, shape index: {}]   ;;  %s8053_s4 = inlined_call_operand.vmem [shape: f32[240,16], index: 4, kind: input, shape index: {}]   ;;  %s8054_s5 = inlined_call_operand.vmem [shape: f32[240,16], index: 5, kind: input, shape index: {}]   ;;  %s8055_s6 = inlined_call_operand.vmem [shape: f32[240,16], index: 6, kind: input, shape index: {}]   ;;  %s8056_s7 = inlined_call_operand.hbm [shape: f32[1,8,128], index: 7, kind: output, shape index: {}]  }
   0x1   :  { %v42_v0 = vld [vmem:[%s8051_s2] sm:$0xff]  ;;  %v43_v1 = vld [vmem:[%s8051_s2 + $0x8] sm:$0xff]  ;;  %4483 = vmatprep.subr.bf16.mxu0 %v8057_v3  ;;  %4519 = vmatprep.subr.bf16.mxu1 %v8057_v3  ;;  %v44_v8 = vld [vmem:[%s8051_s2 + $0x10] sm:$0xff] }
   0x2   :  { %v627_v2 = vld [vmem:[%s8052_s3] sm:$0xff]  ;;  %v57_v4 = vand.u32 4294901760, %v42_v0  ;;  %v60_v5 = vand.u32 4294901760, %v43_v1  ;;  %v628_v6 = vld [vmem:[%s8052_s3 + $0x8] sm:$0xff]  ;;  %v45_v9 = vld [vmem:[%s8051_s2 + $0x18] sm:$0xff]  ;;  %v63_v11 = vand.u32 4294901760, %v44_v8  ;;  %4287 = vmatprep.mubr.msk.f32.mxu0 %vm5516_vm0, %v5517_v15  ;;  %4389 = vmatprep.mubr.msk.f32.mxu1 %vm5516_vm0, %v5517_v15 }
   0x3   :  { %v632_v7 = vand.u32 4294901760, %v627_v2  ;;  %v635_v10 = vand.u32 4294901760, %v628_v6  ;;  %v66_v12 = vand.u32 4294901760, %v45_v9  ;;  %v629_v13 = vld [vmem:[%s8052_s3 + $0x10] sm:$0xff]  ;;  %v630_v14 = vld [vmem:[%s8052_s3 + $0x18] sm:$0xff]  ;;  %v27_v20 = vld [vmem:[%s8049_s0] sm:$0xff] }
   0x4   :  { %v5589_v16 = vpack.c.bf16 %v60_v5, %v57_v4  ;;  %v5591_v17 = vsub.f32 %v42_v0, %v57_v4  ;;  %v5593_v18 = vsub.f32 %v43_v1, %v60_v5  ;;  %v5606_v24 = vsub.f32 %v44_v8, %v63_v11  ;;  %v28_v32 = vld [vmem:[%s8049_s0 + $0x8] sm:$0xff]  ;;  %v29_v45 = vld [vmem:[%s8049_s0 + $0x10] sm:$0xff] }
   0x5   :  { %v5595_v19 = vsub.f32 %v627_v2, %v632_v7  ;;  %v5600_v21 = vpack.c.bf16 %v635_v10, %v632_v7  ;;  %v5602_v22 = vsub.f32 %v628_v6, %v635_v10  ;;  %v5604_v23 = vpack.c.bf16 %v66_v12, %v63_v11 }
   0x6   :  { %4485 = vmatpush3.bf16.msra.mxu0 %v5589_v16  ;;  %v5609_v25 = vsub.f32 %v45_v9, %v66_v12  ;;  %v638_v26 = vand.u32 4294901760, %v629_v13  ;;  %v641_v27 = vand.u32 4294901760, %v630_v14  ;;  %v48_v28 = vsel %vm46_vm1, %v27_v20, 0 }
   0x7   :  { %4521 = vmatpush3.bf16.msra.mxu1 %v5600_v21  ;;  %4486 = vmatprep.subr.bf16.mxu0 %v8057_v3  ;;  %v158_v29 = vand.u32 4294901760, %v5591_v17  ;;  %v165_v30 = vand.u32 4294901760, %v5593_v18  ;;  %v733_v31 = vand.u32 4294901760, %v5595_v19  ;;  %v5627_v36 = vand.u32 4294901760, %v48_v28 }
   0x8   :  { %4522 = vmatprep.subr.bf16.mxu1 %v8057_v3  ;;  %v5621_v33 = vpack.c.bf16 %v641_v27, %v638_v26  ;;  %v5623_v34 = vsub.f32 %v629_v13, %v638_v26  ;;  %v5625_v35 = vsub.f32 %v630_v14, %v641_v27  ;;  %v740_v40 = vand.u32 4294901760, %v5602_v22 }
   0x9   :  { %v159_v37 = vsub.f32 %v5591_v17, %v158_v29  ;;  %v166_v38 = vsub.f32 %v5593_v18, %v165_v30  ;;  %v734_v39 = vsub.f32 %v5595_v19, %v733_v31  ;;  %v5641_v41 = vsub.f32 %v48_v28, %v5627_v36 }
   0xa   :  { %4488 = vmatpush3.bf16.msra.mxu0 %v5604_v23  ;;  %v51_v42 = vsel %vm46_vm1, %v28_v32, 0  ;;  %v172_v43 = vand.u32 4294901760, %v5606_v24  ;;  %v179_v44 = vand.u32 4294901760, %v5609_v25  ;;  %v741_v49 = vsub.f32 %v5602_v22, %v740_v40 }
   0xb   :  { %4524 = vmatpush3.bf16.msra.mxu1 %v5621_v33  ;;  %4489 = vmatprep.subr.bf16.mxu0 %v8057_v3  ;;  %v160_v46 = vand.u32 4294901760, %v159_v37  ;;  %v167_v47 = vand.u32 4294901760, %v166_v38  ;;  %v735_v48 = vand.u32 4294901760, %v734_v39  ;;  %v5655_v50 = vand.u32 4294901760, %v5641_v41 }
   0xc   :  { %4525 = vmatprep.subr.bf16.mxu1 %v8057_v3  ;;  %v5658_v51 = vand.u32 4294901760, %v51_v42  ;;  %v173_v52 = vsub.f32 %v5606_v24, %v172_v43  ;;  %v180_v53 = vsub.f32 %v5609_v25, %v179_v44  ;;  %v742_v54 = vand.u32 4294901760, %v741_v49 }
   0xd   :  { %v54_v55 = vsel %vm46_vm1, %v29_v45, 0  ;;  %v747_v56 = vand.u32 4294901760, %v5623_v34  ;;  %v128_v57 = vsub.f32 %v5641_v41, %v5655_v50  ;;  %v4490_v58 = vpack.c.bf16 %v167_v47, %v160_v46 }
   0xe   :  { %v5671_v59 = vsub.f32 %v51_v42, %v5658_v51  ;;  %v174_v60 = vand.u32 4294901760, %v173_v52  ;;  %v181_v61 = vand.u32 4294901760, %v180_v53  ;;  %v5673_v62 = vand.u32 4294901760, %v54_v55 }
   0xf   :  { %v748_v63 = vsub.f32 %v5623_v34, %v747_v56  ;;  %v754_v0 = vand.u32 4294901760, %v5625_v35  ;;  %v129_v1 = vand.u32 4294901760, %v128_v57  ;;  %v4526_v2 = vpack.c.bf16 %v742_v54, %v735_v48 }
  0x10   :  { %v5680_v4 = vand.u32 4294901760, %v5671_v59  ;;  %v5683_v5 = vsub.f32 %v54_v55, %v5673_v62  ;;  %v4493_v9 = vpack.c.bf16 %v181_v61, %v174_v60 }
  0x11   :  { %v749_v6 = vand.u32 4294901760, %v748_v63  ;;  %v755_v7 = vsub.f32 %v5625_v35, %v754_v0  ;;  %4288 = vmatmul.mubr.f32.vlgmr.msra.gmra.mrb[0].mxu0 %v129_v1  ;;  %4390 = vmatmul.mubr.f32.vlgmr.msra.gmra.mrb[0].mxu1 %v129_v1 }
  0x12   :  { %v138_v8 = vsub.f32 %v5671_v59, %v5680_v4  ;;  %4491 = vmatpush3.bf16.msra.mxu0 %v4490_v58  ;;  %4290 = vmatprep.mubr.msk.f32.mxu0 %vm5516_vm0, %v5517_v15  ;;  %v5693_v10 = vand.u32 4294901760, %v5683_v5 }
  0x13   :  { %v756_v11 = vand.u32 4294901760, %v755_v7  ;;  %4392 = vmatprep.mubr.msk.f32.mxu1 %vm5516_vm0, %v5517_v15  ;;  %4527 = vmatpush3.bf16.msra.mxu1 %v4526_v2 }
  0x14   :  { %v139_v12 = vand.u32 4294901760, %v138_v8  ;;  %4492 = vmatprep.subr.bf16.mxu0 %v8057_v3  ;;  %v148_v13 = vsub.f32 %v5683_v5, %v5693_v10  ;;  %4528 = vmatprep.subr.bf16.mxu1 %v8057_v3 }
  0x15   :  { %v4529_v14 = vpack.c.bf16 %v756_v11, %v749_v6 }
  0x16   :  { %4291 = vmatmul.mubr.f32.gmra.mrb[2].mxu0 %v139_v12  ;;  %4393 = vmatmul.mubr.f32.gmra.mrb[2].mxu1 %v139_v12  ;;  %v149_v20 = vand.u32 4294901760, %v148_v13 }
  0x17   :  { %4293 = vmatprep.mubr.msk.f32.mxu0 %vm5516_vm0, %v5517_v15  ;;  %4494 = vmatpush3.bf16.msra.mxu0 %v4493_v9 }
  0x18   :  { %4395 = vmatprep.mubr.msk.f32.mxu1 %vm5516_vm0, %v5517_v15  ;;  %4530 = vmatpush3.bf16.msra.mxu1 %v4529_v14 }
  0x19   :  { %4495 = vmatprep.subr.bf16.mxu0 %v8057_v3  ;;  %4531 = vmatprep.subr.bf16.mxu1 %v8057_v3 }
  0x1a   :  { %12 = vsyncpa [#allocation3], 0  ;;  %4294 = vmatmul.mubr.f32.gmra.mrb[4].mxu0 %v149_v20  ;;  %4396 = vmatmul.mubr.f32.gmra.mrb[4].mxu1 %v149_v20  ;;  %v4496_v26 = vpack.c.bf16 %v5593_v18, %v5591_v17  ;;  %v4532_v27 = vpack.c.bf16 %v5602_v22, %v5595_v19  ;;  %v4499_v28 = vpack.c.bf16 %v5609_v25, %v5606_v24  ;;  %v31_v19 = vld [vmem:[%s8050_s1 + $0x8] sm:$0xff]  ;;  %vm1232_vm2 = vcmask 916480   ;;  %v1202_v24 = vld [vmem:[%s8053_s4] sm:$0xff] }
  0x1b   :  { %4304 = vmatprep.mubr.msk.f32.mxu0 %vm5516_vm0, %v5517_v15  ;;  %4406 = vmatprep.mubr.msk.f32.mxu1 %vm5516_vm0, %v5517_v15  ;;  %v4535_v32 = vpack.c.bf16 %v5625_v35, %v5623_v34  ;;  %v4508_v37 = vpack.c.bf16 %v165_v30, %v158_v29  ;;  %v4544_v38 = vpack.c.bf16 %v740_v40, %v733_v31  ;;  %v1203_v25 = vld [vmem:[%s8053_s4 + $0x8] sm:$0xff]  ;;  %v2190_v30 = vld [vmem:[%s8054_s5] sm:$0xff]  ;;  %v1243_v34 = vand.u32 4294901760, %v1202_v24  ;;  %v1205_v39 = vld [vmem:[%s8053_s4 + $0x18] sm:$0xff] }
  0x1c   :  { %v4511_v17 = vpack.c.bf16 %v179_v44, %v172_v43  ;;  %v4547_v18 = vpack.c.bf16 %v754_v0, %v747_v56  ;;  %v37_v22 = vmul.f32 %v31_v19, %v31_v19  ;;  %v2191_v31 = vld [vmem:[%s8054_s5 + $0x8] sm:$0xff]  ;;  %v1246_v35 = vand.u32 4294901760, %v1203_v25  ;;  %v2192_v42 = vld [vmem:[%s8054_s5 + $0x10] sm:$0xff]  ;;  %v2193_v43 = vld [vmem:[%s8054_s5 + $0x18] sm:$0xff] }
  0x1d   :  { %v1252_v45 = vand.u32 4294901760, %v1205_v39  ;;  %v1206_v46 = vld [vmem:[%s8053_s4 + $0x20] sm:$0xff]  ;;  %v1207_v47 = vld [vmem:[%s8053_s4 + $0x28] sm:$0xff]  ;;  %v5861_v49 = vsub.f32 %v1202_v24, %v1243_v34  ;;  %v2230_v52 = vand.u32 4294901760, %v2193_v43  ;;  %v1209_v60 = vld [vmem:[%s8053_s4 + $0x38] sm:$0xff]  ;;  %vm4164_vm3 = vcmask 130048  }
  0x1e   :  { %4305 = vmatmul.mubr.f32.vlgmr.msra.gmra.mrb[0].mxu0 %v5627_v36  ;;  %4407 = vmatmul.mubr.f32.vlgmr.msra.gmra.mrb[0].mxu1 %v5627_v36  ;;  %v1234_v29 = vsel %vm1232_vm2, %v37_v22, 0  ;;  %v5859_v48 = vpack.c.bf16 %v1246_v35, %v1243_v34  ;;  %v2194_v53 = vld [vmem:[%s8054_s5 + $0x20] sm:$0xff]  ;;  %v1255_v57 = vand.u32 4294901760, %v1206_v46  ;;  %v1258_v58 = vand.u32 4294901760, %v1207_v47  ;;  %v2196_v6 = vld [vmem:[%s8054_s5 + $0x30] sm:$0xff]  ;;  %v2197_v7 = vld [vmem:[%s8054_s5 + $0x38] sm:$0xff] }
  0x1f   :  { %4497 = vmatpush3.bf16.msra.mxu0 %v4496_v26  ;;  %4307 = vmatprep.mubr.msk.f32.mxu0 %vm5516_vm0, %v5517_v15  ;;  %v5837_v40 = vand.u32 4294901760, %v1234_v29  ;;  %8373 = vst [vmem:[#allocation7_spill] sm:$0xff] %v5861_v49  ;;  %v5898_v1 = vsub.f32 %v1205_v39, %v1252_v45  ;;  %v1210_v11 = vld [vmem:[%s8053_s4 + $0x40] sm:$0xff]  ;;  %v1211_v12 = vld [vmem:[%s8053_s4 + $0x48] sm:$0xff]  ;;  %v5921_v14 = vsub.f32 %v2193_v43, %v2230_v52  ;;  %v1212_v24 = vld [vmem:[%s8053_s4 + $0x50] sm:$0xff] }
  0x20   :  { %4409 = vmatprep.mubr.msk.f32.mxu1 %vm5516_vm0, %v5517_v15  ;;  %4533 = vmatpush3.bf16.msra.mxu1 %v4532_v27  ;;  %8372 = vst [vmem:[#allocation6_spill] sm:$0xff] %v5859_v48  ;;  %v5923_v20 = vpack.c.bf16 %v1258_v58, %v1255_v57  ;;  %v5925_v26 = vsub.f32 %v1206_v46, %v1255_v57  ;;  %v2198_v27 = vld [vmem:[%s8054_s5 + $0x40] sm:$0xff]  ;;  %v1267_v19 = vand.u32 4294901760, %v1210_v11  ;;  %v1270_v22 = vand.u32 4294901760, %v1211_v12  ;;  %v1215_v46 = vld [vmem:[%s8053_s4 + $0x68] sm:$0xff] }
  0x21   :  { %4498 = vmatprep.subr.bf16.mxu0 %v8057_v3  ;;  %4534 = vmatprep.subr.bf16.mxu1 %v8057_v3  ;;  %8371 = vst [vmem:[#allocation5_spill] sm:$0xff] %v5837_v40  ;;  %v5874_v54 = vsub.f32 %v1234_v29, %v5837_v40  ;;  %8381 = vst [vmem:[#allocation15_spill] sm:$0xff] %v5898_v1  ;;  %v1273_v43 = vand.u32 4294901760, %v1212_v24 }
  0x22   :  { %4308 = vmatmul.mubr.f32.gmra.mrb[2].mxu0 %v5658_v51  ;;  %4410 = vmatmul.mubr.f32.gmra.mrb[2].mxu1 %v5658_v51  ;;  %8385 = vst [vmem:[#allocation19_spill] sm:$0xff] %v5921_v14  ;;  %8386 = vst [vmem:[#allocation20_spill] sm:$0xff] %v5923_v20 }
  0x23   :  { %4310 = vmatprep.mubr.msk.f32.mxu0 %vm5516_vm0, %v5517_v15  ;;  %4500 = vmatpush3.bf16.msra.mxu0 %v4499_v28  ;;  %8375 = vst [vmem:[#allocation9_spill] sm:$0xff] %v5874_v54  ;;  %v5917_v13 = vand.u32 4294901760, %v5874_v54  ;;  %8387 = vst [vmem:[#allocation21_spill] sm:$0xff] %v5925_v26  ;;  %v2199_v28 = vld [vmem:[%s8054_s5 + $0x48] sm:$0xff] }
  0x24   :  { %4412 = vmatprep.mubr.msk.f32.mxu1 %vm5516_vm0, %v5517_v15  ;;  %4536 = vmatpush3.bf16.msra.mxu1 %v4535_v32  ;;  %v5935_v32 = vsub.f32 %v1207_v47, %v1258_v58  ;;  %v5989_v47 = vpack.c.bf16 %v1270_v22, %v1267_v19 }
  0x25   :  { %4501 = vmatprep.subr.bf16.mxu0 %v8057_v3  ;;  %4537 = vmatprep.subr.bf16.mxu1 %v8057_v3  ;;  %8384 = vst [vmem:[#allocation18_spill] sm:$0xff] %v5917_v13  ;;  %v1339_v34 = vsub.f32 %v5874_v54, %v5917_v13  ;;  %v2206_v13 = vld [vmem:[%s8054_s5 + $0x80] sm:$0xff]  ;;  %v2211_v54 = vld [vmem:[%s8054_s5 + $0xa8] sm:$0xff] }
  0x26   :  { %4311 = vmatmul.mubr.f32.gmra.mrb[4].mxu0 %v5673_v62  ;;  %4413 = vmatmul.mubr.f32.gmra.mrb[4].mxu1 %v5673_v62  ;;  %8388 = vst [vmem:[#allocation22_spill] sm:$0xff] %v5935_v32  ;;  %8395 = vst [vmem:[#allocation29_spill] sm:$0xff] %v5989_v47 }
  0x27   :  { %4321 = vmatprep.mubr.msk.f32.mxu0 %vm5516_vm0, %v5517_v15  ;;  %4423 = vmatprep.mubr.msk.f32.mxu1 %vm5516_vm0, %v5517_v15 }
  0x2a   :  { %4322 = vmatmul.mubr.f32.vlgmr.msra.gmra.mrb[0].mxu0 %v5641_v41  ;;  %4424 = vmatmul.mubr.f32.vlgmr.msra.gmra.mrb[0].mxu1 %v5641_v41  ;;  %v2224_v41 = vand.u32 4294901760, %v2191_v31 }
  0x2b   :  { %4503 = vmatpush3.bf16.msra.mxu0 %v5589_v16  ;;  %4324 = vmatprep.mubr.msk.f32.mxu0 %vm5516_vm0, %v5517_v15 }
  0x2c   :  { %4426 = vmatprep.mubr.msk.f32.mxu1 %vm5516_vm0, %v5517_v15  ;;  %4539 = vmatpush3.bf16.msra.mxu1 %v5600_v21  ;;  %v5892_v61 = vsub.f32 %v2191_v31, %v2224_v41  ;;  %v2248_v31 = vand.u32 4294901760, %v2199_v28 }
  0x2d   :  { %4504 = vmatprep.subr.bf16.mxu0 %v8057_v3  ;;  %4540 = vmatprep.subr.bf16.mxu1 %v8057_v3 }
  0x2e   :  { %4325 = vmatmul.mubr.f32.gmra.mrb[2].mxu0 %v5671_v59  ;;  %4427 = vmatmul.mubr.f32.gmra.mrb[2].mxu1 %v5671_v59  ;;  %v1208_v59 = vld [vmem:[%s8053_s4 + $0x30] sm:$0xff]  ;;  %8378 = vst [vmem:[#allocation12_spill] sm:$0xff] %v5892_v61 }
  0x2f   :  { %4327 = vmatprep.mubr.msk.f32.mxu0 %vm5516_vm0, %v5517_v15  ;;  %4506 = vmatpush3.bf16.msra.mxu0 %v5604_v23  ;;  %v1261_v9 = vand.u32 4294901760, %v1208_v59 }
  0x30   :  { %4429 = vmatprep.mubr.msk.f32.mxu1 %vm5516_vm0, %v5517_v15  ;;  %4542 = vmatpush3.bf16.msra.mxu1 %v5621_v33 }
  0x31   :  { %4507 = vmatprep.subr.bf16.mxu0 %v8057_v3  ;;  %4543 = vmatprep.subr.bf16.mxu1 %v8057_v3 }
  0x32   :  { %4328 = vmatmul.mubr.f32.gmra.mrb[4].mxu0 %v5683_v5  ;;  %4430 = vmatmul.mubr.f32.gmra.mrb[4].mxu1 %v5683_v5 }
  0x33   :  { %4338 = vmatprep.mubr.msk.f32.mxu0 %vm5516_vm0, %v5517_v15  ;;  %4440 = vmatprep.mubr.msk.f32.mxu1 %vm5516_vm0, %v5517_v15 }
  0x36   :  { %4339 = vmatmul.mubr.f32.vlgmr.msra.gmra.mrb[0].mxu0 %v5655_v50  ;;  %4441 = vmatmul.mubr.f32.vlgmr.msra.gmra.mrb[0].mxu1 %v5655_v50  ;;  %v2227_v50 = vand.u32 4294901760, %v2192_v42 }
  0x37   :  { %4509 = vmatpush3.bf16.msra.mxu0 %v4508_v37  ;;  %4341 = vmatprep.mubr.msk.f32.mxu0 %vm5516_vm0, %v5517_v15  ;;  %v2239_v37 = vand.u32 4294901760, %v2196_v6 }
  0x38   :  { %4443 = vmatprep.mubr.msk.f32.mxu1 %vm5516_vm0, %v5517_v15  ;;  %4545 = vmatpush3.bf16.msra.mxu1 %v4544_v38  ;;  %v5900_v2 = vsub.f32 %v2192_v42, %v2227_v50  ;;  %v5908_v8 = vpack.c.bf16 %v2230_v52, %v2227_v50  ;;  %v2242_v38 = vand.u32 4294901760, %v2197_v7  ;;  %v5991_v50 = vsub.f32 %v1210_v11, %v1267_v19 }
  0x39   :  { %4510 = vmatprep.subr.bf16.mxu0 %v8057_v3  ;;  %4546 = vmatprep.subr.bf16.mxu1 %v8057_v3  ;;  %v5965_v39 = vsub.f32 %v2196_v6, %v2239_v37  ;;  %v5993_v52 = vsub.f32 %v1211_v12, %v1270_v22  ;;  %v6017_v6 = vsub.f32 %v2199_v28, %v2248_v31  ;;  %v1218_v22 = vld [vmem:[%s8053_s4 + $0x80] sm:$0xff] }
  0x3a   :  { %4342 = vmatmul.mubr.f32.gmra.mrb[2].mxu0 %v5680_v4  ;;  %4444 = vmatmul.mubr.f32.gmra.mrb[2].mxu1 %v5680_v4  ;;  %8382 = vst [vmem:[#allocation16_spill] sm:$0xff] %v5900_v2  ;;  %v2233_v4 = vand.u32 4294901760, %v2194_v53  ;;  %8383 = vst [vmem:[#allocation17_spill] sm:$0xff] %v5908_v8  ;;  %v5975_v42 = vpack.c.bf16 %v2242_v38, %v2239_v37  ;;  %v6023_v11 = vsub.f32 %v1212_v24, %v1273_v43  ;;  %v1219_v24 = vld [vmem:[%s8053_s4 + $0x88] sm:$0xff] }
  0x3b   :  { %4344 = vmatprep.mubr.msk.f32.mxu0 %vm5516_vm0, %v5517_v15  ;;  %4512 = vmatpush3.bf16.msra.mxu0 %v4511_v17  ;;  %8392 = vst [vmem:[#allocation26_spill] sm:$0xff] %v5965_v39  ;;  %8396 = vst [vmem:[#allocation30_spill] sm:$0xff] %v5991_v50 }
  0x3c   :  { %4446 = vmatprep.mubr.msk.f32.mxu1 %vm5516_vm0, %v5517_v15  ;;  %4548 = vmatpush3.bf16.msra.mxu1 %v4547_v18  ;;  %8393 = vst [vmem:[#allocation27_spill] sm:$0xff] %v5975_v42  ;;  %8397 = vst [vmem:[#allocation31_spill] sm:$0xff] %v5993_v52 }
  0x3d   :  { %4513 = vmatprep.subr.bf16.mxu0 %v8057_v3  ;;  %4549 = vmatprep.subr.bf16.mxu1 %v8057_v3  ;;  %8401 = vst [vmem:[#allocation35_spill] sm:$0xff] %v6017_v6  ;;  %8403 = vst [vmem:[#allocation37_spill] sm:$0xff] %v6023_v11 }
  0x3e   :  { %4345 = vmatmul.mubr.f32.gmra.mrb[4].mxu0 %v5693_v10  ;;  %4447 = vmatmul.mubr.f32.gmra.mrb[4].mxu1 %v5693_v10  ;;  %v1264_v10 = vand.u32 4294901760, %v1209_v60 }
  0x3f   :  { %4355 = vmatprep.mubr.msk.f32.mxu0 %vm5516_vm0, %v5517_v15  ;;  %4457 = vmatprep.mubr.msk.f32.mxu1 %vm5516_vm0, %v5517_v15 }
  0x40   :  { %v5955_v29 = vpack.c.bf16 %v1264_v10, %v1261_v9 }
  0x42   :  { %4356 = vmatmul.mubr.f32.vlgmr.msra.gmra.mrb[0].mxu0 %v5627_v36  ;;  %4458 = vmatmul.mubr.f32.vlgmr.msra.gmra.mrb[0].mxu1 %v5627_v36  ;;  %8391 = vst [vmem:[#allocation25_spill] sm:$0xff] %v5955_v29 }
  0x43   :  { %4515 = vmatpush3.bf16.msra.mxu0 %v5589_v16  ;;  %4358 = vmatprep.mubr.msk.f32.mxu0 %vm5516_vm0, %v5517_v15  ;;  %v1204_v16 = vld [vmem:[%s8053_s4 + $0x10] sm:$0xff] }
  0x44   :  { %4460 = vmatprep.mubr.msk.f32.mxu1 %vm5516_vm0, %v5517_v15  ;;  %4551 = vmatpush3.bf16.msra.mxu1 %v5600_v21  ;;  %v2221_v21 = vand.u32 4294901760, %v2190_v30  ;;  %v1249_v44 = vand.u32 4294901760, %v1204_v16 }
  0x45   :  { %4516 = vmatprep.subr.bf16.mxu0 %v8057_v3  ;;  %4552 = vmatprep.subr.bf16.mxu1 %v8057_v3 }
  0x46   :  { %4359 = vmatmul.mubr.f32.gmra.mrb[2].mxu0 %v5658_v51  ;;  %4461 = vmatmul.mubr.f32.gmra.mrb[2].mxu1 %v5658_v51  ;;  %v5878_v55 = vpack.c.bf16 %v2224_v41, %v2221_v21  ;;  %v5880_v56 = vsub.f32 %v2190_v30, %v2221_v21  ;;  %v5894_v63 = vpack.c.bf16 %v1252_v45, %v1249_v44  ;;  %v2245_v30 = vand.u32 4294901760, %v2198_v27  ;;  %v2200_v21 = vld [vmem:[%s8054_s5 + $0x50] sm:$0xff]  ;;  %v2201_v41 = vld [vmem:[%s8054_s5 + $0x58] sm:$0xff]  ;;  %v1214_v45 = vld [vmem:[%s8053_s4 + $0x60] sm:$0xff] }
  0x47   :  { %4361 = vmatprep.mubr.msk.f32.mxu0 %vm5516_vm0, %v5517_v15  ;;  %4518 = vmatpush3.bf16.msra.mxu0 %v5604_v23  ;;  %v5865_v23 = vsub.f32 %v1203_v25, %v1246_v35  ;;  %v5896_v0 = vsub.f32 %v1204_v16, %v1249_v44  ;;  %v1213_v25 = vld [vmem:[%s8053_s4 + $0x58] sm:$0xff]  ;;  %v5961_v35 = vsub.f32 %v1208_v59, %v1261_v9  ;;  %v2251_v57 = vand.u32 4294901760, %v2200_v21  ;;  %v1216_v59 = vld [vmem:[%s8053_s4 + $0x70] sm:$0xff] }
  0x48   :  { %4463 = vmatprep.mubr.msk.f32.mxu1 %vm5516_vm0, %v5517_v15  ;;  %4554 = vmatpush3.bf16.msra.mxu1 %v5621_v33  ;;  %v2195_v33 = vld [vmem:[%s8054_s5 + $0x28] sm:$0xff]  ;;  %8376 = vst [vmem:[#allocation10_spill] sm:$0xff] %v5878_v55  ;;  %8377 = vst [vmem:[#allocation11_spill] sm:$0xff] %v5880_v56  ;;  %v5963_v16 = vsub.f32 %v1209_v60, %v1264_v10  ;;  %v1276_v44 = vand.u32 4294901760, %v1213_v25  ;;  %v2254_v58 = vand.u32 4294901760, %v2201_v41  ;;  %v1217_v60 = vld [vmem:[%s8053_s4 + $0x78] sm:$0xff] }
  0x49   :  { %4555 = vmatprep.subr.bf16.mxu0 %v8057_v3  ;;  %4825 = vmatprep.subr.bf16.mxu1 %v8057_v3  ;;  %8374 = vst [vmem:[#allocation8_spill] sm:$0xff] %v5865_v23  ;;  %8379 = vst [vmem:[#allocation13_spill] sm:$0xff] %v5894_v63  ;;  %v2236_v5 = vand.u32 4294901760, %v2195_v33  ;;  %v1282_v9 = vand.u32 4294901760, %v1215_v46  ;;  %v1288_v19 = vand.u32 4294901760, %v1217_v60 }
  0x4a   :  { %4362 = vmatmul.mubr.f32.gmra.mrb[4].mxu0 %v5673_v62  ;;  %4464 = vmatmul.mubr.f32.gmra.mrb[4].mxu1 %v5673_v62  ;;  %8380 = vst [vmem:[#allocation14_spill] sm:$0xff] %v5896_v0  ;;  %v6021_v10 = vpack.c.bf16 %v1276_v44, %v1273_v43  ;;  %v6025_v12 = vsub.f32 %v1213_v25, %v1276_v44 }
  0x4b   :  { %4372 = vmatprep.mubr.msk.f32.mxu0 %vm5516_vm0, %v5517_v15  ;;  %4474 = vmatprep.mubr.msk.f32.mxu1 %vm5516_vm0, %v5517_v15  ;;  %v5943_v17 = vpack.c.bf16 %v2236_v5, %v2233_v4  ;;  %v5945_v18 = vsub.f32 %v2195_v33, %v2236_v5  ;;  %v6000_v33 = vpack.c.bf16 %v2248_v31, %v2245_v30 }
  0x4c   :  { %v6015_v5 = vsub.f32 %v2198_v27, %v2245_v30  ;;  %8402 = vst [vmem:[#allocation36_spill] sm:$0xff] %v6021_v10  ;;  %8404 = vst [vmem:[#allocation38_spill] sm:$0xff] %v6025_v12  ;;  %v2205_v27 = vld [vmem:[%s8054_s5 + $0x78] sm:$0xff]  ;;  %v6041_v25 = vpack.c.bf16 %v2254_v58, %v2251_v57  ;;  %v6043_v30 = vsub.f32 %v2200_v21, %v2251_v57  ;;  %v2207_v21 = vld [vmem:[%s8054_s5 + $0x88] sm:$0xff] }
  0x4d   :  { %8390 = vst [vmem:[#allocation24_spill] sm:$0xff] %v5943_v17  ;;  %8398 = vst [vmem:[#allocation32_spill] sm:$0xff] %v6000_v33  ;;  %v6045_v31 = vsub.f32 %v2201_v41, %v2254_v58  ;;  %v6061_v41 = vsub.f32 %v1215_v46, %v1282_v9  ;;  %v1294_v58 = vand.u32 4294901760, %v1219_v24 }
  0x4e   :  { %4373 = vmatmul.mubr.f32.vlgmr.msra.gmra.mrb[0].mxu0 %v5627_v36  ;;  %4475 = vmatmul.mubr.f32.vlgmr.msra.gmra.mrb[0].mxu1 %v5627_v36  ;;  %v5937_v36 = vsub.f32 %v2194_v53, %v2233_v4  ;;  %v2202_v53 = vld [vmem:[%s8054_s5 + $0x60] sm:$0xff]  ;;  %v6011_v4 = vand.u32 4294901760, %v1339_v34  ;;  %8400 = vst [vmem:[#allocation34_spill] sm:$0xff] %v6015_v5  ;;  %8405 = vst [vmem:[#allocation39_spill] sm:$0xff] %v6041_v25 }
  0x4f   :  { %4557 = vmatpush1.bf16.msra.mxu0 %v5859_v48  ;;  %4827 = vmatpush1.bf16.msra.mxu1 %v5878_v55  ;;  %v2257_v28 = vand.u32 4294901760, %v2202_v53  ;;  %8406 = vst [vmem:[#allocation40_spill] sm:$0xff] %v6043_v30  ;;  %8407 = vst [vmem:[#allocation41_spill] sm:$0xff] %v6045_v31  ;;  %v2209_v55 = vld [vmem:[%s8054_s5 + $0x98] sm:$0xff] }
  0x50   :  { %8389 = vst [vmem:[#allocation23_spill] sm:$0xff] %v5937_v36  ;;  %4375 = vmatprep.mubr.msk.f32.mxu0 %vm5516_vm0, %v5517_v15  ;;  %4477 = vmatprep.mubr.msk.f32.mxu1 %vm5516_vm0, %v5517_v15  ;;  %8399 = vst [vmem:[#allocation33_spill] sm:$0xff] %v6011_v4 }
  0x51   :  { %4558 = vmatprep.subr.bf16.mxu0 %v8057_v3  ;;  %4828 = vmatprep.subr.bf16.mxu1 %v8057_v3  ;;  %8410 = vst [vmem:[#allocation44_spill] sm:$0xff] %v6061_v41  ;;  %v6063_v57 = vsub.f32 %v2202_v53, %v2257_v28 }
  0x52   :  { %4376 = vmatmul.mubr.f32.gmra.mrb[2].mxu0 %v5658_v51  ;;  %4478 = vmatmul.mubr.f32.gmra.mrb[2].mxu1 %v5658_v51  ;;  %v5977_v51 = vsub.f32 %v2197_v7, %v2242_v38  ;;  %v1279_v7 = vand.u32 4294901760, %v1214_v45  ;;  %v1285_v38 = vand.u32 4294901760, %v1216_v59 }
  0x53   :  { %4560 = vmatpush1.bf16.msra.mxu0 %v5894_v63  ;;  %4830 = vmatpush1.bf16.msra.mxu1 %v5908_v8  ;;  %8411 = vst [vmem:[#allocation45_spill] sm:$0xff] %v6063_v57  ;;  %v2272_v8 = vand.u32 4294901760, %v2207_v21  ;;  %v2208_v63 = vld [vmem:[%s8054_s5 + $0x90] sm:$0xff] }
  0x54   :  { %8394 = vst [vmem:[#allocation28_spill] sm:$0xff] %v5977_v51  ;;  %4378 = vmatprep.mubr.msk.f32.mxu0 %vm5516_vm0, %v5517_v15  ;;  %4480 = vmatprep.mubr.msk.f32.mxu1 %vm5516_vm0, %v5517_v15  ;;  %v2203_v15 = vld [vmem:[%s8054_s5 + $0x68] sm:$0xff]  ;;  %v6049_v34 = vpack.c.bf16 %v1282_v9, %v1279_v7  ;;  %v6051_v43 = vsub.f32 %v1214_v45, %v1279_v7  ;;  %v1291_v45 = vand.u32 4294901760, %v1218_v22  ;;  %v1220_v7 = vld [vmem:[%s8053_s4 + $0x90] sm:$0xff] }
  0x55   :  { %4561 = vmatprep.subr.bf16.mxu0 %v8057_v3  ;;  %4831 = vmatprep.subr.bf16.mxu1 %v8057_v3  ;;  %v2260_v37 = vand.u32 4294901760, %v2203_v15  ;;  %v6077_v53 = vpack.c.bf16 %v1288_v19, %v1285_v38  ;;  %v6079_v9 = vsub.f32 %v1216_v59, %v1285_v38  ;;  %v1222_v59 = vld [vmem:[%s8053_s4 + $0xa0] sm:$0xff] }
  0x56   :  { %4379 = vmatmul.mubr.f32.gmra.mrb[4].mxu0 %v5673_v62  ;;  %4481 = vmatmul.mubr.f32.gmra.mrb[4].mxu1 %v5673_v62  ;;  %v2204_v62 = vld [vmem:[%s8054_s5 + $0x70] sm:$0xff]  ;;  %8408 = vst [vmem:[#allocation42_spill] sm:$0xff] %v6049_v34  ;;  %8409 = vst [vmem:[#allocation43_spill] sm:$0xff] %v6051_v43 }
  0x57   :  { %4563 = vmatpush1.bf16.msra.mxu0 %v5923_v20  ;;  %4833 = vmatpush1.bf16.msra.mxu1 %v5943_v17  ;;  %v2263_v44 = vand.u32 4294901760, %v2204_v62  ;;  %v8412_v17 = vmov 0.0|0.0   ;;  %v6075_v46 = vsub.f32 %v2203_v15, %v2260_v37  ;;  %8415 = vst [vmem:[#allocation48_spill] sm:$0xff] %v6077_v53  ;;  %8416 = vst [vmem:[#allocation49_spill] sm:$0xff] %v6079_v9  ;;  %v2269_v20 = vand.u32 4294901760, %v2206_v13 }
  0x58   :  { %4564 = vmatprep.subr.bf16.mxu0 %v8057_v3  ;;  %4834 = vmatprep.subr.bf16.mxu1 %v8057_v3  ;;  %v2266_v3 = vand.u32 4294901760, %v2205_v27 }
  0x59   :  { %1341 = vmatprep.mubr.f32.mxu0 %v6011_v4  ;;  %2319 = vmatprep.mubr.f32.mxu1 %v6011_v4  ;;  %v1221_v4 = vld [vmem:[%s8053_s4 + $0x98] sm:$0xff]  ;;  %8414 = vst [vmem:[#allocation47_spill] sm:$0xff] %v6075_v46  ;;  %v6091_v15 = vsub.f32 %v2204_v62, %v2263_v44  ;;  %v6105_v62 = vsub.f32 %v1218_v22, %v1291_v45  ;;  %v1224_v22 = vld [vmem:[%s8053_s4 + $0xb0] sm:$0xff] }
  0x5a   :  { %v1300_v48 = vand.u32 4294901760, %v1221_v4  ;;  %v6101_v38 = vsub.f32 %v2205_v27, %v2266_v3  ;;  %v2275_v27 = vand.u32 4294901760, %v2208_v63  ;;  %v6125_v40 = vpack.c.bf16 %v2272_v8, %v2269_v20 }
  0x5b   :  { %4566 = vmatpush1.bf16.msra.mxu0 %v5955_v29  ;;  %4836 = vmatpush1.bf16.msra.mxu1 %v5975_v42  ;;  %v6073_v29 = vpack.c.bf16 %v2260_v37, %v2257_v28  ;;  %v6081_v42 = vsub.f32 %v1217_v60, %v1288_v19  ;;  %v6089_v28 = vpack.c.bf16 %v2266_v3, %v2263_v44  ;;  %v1297_v37 = vand.u32 4294901760, %v1220_v7  ;;  %v1223_v60 = vld [vmem:[%s8053_s4 + $0xa8] sm:$0xff]  ;;  %v2210_v44 = vld [vmem:[%s8054_s5 + $0xa0] sm:$0xff] }
  0x5c   :  { %4567 = vmatprep.subr.bf16.mxu0 %v8412_v17  ;;  %4837 = vmatprep.subr.bf16.mxu1 %v8412_v17  ;;  %8419 = vst [vmem:[#allocation52_spill] sm:$0xff] %v6091_v15  ;;  %8420 = vst [vmem:[#allocation53_spill] sm:$0xff] %v6101_v38  ;;  %v6103_v19 = vpack.c.bf16 %v1294_v58, %v1291_v45  ;;  %v6117_v3 = vsub.f32 %v2206_v13, %v2269_v20  ;;  %v1225_v45 = vld [vmem:[%s8053_s4 + $0xb8] sm:$0xff]  ;;  %v1303_v38 = vand.u32 4294901760, %v1222_v59 }
  0x5d   :  { %8413 = vst [vmem:[#allocation46_spill] sm:$0xff] %v6073_v29  ;;  %8417 = vst [vmem:[#allocation50_spill] sm:$0xff] %v6081_v42  ;;  %v1306_v15 = vand.u32 4294901760, %v1223_v60  ;;  %v6131_v13 = vsub.f32 %v1220_v7, %v1297_v37  ;;  %v2213_v42 = vld [vmem:[%s8054_s5 + $0xb8] sm:$0xff]  ;;  %v6143_v20 = vsub.f32 %v2208_v63, %v2275_v27  ;;  %v1312_v7 = vand.u32 4294901760, %v1225_v45 }
  0x5e   :  { %8418 = vst [vmem:[#allocation51_spill] sm:$0xff] %v6089_v28  ;;  %8421 = vst [vmem:[#allocation54_spill] sm:$0xff] %v6103_v19  ;;  %v6157_v63 = vsub.f32 %v1222_v59, %v1303_v38  ;;  %v2290_v9 = vand.u32 4294901760, %v2213_v42 }
  0x5f   :  { %4569 = vmatpush1.bf16.msra.mxu0 %v5989_v47  ;;  %4839 = vmatpush1.bf16.msra.mxu1 %v6000_v33  ;;  %8422 = vst [vmem:[#allocation55_spill] sm:$0xff] %v6105_v62  ;;  %v6115_v47 = vsub.f32 %v1219_v24, %v1294_v58  ;;  %8424 = vst [vmem:[#allocation57_spill] sm:$0xff] %v6117_v3  ;;  %v2278_v33 = vand.u32 4294901760, %v2209_v55  ;;  %v6127_v62 = vsub.f32 %v2207_v21, %v2272_v8 }
  0x60   :  { %4570 = vmatprep.subr.bf16.mxu0 %v8412_v17  ;;  %4840 = vmatprep.subr.bf16.mxu1 %v8412_v17  ;;  %8425 = vst [vmem:[#allocation58_spill] sm:$0xff] %v6125_v40  ;;  %v6129_v24 = vpack.c.bf16 %v1300_v48, %v1297_v37  ;;  %8428 = vst [vmem:[#allocation61_spill] sm:$0xff] %v6131_v13  ;;  %v2281_v58 = vand.u32 4294901760, %v2210_v44  ;;  %v2284_v3 = vand.u32 4294901760, %v2211_v54  ;;  %v1309_v21 = vand.u32 4294901760, %v1224_v22  ;;  %v1226_v37 = vld [vmem:[%s8053_s4 + $0xc0] sm:$0xff] }
  0x61   :  { %8423 = vst [vmem:[#allocation56_spill] sm:$0xff] %v6115_v47  ;;  %8426 = vst [vmem:[#allocation59_spill] sm:$0xff] %v6127_v62  ;;  %v2212_v47 = vld [vmem:[%s8054_s5 + $0xb0] sm:$0xff]  ;;  %v6141_v8 = vsub.f32 %v1221_v4, %v1300_v48  ;;  %v1227_v13 = vld [vmem:[%s8053_s4 + $0xc8] sm:$0xff]  ;;  %v6155_v48 = vsub.f32 %v2209_v55, %v2278_v33  ;;  %v6204_v57 = vsub.f32 %v2213_v42, %v2290_v9 }
  0x62   :  { %8427 = vst [vmem:[#allocation60_spill] sm:$0xff] %v6129_v24  ;;  %8430 = vst [vmem:[#allocation63_spill] sm:$0xff] %v6143_v20  ;;  %v2214_v4 = vld [vmem:[%s8054_s5 + $0xc0] sm:$0xff]  ;;  %v6165_v20 = vpack.c.bf16 %v1306_v15, %v1303_v38  ;;  %v2287_v62 = vand.u32 4294901760, %v2212_v47  ;;  %v1228_v55 = vld [vmem:[%s8053_s4 + $0xd0] sm:$0xff]  ;;  %v6175_v59 = vpack.c.bf16 %v2284_v3, %v2281_v58  ;;  %v6186_v38 = vpack.c.bf16 %v1312_v7, %v1309_v21 }
  0x63   :  { %4572 = vmatpush1.bf16.msra.mxu0 %v6021_v10  ;;  %4842 = vmatpush1.bf16.msra.mxu1 %v6041_v25  ;;  %8429 = vst [vmem:[#allocation62_spill] sm:$0xff] %v6141_v8  ;;  %v6153_v10 = vpack.c.bf16 %v2278_v33, %v2275_v27  ;;  %8432 = vst [vmem:[#allocation65_spill] sm:$0xff] %v6155_v48  ;;  %v2215_v25 = vld [vmem:[%s8054_s5 + $0xc8] sm:$0xff]  ;;  %v6167_v8 = vsub.f32 %v1223_v60, %v1306_v15  ;;  %v1229_v33 = vld [vmem:[%s8053_s4 + $0xd8] sm:$0xff]  ;;  %v1318_v48 = vand.u32 4294901760, %v1227_v13 }
  0x64   :  { %4573 = vmatprep.subr.bf16.mxu0 %v8412_v17  ;;  %4843 = vmatprep.subr.bf16.mxu1 %v8412_v17  ;;  %8433 = vst [vmem:[#allocation66_spill] sm:$0xff] %v6157_v63  ;;  %8434 = vst [vmem:[#allocation67_spill] sm:$0xff] %v6165_v20  ;;  %v6177_v27 = vsub.f32 %v2210_v44, %v2281_v58  ;;  %v1315_v63 = vand.u32 4294901760, %v1226_v37  ;;  %v30_v15 = vld [vmem:[%s8050_s1] sm:$0xff]  ;;  %v6184_v60 = vsub.f32 %v2211_v54, %v2284_v3  ;;  %v2216_v44 = vld [vmem:[%s8054_s5 + $0xd0] sm:$0xff] }
  0x65   :  { %8431 = vst [vmem:[#allocation64_spill] sm:$0xff] %v6153_v10  ;;  %8435 = vst [vmem:[#allocation68_spill] sm:$0xff] %v6167_v8  ;;  %v2293_v8 = vand.u32 4294901760, %v2214_v4  ;;  %v2296_v46 = vand.u32 4294901760, %v2215_v25  ;;  %v2217_v58 = vld [vmem:[%s8054_s5 + $0xd8] sm:$0xff]  ;;  %v6198_v54 = vsub.f32 %v1225_v45, %v1312_v7  ;;  %v1321_v3 = vand.u32 4294901760, %v1228_v55 }
  0x66   :  { %8436 = vst [vmem:[#allocation69_spill] sm:$0xff] %v6175_v59  ;;  %8437 = vst [vmem:[#allocation70_spill] sm:$0xff] %v6177_v27  ;;  %v6202_v27 = vsub.f32 %v2212_v47, %v2287_v62  ;;  %v36_v41 = vmul.f32 %v30_v15, %v30_v15  ;;  %v6206_v43 = vpack.c.bf16 %v1318_v48, %v1315_v63  ;;  %v2299_v30 = vand.u32 4294901760, %v2216_v44  ;;  %v1230_v42 = vld [vmem:[%s8053_s4 + $0xe0] sm:$0xff]  ;;  %v1231_v47 = vld [vmem:[%s8053_s4 + $0xe8] sm:$0xff] }
  0x67   :  { %4575 = vmatpush1.bf16.msra.mxu0 %v6049_v34  ;;  %4845 = vmatpush1.bf16.msra.mxu1 %v6073_v29  ;;  %8438 = vst [vmem:[#allocation71_spill] sm:$0xff] %v6184_v60  ;;  %8439 = vst [vmem:[#allocation72_spill] sm:$0xff] %v6186_v38  ;;  %v6196_v34 = vsub.f32 %v1224_v22, %v1309_v21  ;;  %v1324_v29 = vand.u32 4294901760, %v1229_v33  ;;  %v6200_v60 = vpack.c.bf16 %v2290_v9, %v2287_v62  ;;  %v8489_v52 = vld [vmem:[#allocation55_spill] sm:$0xff]  ;;  %v8491_v5 = vld [vmem:[#allocation57_spill] sm:$0xff] }
  0x68   :  { %4576 = vmatprep.subr.bf16.mxu0 %v8412_v17  ;;  %4846 = vmatprep.subr.bf16.mxu1 %v8412_v17  ;;  %8441 = vst [vmem:[#allocation74_spill] sm:$0xff] %v6204_v57  ;;  %8442 = vst [vmem:[#allocation75_spill] sm:$0xff] %v6206_v43  ;;  %v6208_v31 = vsub.f32 %v1226_v37, %v1315_v63  ;;  %v2302_v12 = vand.u32 4294901760, %v2217_v58  ;;  %v6212_v22 = vsub.f32 %v1227_v13, %v1318_v48  ;;  %v33_v37 = vld [vmem:[%s8050_s1 + $0x18] sm:$0xff]  ;;  %v8493_v11 = vld [vmem:[#allocation61_spill] sm:$0xff] }
  0x69   :  { %8440 = vst [vmem:[#allocation73_spill] sm:$0xff] %v6200_v60  ;;  %v6214_v45 = vpack.c.bf16 %v2296_v46, %v2293_v8  ;;  %v6216_v21 = vsub.f32 %v2214_v4, %v2293_v8  ;;  %v6226_v9 = vsub.f32 %v2215_v25, %v2296_v46  ;;  %v6228_v62 = vpack.c.bf16 %v1324_v29, %v1321_v3  ;;  %v6235_v8 = vld [vmem:[%s8054_s5 + $0xe0] sm:$0xff]  ;;  %v35_v4 = vld [vmem:[%s8050_s1 + $0x28] sm:$0xff] }
  0x6a   :  { %v6230_v13 = vsub.f32 %v1228_v55, %v1321_v3  ;;  %v6241_v48 = vsub.f32 %v1229_v33, %v1324_v29  ;;  %v6243_v63 = vsub.f32 %v2216_v44, %v2299_v30  ;;  %v6245_v25 = vand.u32 4294901760, %v36_v41  ;;  %v6258_v29 = vld [vmem:[%s8054_s5 + $0xe8] sm:$0xff] }
  0x6b   :  { %4578 = vmatpush1.bf16.msra.mxu0 %v6077_v53  ;;  %4848 = vmatpush1.bf16.msra.mxu1 %v6089_v28  ;;  %8443 = vst [vmem:[#allocation76_spill] sm:$0xff] %v6214_v45  ;;  %8444 = vst [vmem:[#allocation77_spill] sm:$0xff] %v6216_v21  ;;  %v6251_v55 = vpack.c.bf16 %v2302_v12, %v2299_v30  ;;  %v6253_v15 = vsub.f32 %v2217_v58, %v2302_v12  ;;  %v1327_v3 = vand.u32 4294901760, %v1230_v42  ;;  %v32_v12 = vld [vmem:[%s8050_s1 + $0x10] sm:$0xff] }
  0x6c   :  { %4579 = vmatprep.subr.bf16.mxu0 %v8412_v17  ;;  %4849 = vmatprep.subr.bf16.mxu1 %v8412_v17  ;;  %8445 = vst [vmem:[#allocation78_spill] sm:$0xff] %v6226_v9  ;;  %8446 = vst [vmem:[#allocation79_spill] sm:$0xff] %v6228_v62  ;;  %v1330_v7 = vand.u32 4294901760, %v1231_v47  ;;  %v39_v46 = vmul.f32 %v33_v37, %v33_v37  ;;  %v41_v33 = vmul.f32 %v35_v4, %v35_v4 }
  0x6d   :  { %8447 = vst [vmem:[#allocation80_spill] sm:$0xff] %v6230_v13  ;;  %8448 = vst [vmem:[#allocation81_spill] sm:$0xff] %v6241_v48  ;;  %v6270_v58 = vsub.f32 %v1230_v42, %v1327_v3  ;;  %v8127_v37 = vand.u32 4294901760, %v6258_v29  ;;  %v6280_v30 = vsub.f32 %v36_v41, %v6245_v25  ;;  %v8457_v28 = vand.u32 4294901760, %v5865_v23 }
  0x6e   :  { %8449 = vst [vmem:[#allocation82_spill] sm:$0xff] %v6243_v63  ;;  %8450 = vst [vmem:[#allocation83_spill] sm:$0xff] %v6245_v25  ;;  %v6290_v62 = vsub.f32 %v1231_v47, %v1330_v7  ;;  %v38_v44 = vmul.f32 %v32_v12, %v32_v12  ;;  %v1237_v12 = vsel %vm1232_vm2, %v39_v46, 0  ;;  %v8472_v46 = vand.u32 4294901760, %v5900_v2  ;;  %v8500_v6 = vld [vmem:[#allocation71_spill] sm:$0xff] }
  0x6f   :  { %8451 = vst [vmem:[#allocation84_spill] sm:$0xff] %v6251_v55  ;;  %8452 = vst [vmem:[#allocation85_spill] sm:$0xff] %v6253_v15  ;;  %4581 = vmatpush1.bf16.msra.mxu0 %v6103_v19  ;;  %4851 = vmatpush1.bf16.msra.mxu1 %v6125_v40  ;;  %v8454_v19 = vand.u32 4294901760, %v5861_v49  ;;  %v6285_v53 = vsub.f32 %v5865_v23, %v8457_v28  ;;  %v6288_v55 = vpack.c.bf16 %v1330_v7, %v1327_v3  ;;  %v8498_v23 = vld [vmem:[#allocation68_spill] sm:$0xff] }
  0x70   :  { %4582 = vmatprep.subr.bf16.mxu0 %v8412_v17  ;;  %4852 = vmatprep.subr.bf16.mxu1 %v8412_v17  ;;  %8453 = vst [vmem:[#allocation86_spill] sm:$0xff] %v6270_v58  ;;  %8456 = vst [vmem:[#allocation88_spill] sm:$0xff] %v6280_v30  ;;  %v6302_v41 = vsub.f32 %v6258_v29, %v8127_v37  ;;  %v8464_v28 = vand.u32 4294901760, %v5880_v56  ;;  %v8465_v7 = vand.u32 4294901760, %v5892_v61  ;;  %v8466_v37 = vand.u32 4294901760, %v5896_v0 }
  0x71   :  { %v6275_v40 = vsub.f32 %v5861_v49, %v8454_v19  ;;  %8458 = vst [vmem:[#allocation89_spill] sm:$0xff] %v6285_v53  ;;  %8459 = vst [vmem:[#allocation90_spill] sm:$0xff] %v6288_v55  ;;  %v8461_v19 = vand.u32 4294901760, %v6235_v8  ;;  %v6338_v55 = vand.u32 4294901760, %v1237_v12  ;;  %v8503_v57 = vand.u32 4294901760, %v6258_v29 }
  0x72   :  { %8460 = vst [vmem:[#allocation91_spill] sm:$0xff] %v6290_v62  ;;  %8463 = vst [vmem:[#allocation93_spill] sm:$0xff] %v6302_v41  ;;  %v6307_v47 = vsub.f32 %v5880_v56, %v8464_v28  ;;  %v6312_v3 = vsub.f32 %v5892_v61, %v8465_v7  ;;  %v6321_v42 = vsub.f32 %v5896_v0, %v8466_v37  ;;  %v6326_v7 = vand.u32 4294901760, %v6280_v30  ;;  %v34_v37 = vld [vmem:[%s8050_s1 + $0x20] sm:$0xff]  ;;  %v8499_v61 = vld [vmem:[#allocation70_spill] sm:$0xff] }
  0x73   :  { %8455 = vst [vmem:[#allocation87_spill] sm:$0xff] %v6275_v40  ;;  %v6295_v4 = vsub.f32 %v6235_v8, %v8461_v19  ;;  %4584 = vmatpush1.bf16.msra.mxu0 %v6129_v24  ;;  %4854 = vmatpush1.bf16.msra.mxu1 %v6153_v10  ;;  %v1240_v10 = vsel %vm1232_vm2, %v41_v33, 0  ;;  %v8468_v24 = vand.u32 4294901760, %v5898_v1  ;;  %8469 = vst [vmem:[#allocation95_spill] sm:$0xff] %v6338_v55  ;;  %v6340_v28 = vand.u32 4294901760, %v38_v44 }
  0x74   :  { %4585 = vmatprep.subr.bf16.mxu0 %v8412_v17  ;;  %4855 = vmatprep.subr.bf16.mxu1 %v8412_v17  ;;  %8467 = vst [vmem:[#allocation94_spill] sm:$0xff] %v6326_v7  ;;  %v2372_v19 = vand.u32 4294901760, %v6312_v3  ;;  %v6350_v53 = vand.u32 4294901760, %v1240_v10  ;;  %v1401_v33 = vand.u32 4294901760, %v6321_v42  ;;  %v1345_v3 = vsub.f32 %v6280_v30, %v6326_v7  ;;  %v8481_v30 = vld [vmem:[#allocation43_spill] sm:$0xff] }
  0x75   :  { %8462 = vst [vmem:[#allocation92_spill] sm:$0xff] %v6295_v4  ;;  %v6332_v25 = vsub.f32 %v5898_v1, %v8468_v24  ;;  %8470 = vst [vmem:[#allocation96_spill] sm:$0xff] %v6340_v28  ;;  %v2365_v24 = vand.u32 4294901760, %v6307_v47  ;;  %v8473_v0 = vand.u32 4294901760, %v5921_v14  ;;  %v8492_v7 = vld [vmem:[#allocation59_spill] sm:$0xff]  ;;  %v8505_v49 = vand.u32 4294901760, %v5925_v26 }
  0x76   :  { %8471 = vst [vmem:[#allocation97_spill] sm:$0xff] %v6350_v53  ;;  %v6388_v42 = vsub.f32 %v1240_v10, %v6350_v53  ;;  %v8495_v10 = vld [vmem:[#allocation63_spill] sm:$0xff]  ;;  %v8496_v53 = vld [vmem:[#allocation65_spill] sm:$0xff]  ;;  %v8203_v62 = vand.u32 4294901760, %v5937_v36 }
  0x77   :  { %4587 = vmatpush1.bf16.msra.mxu0 %v6165_v20  ;;  %4857 = vmatpush1.bf16.msra.mxu1 %v6175_v59  ;;  %v6360_v20 = vsub.f32 %v5900_v2, %v8472_v46  ;;  %v40_v59 = vmul.f32 %v34_v37, %v34_v37  ;;  %v1408_v40 = vand.u32 4294901760, %v6332_v25  ;;  %v6370_v1 = vsub.f32 %v5921_v14, %v8473_v0  ;;  %v8483_v2 = vld [vmem:[#allocation45_spill] sm:$0xff]  ;;  %v8497_v14 = vld [vmem:[#allocation66_spill] sm:$0xff] }
  0x78   :  { %4588 = vmatprep.subr.bf16.mxu0 %v8412_v17  ;;  %4858 = vmatprep.subr.bf16.mxu1 %v8412_v17  ;;  %v6375_v46 = vsub.f32 %v1237_v12, %v6338_v55  ;;  %v6378_v37 = vsub.f32 %v38_v44, %v6340_v28  ;;  %8476 = vst [vmem:[#allocation100_spill] sm:$0xff] %v6388_v42  ;;  %v8484_v44 = vld [vmem:[#allocation47_spill] sm:$0xff]  ;;  %v8485_v28 = vld [vmem:[#allocation49_spill] sm:$0xff]  ;;  %v8486_v55 = vld [vmem:[#allocation50_spill] sm:$0xff] }
  0x79   :  { %v6396_v25 = vand.u32 4294901760, %v40_v59  ;;  %v6457_v9 = vsub.f32 %v5925_v26, %v8505_v49  ;;  %v8512_v29 = vld [vmem:[#allocation89_spill] sm:$0xff]  ;;  %v4871_v4 = vpack.c.bf16 %v2372_v19, %v2365_v24  ;;  %v8210_v49 = vand.u32 4294901760, %v5945_v18 }
  0x7a   :  { %8474 = vst [vmem:[#allocation98_spill] sm:$0xff] %v6375_v46  ;;  %8475 = vst [vmem:[#allocation99_spill] sm:$0xff] %v6378_v37  ;;  %v6432_v12 = vand.u32 4294901760, %v6375_v46  ;;  %v6460_v47 = vand.u32 4294901760, %v6378_v37  ;;  %v2379_v26 = vand.u32 4294901760, %v6360_v20  ;;  %v6486_v24 = vand.u32 4294901760, %v6388_v42 }
  0x7b   :  { %4590 = vmatpush1.bf16.msra.mxu0 %v6186_v38  ;;  %4860 = vmatpush1.bf16.msra.mxu1 %v6200_v60  ;;  %8477 = vst [vmem:[#allocation101_spill] sm:$0xff] %v6396_v25  ;;  %v8494_v38 = vld [vmem:[#allocation62_spill] sm:$0xff]  ;;  %v8502_v60 = vand.u32 4294901760, %v6235_v8  ;;  %v6463_v0 = vsub.f32 %v40_v59, %v6396_v25  ;;  %v8510_v8 = vld [vmem:[#allocation87_spill] sm:$0xff]  ;;  %v4604_v59 = vpack.c.bf16 %v1408_v40, %v1401_v33  ;;  %v1415_v40 = vand.u32 4294901760, %v6457_v9 }
  0x7c   :  { %4591 = vmatprep.subr.bf16.mxu0 %v8412_v17  ;;  %4861 = vmatprep.subr.bf16.mxu1 %v8412_v17  ;;  %8501 = vst [vmem:[#allocation43_spill] sm:$0xff] %v6432_v12  ;;  %8506 = vst [vmem:[#allocation47_spill] sm:$0xff] %v6460_v47  ;;  %v8511_v41 = vand.u32 4294901760, %v8510_v8  ;;  %v1354_v19 = vsub.f32 %v6375_v46, %v6432_v12  ;;  %v2399_v9 = vsub.f32 %v5945_v18, %v8210_v49  ;;  %v8521_v46 = vld [vmem:[#allocation35_spill] sm:$0xff] }
  0x7d   :  { %v6452_v56 = vpack.c.bf16 %v8503_v57, %v8502_v60  ;;  %8507 = vst [vmem:[#allocation49_spill] sm:$0xff] %v6463_v0  ;;  %v8513_v57 = vand.u32 4294901760, %v8512_v29  ;;  %v6480_v29 = vand.u32 4294901760, %v1345_v3  ;;  %8516 = vst [vmem:[#allocation59_spill] sm:$0xff] %v6486_v24  ;;  %v6493_v33 = vand.u32 4294901760, %v6463_v0 }
  0x7e   :  { %v2392_v3 = vsub.f32 %v5937_v36, %v8203_v62  ;;  %v1369_v49 = vsub.f32 %v6388_v42, %v6486_v24  ;;  %v2400_v12 = vand.u32 4294901760, %v2399_v9 }
  0x7f   :  { %4593 = vmatpush1.bf16.msra.mxu0 %v6206_v43  ;;  %4863 = vmatpush1.bf16.msra.mxu1 %v6214_v45  ;;  %8504 = vst [vmem:[#allocation45_spill] sm:$0xff] %v6452_v56  ;;  %v8508_v45 = vld [vmem:[#allocation79_spill] sm:$0xff]  ;;  %v8509_v43 = vld [vmem:[#allocation84_spill] sm:$0xff]  ;;  %v4601_v60 = vpack.c.bf16 %v8513_v57, %v8511_v41  ;;  %8515 = vst [vmem:[#allocation50_spill] sm:$0xff] %v6480_v29  ;;  %v8214_v57 = vand.u32 4294901760, %v5965_v39 }
  0x80   :  { %4594 = vmatprep.subr.bf16.mxu0 %v8412_v17  ;;  %4864 = vmatprep.subr.bf16.mxu1 %v8412_v17  ;;  %8517 = vst [vmem:[#allocation61_spill] sm:$0xff] %v6493_v33  ;;  %v2393_v36 = vand.u32 4294901760, %v2392_v3  ;;  %v8529_v3 = vld [vmem:[#allocation37_spill] sm:$0xff] }
  0x81   :  { %v2406_v20 = vsub.f32 %v5965_v39, %v8214_v57  ;;  %v8533_v39 = vld [vmem:[#allocation40_spill] sm:$0xff] }
  0x83   :  { %4596 = vmatpush1.bf16.msra.mxu0 %v8508_v45  ;;  %4866 = vmatpush1.bf16.msra.mxu1 %v8509_v43  ;;  %v2386_v45 = vand.u32 4294901760, %v6370_v1  ;;  %v8514_v43 = vand.u32 4294901760, %v5935_v32  ;;  %v1360_v1 = vsub.f32 %v6378_v37, %v6460_v47  ;;  %v8520_v37 = vld [vmem:[#allocation34_spill] sm:$0xff] }
  0x84   :  { %4597 = vmatprep.subr.bf16.mxu0 %v8412_v17  ;;  %4867 = vmatprep.subr.bf16.mxu1 %v8412_v17  ;;  %v8531_v24 = vand.u32 4294901760, %v8520_v37 }
  0x85   :  { %v1421_v8 = vsub.f32 %v5935_v32, %v8514_v43  ;;  %v8518_v43 = vld [vmem:[#allocation90_spill] sm:$0xff]  ;;  %v4874_v41 = vpack.c.bf16 %v2386_v45, %v2379_v26  ;;  %v6511_v32 = vand.u32 4294901760, %v1354_v19  ;;  %v8523_v26 = vand.u32 4294901760, %v5961_v35 }
  0x86   :  { %v6523_v62 = vand.u32 4294901760, %v1360_v1  ;;  %v1375_v19 = vsub.f32 %v6463_v0, %v6493_v33  ;;  %v8527_v1 = vand.u32 4294901760, %v5991_v50  ;;  %v8530_v33 = vld [vmem:[#allocation38_spill] sm:$0xff]  ;;  %v8532_v0 = vand.u32 4294901760, %v8521_v46 }
  0x87   :  { %4599 = vmatpush1.bf16.msra.mxu0 %v8518_v43  ;;  %4869 = vmatpush1.bf16.msra.mxu1 %v6452_v56  ;;  %v1422_v47 = vand.u32 4294901760, %v1421_v8  ;;  %v8519_v56 = vld [vmem:[#allocation31_spill] sm:$0xff]  ;;  %8522 = vst [vmem:[#allocation62_spill] sm:$0xff] %v6511_v32  ;;  %v1428_v45 = vsub.f32 %v5961_v35, %v8523_v26  ;;  %v8524_v8 = vand.u32 4294901760, %v5963_v16  ;;  %v8538_v57 = vand.u32 4294901760, %v8530_v33 }
  0x88   :  { %4600 = vmatprep.subr.bf16.mxu0 %v8412_v17  ;;  %4870 = vmatprep.subr.bf16.mxu1 %v8412_v17  ;;  %8525 = vst [vmem:[#allocation63_spill] sm:$0xff] %v6523_v62  ;;  %v2427_v42 = vsub.f32 %v8521_v46, %v8532_v0  ;;  %v4877_v0 = vpack.c.bf16 %v2400_v12, %v2393_v36  ;;  %v8539_v36 = vand.u32 4294901760, %v8533_v39 }
  0x89   :  { %v1435_v43 = vsub.f32 %v5963_v16, %v8524_v8  ;;  %v1442_v8 = vsub.f32 %v5991_v50, %v8527_v1  ;;  %v6552_v1 = vand.u32 4294901760, %v1369_v49  ;;  %v1429_v9 = vand.u32 4294901760, %v1428_v45  ;;  %v8535_v50 = vld [vmem:[#allocation41_spill] sm:$0xff] }
  0x8a   :  { %1347 = vmatmul.mubr.f32.vlgmr.msra.gmra.mrb[6].mxu0 %v6480_v29  ;;  %2325 = vmatmul.mubr.f32.vlgmr.msra.gmra.mrb[6].mxu1 %v6480_v29  ;;  %v8526_v29 = vand.u32 4294901760, %v5977_v51  ;;  %v2434_v12 = vsub.f32 %v8533_v39, %v8539_v36 }
  0x8b   :  { %4602 = vmatpush1.bf16.msra.mxu0 %v4601_v60  ;;  %4872 = vmatpush1.bf16.msra.mxu1 %v4871_v4  ;;  %v8528_v4 = vand.u32 4294901760, %v8519_v56  ;;  %8534 = vst [vmem:[#allocation65_spill] sm:$0xff] %v6552_v1 }
  0x8c   :  { %v2413_v26 = vsub.f32 %v5977_v51, %v8526_v29  ;;  %4603 = vmatprep.subr.bf16.mxu0 %v8412_v17  ;;  %4873 = vmatprep.subr.bf16.mxu1 %v8412_v17  ;;  %v2420_v29 = vsub.f32 %v8520_v37, %v8531_v24  ;;  %v6557_v24 = vand.u32 4294901760, %v1375_v19  ;;  %v1436_v51 = vand.u32 4294901760, %v1435_v43 }
  0x8d   :  { %v1449_v60 = vsub.f32 %v8519_v56, %v8528_v4  ;;  %1356 = vmatprep.mubr.f32.mxu0 %v6511_v32  ;;  %2334 = vmatprep.mubr.f32.mxu1 %v6511_v32  ;;  %v4607_v4 = vpack.c.bf16 %v1422_v47, %v1415_v40  ;;  %v2407_v37 = vand.u32 4294901760, %v2406_v20  ;;  %v1443_v47 = vand.u32 4294901760, %v1442_v8  ;;  %v8541_v8 = vld [vmem:[#allocation44_spill] sm:$0xff] }
  0x8e   :  { %1362 = vmatmul.mubr.f32.gmra.mrb[8].mxu0 %v6523_v62  ;;  %2340 = vmatmul.mubr.f32.gmra.mrb[8].mxu1 %v6523_v62  ;;  %8536 = vst [vmem:[#allocation66_spill] sm:$0xff] %v6557_v24  ;;  %v2414_v46 = vand.u32 4294901760, %v2413_v26  ;;  %v8537_v40 = vand.u32 4294901760, %v8529_v3  ;;  %v1463_v19 = vsub.f32 %v8530_v33, %v8538_v57  ;;  %v8540_v43 = vand.u32 4294901760, %v8535_v50 }
  0x8f   :  { %4605 = vmatpush1.bf16.msra.mxu0 %v4604_v59  ;;  %4875 = vmatpush1.bf16.msra.mxu1 %v4874_v41  ;;  %v1450_v49 = vand.u32 4294901760, %v1449_v60  ;;  %v2421_v59 = vand.u32 4294901760, %v2420_v29  ;;  %v2428_v41 = vand.u32 4294901760, %v2427_v42  ;;  %v4610_v42 = vpack.c.bf16 %v1436_v51, %v1429_v9 }
  0x90   :  { %4606 = vmatprep.subr.bf16.mxu0 %v8412_v17  ;;  %4876 = vmatprep.subr.bf16.mxu1 %v8412_v17  ;;  %v1456_v45 = vsub.f32 %v8529_v3, %v8537_v40  ;;  %v2441_v26 = vsub.f32 %v8535_v50, %v8540_v43  ;;  %v4880_v57 = vpack.c.bf16 %v2414_v46, %v2407_v37  ;;  %v8231_v29 = vand.u32 4294901760, %v8483_v2 }
  0x91   :  { %1371 = vmatprep.mubr.f32.mxu0 %v6552_v1  ;;  %2349 = vmatprep.mubr.f32.mxu1 %v6552_v1  ;;  %v8232_v40 = vand.u32 4294901760, %v8484_v44  ;;  %v4613_v36 = vpack.c.bf16 %v1450_v49, %v1443_v47  ;;  %v4883_v20 = vpack.c.bf16 %v2428_v41, %v2421_v59  ;;  %v1464_v60 = vand.u32 4294901760, %v1463_v19  ;;  %v8546_v59 = vld [vmem:[#allocation53_spill] sm:$0xff] }
  0x92   :  { %1377 = vmatmul.mubr.f32.gmra.mrb[10].mxu0 %v6557_v24  ;;  %2355 = vmatmul.mubr.f32.gmra.mrb[10].mxu1 %v6557_v24  ;;  %v1457_v43 = vand.u32 4294901760, %v1456_v45  ;;  %v2435_v1 = vand.u32 4294901760, %v2434_v12  ;;  %v8542_v62 = vand.u32 4294901760, %v8481_v30  ;;  %v2442_v51 = vand.u32 4294901760, %v2441_v26  ;;  %v8545_v45 = vld [vmem:[#allocation52_spill] sm:$0xff] }
  0x93   :  { %4608 = vmatpush1.bf16.msra.mxu0 %v4607_v4  ;;  %4878 = vmatpush1.bf16.msra.mxu1 %v4877_v0  ;;  %v8543_v0 = vld [vmem:[#allocation5_spill] sm:$0xff]  ;;  %v8544_v46 = vand.u32 4294901760, %v8541_v8  ;;  %v2448_v49 = vsub.f32 %v8483_v2, %v8231_v29  ;;  %v8547_v26 = vld [vmem:[#allocation56_spill] sm:$0xff]  ;;  %v8238_v29 = vand.u32 4294901760, %v8491_v5  ;;  %v8239_v47 = vand.u32 4294901760, %v8492_v7 }
  0x94   :  { %4609 = vmatprep.subr.bf16.mxu0 %v8412_v17  ;;  %4879 = vmatprep.subr.bf16.mxu1 %v8412_v17  ;;  %v1470_v4 = vsub.f32 %v8481_v30, %v8542_v62  ;;  %v2455_v62 = vsub.f32 %v8484_v44, %v8232_v40  ;;  %v4886_v9 = vpack.c.bf16 %v2442_v51, %v2435_v1  ;;  %v8548_v19 = vand.u32 4294901760, %v8485_v28 }
  0x95   :  { %1597 = vmatprep.mubr.f32.mxu0 %v8543_v0  ;;  %2575 = vmatprep.mubr.f32.mxu1 %v8543_v0  ;;  %v1477_v37 = vsub.f32 %v8541_v8, %v8544_v46  ;;  %v8549_v24 = vand.u32 4294901760, %v8486_v55  ;;  %v2449_v12 = vand.u32 4294901760, %v2448_v49  ;;  %v8552_v51 = vand.u32 4294901760, %v8489_v52 }
  0x96   :  { %v1471_v46 = vand.u32 4294901760, %v1470_v4  ;;  %v1484_v41 = vsub.f32 %v8485_v28, %v8548_v19  ;;  %v8551_v4 = vand.u32 4294901760, %v8546_v59  ;;  %v2483_v49 = vsub.f32 %v8492_v7, %v8239_v47 }
  0x97   :  { %4611 = vmatpush1.bf16.msra.mxu0 %v4610_v42  ;;  %4881 = vmatpush1.bf16.msra.mxu1 %v4880_v57  ;;  %v4616_v57 = vpack.c.bf16 %v1464_v60, %v1457_v43  ;;  %v1478_v40 = vand.u32 4294901760, %v1477_v37  ;;  %v1491_v32 = vsub.f32 %v8486_v55, %v8549_v24  ;;  %v2456_v42 = vand.u32 4294901760, %v2455_v62 }
  0x98   :  { %4612 = vmatprep.subr.bf16.mxu0 %v8412_v17  ;;  %4882 = vmatprep.subr.bf16.mxu1 %v8412_v17  ;;  %v8550_v60 = vand.u32 4294901760, %v8545_v45  ;;  %v2469_v1 = vsub.f32 %v8546_v59, %v8551_v4  ;;  %v1498_v24 = vsub.f32 %v8489_v52, %v8552_v51  ;;  %v2476_v37 = vsub.f32 %v8491_v5, %v8238_v29 }
  0x99   :  { %v1485_v4 = vand.u32 4294901760, %v1484_v41  ;;  %v8242_v51 = vand.u32 4294901760, %v8495_v10  ;;  %v8241_v0 = vand.u32 4294901760, %v8496_v53  ;;  %v1492_v52 = vand.u32 4294901760, %v1491_v32 }
  0x9a   :  { %v2462_v43 = vsub.f32 %v8545_v45, %v8550_v60  ;;  %v4619_v60 = vpack.c.bf16 %v1478_v40, %v1471_v46  ;;  %v2470_v29 = vand.u32 4294901760, %v2469_v1  ;;  %v1499_v47 = vand.u32 4294901760, %v1498_v24 }
  0x9b   :  { %4614 = vmatpush1.bf16.msra.mxu0 %v4613_v36  ;;  %4884 = vmatpush1.bf16.msra.mxu1 %v4883_v20  ;;  %v8553_v20 = vand.u32 4294901760, %v8547_v26  ;;  %v2477_v5 = vand.u32 4294901760, %v2476_v37  ;;  %v2484_v19 = vand.u32 4294901760, %v2483_v49  ;;  %v8554_v40 = vand.u32 4294901760, %v8493_v11 }
  0x9c   :  { %4615 = vmatprep.subr.bf16.mxu0 %v8412_v17  ;;  %4885 = vmatprep.subr.bf16.mxu1 %v8412_v17  ;;  %v8555_v46 = vand.u32 4294901760, %v8494_v38  ;;  %v2490_v32 = vsub.f32 %v8495_v10, %v8242_v51  ;;  %v8244_v24 = vand.u32 4294901760, %v8499_v61  ;;  %v8247_v37 = vand.u32 4294901760, %v6196_v34 }
  0x9d   :  { %v1505_v36 = vsub.f32 %v8547_v26, %v8553_v20  ;;  %v4889_v20 = vpack.c.bf16 %v2456_v42, %v2449_v12  ;;  %v2463_v26 = vand.u32 4294901760, %v2462_v43  ;;  %v1512_v41 = vsub.f32 %v8493_v11, %v8554_v40 }
  0x9e   :  { %v2497_v12 = vsub.f32 %v8496_v53, %v8241_v0  ;;  %v8246_v42 = vand.u32 4294901760, %v8497_v14  ;;  %v4622_v43 = vpack.c.bf16 %v1492_v52, %v1485_v4  ;;  %v8248_v49 = vand.u32 4294901760, %v6198_v54 }
  0x9f   :  { %4617 = vmatpush1.bf16.msra.mxu0 %v4616_v57  ;;  %4887 = vmatpush1.bf16.msra.mxu1 %v4886_v9  ;;  %v1506_v62 = vand.u32 4294901760, %v1505_v36  ;;  %v1519_v9 = vsub.f32 %v8494_v38, %v8555_v46  ;;  %v8245_v57 = vand.u32 4294901760, %v8498_v23  ;;  %v4892_v1 = vpack.c.bf16 %v2470_v29, %v2463_v26 }
  0xa0   :  { %4618 = vmatprep.subr.bf16.mxu0 %v8412_v17  ;;  %4888 = vmatprep.subr.bf16.mxu1 %v8412_v17  ;;  %v8243_v36 = vand.u32 4294901760, %v8500_v6  ;;  %v4895_v46 = vpack.c.bf16 %v2484_v19, %v2477_v5  ;;  %v1513_v0 = vand.u32 4294901760, %v1512_v41  ;;  %v1526_v52 = vsub.f32 %v8497_v14, %v8246_v42 }
  0xa1   :  { %v4625_v40 = vpack.c.bf16 %v1506_v62, %v1499_v47  ;;  %v1520_v51 = vand.u32 4294901760, %v1519_v9  ;;  %v1533_v29 = vsub.f32 %v8498_v23, %v8245_v57  ;;  %v2504_v26 = vsub.f32 %v8499_v61, %v8244_v24  ;;  %v8556_v62 = vld [vmem:[#allocation74_spill] sm:$0xff] }
  0xa2   :  { %v2511_v5 = vsub.f32 %v8500_v6, %v8243_v36  ;;  %v8249_v47 = vand.u32 4294901760, %v6202_v27  ;;  %v1540_v4 = vsub.f32 %v6196_v34, %v8247_v37  ;;  %v1547_v41 = vsub.f32 %v6198_v54, %v8248_v49 }
  0xa3   :  { %4620 = vmatpush1.bf16.msra.mxu0 %v4619_v60  ;;  %4890 = vmatpush1.bf16.msra.mxu1 %v4889_v20  ;;  %v2491_v60 = vand.u32 4294901760, %v2490_v32  ;;  %v2498_v20 = vand.u32 4294901760, %v2497_v12  ;;  %v8250_v12 = vand.u32 4294901760, %v6216_v21  ;;  %v4628_v36 = vpack.c.bf16 %v1520_v51, %v1513_v0 }
  0xa4   :  { %4621 = vmatprep.subr.bf16.mxu0 %v8412_v17  ;;  %4891 = vmatprep.subr.bf16.mxu1 %v8412_v17  ;;  %v1527_v57 = vand.u32 4294901760, %v1526_v52  ;;  %v1534_v42 = vand.u32 4294901760, %v1533_v29  ;;  %v2505_v19 = vand.u32 4294901760, %v2504_v26  ;;  %v2512_v37 = vand.u32 4294901760, %v2511_v5 }
  0xa5   :  { %v4898_v24 = vpack.c.bf16 %v2498_v20, %v2491_v60  ;;  %v2518_v49 = vsub.f32 %v6202_v27, %v8249_v47  ;;  %v8558_v9 = vand.u32 4294901760, %v8556_v62  ;;  %v1541_v0 = vand.u32 4294901760, %v1540_v4 }
  0xa6   :  { %v1548_v51 = vand.u32 4294901760, %v1547_v41  ;;  %v8559_v60 = vand.u32 4294901760, %v6208_v31  ;;  %v2532_v52 = vsub.f32 %v6216_v21, %v8250_v12  ;;  %v8255_v41 = vand.u32 4294901760, %v6253_v15 }
  0xa7   :  { %4623 = vmatpush1.bf16.msra.mxu0 %v4622_v43  ;;  %4893 = vmatpush1.bf16.msra.mxu1 %v4892_v1  ;;  %v8557_v43 = vld [vmem:[#allocation78_spill] sm:$0xff]  ;;  %v2525_v32 = vsub.f32 %v8556_v62, %v8558_v9  ;;  %v4631_v9 = vpack.c.bf16 %v1534_v42, %v1527_v57  ;;  %v8561_v5 = vand.u32 4294901760, %v6230_v13  ;;  %v8563_v57 = vand.u32 4294901760, %v6243_v63 }
  0xa8   :  { %4624 = vmatprep.subr.bf16.mxu0 %v8412_v17  ;;  %4894 = vmatprep.subr.bf16.mxu1 %v8412_v17  ;;  %v8251_v1 = vand.u32 4294901760, %v8557_v43  ;;  %v4634_v12 = vpack.c.bf16 %v1548_v51, %v1541_v0  ;;  %v2533_v26 = vand.u32 4294901760, %v2532_v52  ;;  %v8565_v51 = vld [vmem:[#allocation92_spill] sm:$0xff] }
  0xa9   :  { %v2526_v47 = vand.u32 4294901760, %v2525_v32  ;;  %v1568_v4 = vsub.f32 %v6230_v13, %v8561_v5  ;;  %v8564_v32 = vld [vmem:[#allocation91_spill] sm:$0xff] }
  0xaa   :  { %v2539_v29 = vsub.f32 %v8557_v43, %v8251_v1  ;;  %v8260_v0 = vand.u32 4294901760, %v8564_v32 }
  0xab   :  { %4626 = vmatpush1.bf16.msra.mxu0 %v4625_v40  ;;  %4896 = vmatpush1.bf16.msra.mxu1 %v4895_v46  ;;  %v1554_v40 = vsub.f32 %v6208_v31, %v8559_v60  ;;  %v8560_v46 = vand.u32 4294901760, %v6212_v22  ;;  %v4901_v60 = vpack.c.bf16 %v2512_v37, %v2505_v19  ;;  %v2553_v37 = vsub.f32 %v6253_v15, %v8255_v41 }
  0xac   :  { %4627 = vmatprep.subr.bf16.mxu0 %v8412_v17  ;;  %4897 = vmatprep.subr.bf16.mxu1 %v8412_v17  ;;  %v2540_v43 = vand.u32 4294901760, %v2539_v29 }
  0xad   :  { %v1561_v20 = vsub.f32 %v6212_v22, %v8560_v46  ;;  %v2519_v46 = vand.u32 4294901760, %v2518_v49  ;;  %v1555_v1 = vand.u32 4294901760, %v1554_v40  ;;  %v8261_v49 = vand.u32 4294901760, %v6270_v58 }
  0xae   :  { %v8259_v40 = vand.u32 4294901760, %v8565_v51  ;;  %v4907_v5 = vpack.c.bf16 %v2540_v43, %v2533_v26 }
  0xaf   :  { %4629 = vmatpush1.bf16.msra.mxu0 %v4628_v36  ;;  %4899 = vmatpush1.bf16.msra.mxu1 %v4898_v24  ;;  %v1562_v21 = vand.u32 4294901760, %v1561_v20  ;;  %v8562_v36 = vand.u32 4294901760, %v6241_v48  ;;  %v2546_v24 = vsub.f32 %v6243_v63, %v8563_v57  ;;  %v4904_v19 = vpack.c.bf16 %v2526_v47, %v2519_v46  ;;  %v8566_v20 = vld [vmem:[#allocation93_spill] sm:$0xff] }
  0xb0   :  { %4630 = vmatprep.subr.bf16.mxu0 %v8412_v17  ;;  %4900 = vmatprep.subr.bf16.mxu1 %v8412_v17  ;;  %v8258_v52 = vand.u32 4294901760, %v8566_v20  ;;  %v2554_v63 = vand.u32 4294901760, %v2553_v37  ;;  %v1582_v47 = vsub.f32 %v6270_v58, %v8261_v49  ;;  %v8569_v37 = vld [vmem:[#allocation7_spill] sm:$0xff]  ;;  %v8596_v49 = vld [vmem:[#allocation34_spill] sm:$0xff] }
  0xb1   :  { %v1575_v42 = vsub.f32 %v6241_v48, %v8562_v36  ;;  %v4637_v29 = vpack.c.bf16 %v1562_v21, %v1555_v1  ;;  %v1569_v36 = vand.u32 4294901760, %v1568_v4  ;;  %v2547_v41 = vand.u32 4294901760, %v2546_v24 }
  0xb2   :  { %v2567_v21 = vsub.f32 %v8566_v20, %v8258_v52  ;;  %v8591_v52 = vld [vmem:[#allocation26_spill] sm:$0xff] }
  0xb3   :  { %4632 = vmatpush1.bf16.msra.mxu0 %v4631_v9  ;;  %4902 = vmatpush1.bf16.msra.mxu1 %v4901_v60  ;;  %v1576_v57 = vand.u32 4294901760, %v1575_v42  ;;  %v1589_v9 = vsub.f32 %v8564_v32, %v8260_v0  ;;  %v2560_v60 = vsub.f32 %v8565_v51, %v8259_v40  ;;  %v4910_v1 = vpack.c.bf16 %v2554_v63, %v2547_v41  ;;  %v8567_v63 = vld [vmem:[#allocation83_spill] sm:$0xff]  ;;  %v8568_v41 = vld [vmem:[#allocation8_spill] sm:$0xff] }
  0xb4   :  { %4633 = vmatprep.subr.bf16.mxu0 %v8412_v17  ;;  %4903 = vmatprep.subr.bf16.mxu1 %v8412_v17  ;;  %v2568_v46 = vand.u32 4294901760, %v2567_v21  ;;  %v8595_v0 = vld [vmem:[#allocation35_spill] sm:$0xff] }
  0xb5   :  { %v4640_v43 = vpack.c.bf16 %v1576_v57, %v1569_v36  ;;  %v1590_v26 = vand.u32 4294901760, %v1589_v9  ;;  %v2561_v4 = vand.u32 4294901760, %v2560_v60  ;;  %v8574_v57 = vld [vmem:[#allocation95_spill] sm:$0xff]  ;;  %v8577_v60 = vld [vmem:[#allocation14_spill] sm:$0xff] }
  0xb6   :  { %v8576_v9 = vld [vmem:[#allocation15_spill] sm:$0xff] }
  0xb7   :  { %4635 = vmatpush1.bf16.msra.mxu0 %v4634_v12  ;;  %4905 = vmatpush1.bf16.msra.mxu1 %v4904_v19  ;;  %v1583_v12 = vand.u32 4294901760, %v1582_v47  ;;  %v4913_v24 = vpack.c.bf16 %v2568_v46, %v2561_v4  ;;  %v8570_v19 = vpack.c.bf16 %v8568_v41, %v8569_v37  ;;  %v8575_v47 = vld [vmem:[#allocation96_spill] sm:$0xff]  ;;  %v8578_v21 = vpack.c.bf16 %v8576_v9, %v8577_v60  ;;  %v8583_v4 = vld [vmem:[#allocation22_spill] sm:$0xff]  ;;  %v8584_v46 = vld [vmem:[#allocation21_spill] sm:$0xff] }
  0xb8   :  { %4636 = vmatprep.subr.bf16.mxu0 %v8412_v17  ;;  %4906 = vmatprep.subr.bf16.mxu1 %v8412_v17 }
  0xb9   :  { %v4643_v42 = vpack.c.bf16 %v1590_v26, %v1583_v12  ;;  %v8582_v26 = vld [vmem:[#allocation97_spill] sm:$0xff] }
  0xbb   :  { %4638 = vmatpush1.bf16.msra.mxu0 %v4637_v29  ;;  %4908 = vmatpush1.bf16.msra.mxu1 %v4907_v5  ;;  %v8571_v29 = vld [vmem:[#allocation12_spill] sm:$0xff]  ;;  %v8572_v5 = vld [vmem:[#allocation11_spill] sm:$0xff] }
  0xbc   :  { %4639 = vmatprep.subr.bf16.mxu0 %v8412_v17  ;;  %4909 = vmatprep.subr.bf16.mxu1 %v8412_v17  ;;  %v8573_v36 = vpack.c.bf16 %v8571_v29, %v8572_v5 }
  0xbf   :  { %4641 = vmatpush1.bf16.msra.mxu0 %v4640_v43  ;;  %4911 = vmatpush1.bf16.msra.mxu1 %v4910_v1  ;;  %v8579_v43 = vld [vmem:[#allocation19_spill] sm:$0xff]  ;;  %v8580_v1 = vld [vmem:[#allocation16_spill] sm:$0xff] }
  0xc0   :  { %4642 = vmatprep.subr.bf16.mxu0 %v8412_v17  ;;  %4912 = vmatprep.subr.bf16.mxu1 %v8412_v17  ;;  %v8581_v12 = vpack.c.bf16 %v8579_v43, %v8580_v1 }
  0xc3   :  { %4644 = vmatpush1.bf16.msra.mxu0 %v4643_v42  ;;  %4914 = vmatpush1.bf16.msra.mxu1 %v4913_v24  ;;  %v8585_v42 = vpack.c.bf16 %v8583_v4, %v8584_v46  ;;  %v8586_v24 = vld [vmem:[#allocation23_spill] sm:$0xff] }
  0xc4   :  { %4645 = vmatprep.subr.bf16.mxu0 %v8412_v17  ;;  %4915 = vmatprep.subr.bf16.mxu1 %v8412_v17 }
  0xc6   :  { %1599 = vmatmul.mubr.f32.vlgmr.msra.gmra.mrb[6].mxu0 %v8567_v63  ;;  %2577 = vmatmul.mubr.f32.vlgmr.msra.gmra.mrb[6].mxu1 %v8567_v63 }
  0xc7   :  { %4647 = vmatpush1.bf16.msra.mxu0 %v8570_v19  ;;  %4917 = vmatpush1.bf16.msra.mxu1 %v8573_v36  ;;  %v8587_v19 = vpack.c.bf16 %v5945_v18, %v8586_v24  ;;  %v8588_v36 = vld [vmem:[#allocation9_spill] sm:$0xff] }
  0xc8   :  { %4648 = vmatprep.subr.bf16.mxu0 %v8412_v17  ;;  %4918 = vmatprep.subr.bf16.mxu1 %v8412_v17 }
  0xc9   :  { %1604 = vmatprep.mubr.f32.mxu0 %v8574_v57  ;;  %2582 = vmatprep.mubr.f32.mxu1 %v8574_v57  ;;  %v8617_v57 = vld [vmem:[#allocation77_spill] sm:$0xff] }
  0xca   :  { %1606 = vmatmul.mubr.f32.gmra.mrb[8].mxu0 %v8575_v47  ;;  %2584 = vmatmul.mubr.f32.gmra.mrb[8].mxu1 %v8575_v47 }
  0xcb   :  { %4650 = vmatpush1.bf16.msra.mxu0 %v8578_v21  ;;  %4920 = vmatpush1.bf16.msra.mxu1 %v8581_v12  ;;  %v8589_v21 = vpack.c.bf16 %v5963_v16, %v5961_v35  ;;  %v8590_v12 = vld [vmem:[#allocation28_spill] sm:$0xff] }
  0xcc   :  { %4651 = vmatprep.subr.bf16.mxu0 %v8412_v17  ;;  %4921 = vmatprep.subr.bf16.mxu1 %v8412_v17  ;;  %v8592_v40 = vpack.c.bf16 %v8590_v12, %v8591_v52 }
  0xcd   :  { %1611 = vmatprep.mubr.f32.mxu0 %v8582_v26  ;;  %2589 = vmatprep.mubr.f32.mxu1 %v8582_v26 }
  0xce   :  { %1613 = vmatmul.mubr.f32.gmra.mrb[10].mxu0 %v6396_v25  ;;  %2591 = vmatmul.mubr.f32.gmra.mrb[10].mxu1 %v6396_v25  ;;  %v8597_v25 = vpack.c.bf16 %v8595_v0, %v8596_v49 }
  0xcf   :  { %4653 = vmatpush1.bf16.msra.mxu0 %v8585_v42  ;;  %4923 = vmatpush1.bf16.msra.mxu1 %v8587_v19  ;;  %v8593_v42 = vld [vmem:[#allocation30_spill] sm:$0xff] }
  0xd0   :  { %4654 = vmatprep.subr.bf16.mxu0 %v8412_v17  ;;  %4924 = vmatprep.subr.bf16.mxu1 %v8412_v17  ;;  %v8594_v19 = vpack.c.bf16 %v8519_v56, %v8593_v42 }
  0xd1   :  { %1744 = vmatprep.mubr.f32.mxu0 %v8588_v36  ;;  %2722 = vmatprep.mubr.f32.mxu1 %v8588_v36  ;;  %v8605_v36 = vld [vmem:[#allocation55_spill] sm:$0xff] }
  0xd3   :  { %4656 = vmatpush1.bf16.msra.mxu0 %v8589_v21  ;;  %4926 = vmatpush1.bf16.msra.mxu1 %v8592_v40  ;;  %v8598_v21 = vpack.c.bf16 %v8530_v33, %v8529_v3  ;;  %v8599_v40 = vpack.c.bf16 %v8535_v50, %v8533_v39 }
  0xd4   :  { %4657 = vmatprep.subr.bf16.mxu0 %v8412_v17  ;;  %4927 = vmatprep.subr.bf16.mxu1 %v8412_v17 }
  0xd7   :  { %4659 = vmatpush1.bf16.msra.mxu0 %v8594_v19  ;;  %4929 = vmatpush1.bf16.msra.mxu1 %v8597_v25  ;;  %v8600_v19 = vpack.c.bf16 %v8541_v8, %v8481_v30  ;;  %v8601_v25 = vpack.c.bf16 %v8484_v44, %v8483_v2 }
  0xd8   :  { %4660 = vmatprep.subr.bf16.mxu0 %v8412_v17  ;;  %4930 = vmatprep.subr.bf16.mxu1 %v8412_v17 }
  0xdb   :  { %4662 = vmatpush1.bf16.msra.mxu0 %v8598_v21  ;;  %4932 = vmatpush1.bf16.msra.mxu1 %v8599_v40  ;;  %v8602_v21 = vpack.c.bf16 %v8486_v55, %v8485_v28  ;;  %v8603_v40 = vpack.c.bf16 %v8546_v59, %v8545_v45 }
  0xdc   :  { %4663 = vmatprep.subr.bf16.mxu0 %v8412_v17  ;;  %4933 = vmatprep.subr.bf16.mxu1 %v8412_v17 }
  0xdf   :  { %4665 = vmatpush1.bf16.msra.mxu0 %v8600_v19  ;;  %4935 = vmatpush1.bf16.msra.mxu1 %v8601_v25  ;;  %v8604_v19 = vld [vmem:[#allocation56_spill] sm:$0xff]  ;;  %v8607_v25 = vld [vmem:[#allocation57_spill] sm:$0xff] }
  0xe0   :  { %4666 = vmatprep.subr.bf16.mxu0 %v8412_v17  ;;  %4936 = vmatprep.subr.bf16.mxu1 %v8412_v17  ;;  %v8606_v26 = vpack.c.bf16 %v8604_v19, %v8605_v36  ;;  %v8608_v47 = vpack.c.bf16 %v8492_v7, %v8607_v25 }
  0xe3   :  { %4668 = vmatpush1.bf16.msra.mxu0 %v8602_v21  ;;  %4938 = vmatpush1.bf16.msra.mxu1 %v8603_v40  ;;  %v8609_v21 = vpack.c.bf16 %v8494_v38, %v8493_v11  ;;  %v8610_v40 = vpack.c.bf16 %v8496_v53, %v8495_v10 }
  0xe4   :  { %4669 = vmatprep.subr.bf16.mxu0 %v8412_v17  ;;  %4939 = vmatprep.subr.bf16.mxu1 %v8412_v17 }
  0xe7   :  { %4671 = vmatpush1.bf16.msra.mxu0 %v8606_v26  ;;  %4941 = vmatpush1.bf16.msra.mxu1 %v8608_v47  ;;  %v8611_v26 = vpack.c.bf16 %v8498_v23, %v8497_v14  ;;  %v8612_v47 = vpack.c.bf16 %v8500_v6, %v8499_v61 }
  0xe8   :  { %4672 = vmatprep.subr.bf16.mxu0 %v8412_v17  ;;  %4942 = vmatprep.subr.bf16.mxu1 %v8412_v17 }
  0xeb   :  { %4674 = vmatpush1.bf16.msra.mxu0 %v8609_v21  ;;  %4944 = vmatpush1.bf16.msra.mxu1 %v8610_v40  ;;  %v8613_v21 = vpack.c.bf16 %v6198_v54, %v6196_v34  ;;  %v8614_v40 = vpack.c.bf16 %v8556_v62, %v6202_v27 }
  0xec   :  { %4675 = vmatprep.subr.bf16.mxu0 %v8412_v17  ;;  %4945 = vmatprep.subr.bf16.mxu1 %v8412_v17 }
  0xef   :  { %4677 = vmatpush1.bf16.msra.mxu0 %v8611_v26  ;;  %4947 = vmatpush1.bf16.msra.mxu1 %v8612_v47  ;;  %v8615_v26 = vpack.c.bf16 %v6212_v22, %v6208_v31  ;;  %v8616_v47 = vld [vmem:[#allocation78_spill] sm:$0xff] }
  0xf0   :  { %4678 = vmatprep.subr.bf16.mxu0 %v8412_v17  ;;  %4948 = vmatprep.subr.bf16.mxu1 %v8412_v17  ;;  %v8618_v63 = vpack.c.bf16 %v8616_v47, %v8617_v57  ;;  %v8650_v47 = vld [vmem:[#allocation60_spill] sm:$0xff] }
  0xf3   :  { %4680 = vmatpush1.bf16.msra.mxu0 %v8613_v21  ;;  %4950 = vmatpush1.bf16.msra.mxu1 %v8614_v40  ;;  %v8619_v21 = vpack.c.bf16 %v6241_v48, %v6230_v13  ;;  %v8620_v40 = vld [vmem:[#allocation82_spill] sm:$0xff] }
  0xf4   :  { %4681 = vmatprep.subr.bf16.mxu0 %v8412_v17  ;;  %4951 = vmatprep.subr.bf16.mxu1 %v8412_v17  ;;  %v8621_v62 = vpack.c.bf16 %v6253_v15, %v8620_v40  ;;  %v8626_v15 = vld [vmem:[#allocation10_spill] sm:$0xff] }
  0xf7   :  { %4683 = vmatpush1.bf16.msra.mxu0 %v8615_v26  ;;  %4953 = vmatpush1.bf16.msra.mxu1 %v8618_v63  ;;  %v8622_v26 = vpack.c.bf16 %v8564_v32, %v6270_v58  ;;  %v8623_v63 = vpack.c.bf16 %v8566_v20, %v8565_v51  ;;  %v8629_v20 = vld [vmem:[#allocation13_spill] sm:$0xff]  ;;  %v8647_v58 = vld [vmem:[#allocation54_spill] sm:$0xff] }
  0xf8   :  { %4684 = vmatprep.subr.bf16.mxu0 %v8412_v17  ;;  %4954 = vmatprep.subr.bf16.mxu1 %v8412_v17  ;;  %v8630_v51 = vld [vmem:[#allocation17_spill] sm:$0xff] }
  0xfb   :  { %4686 = vmatpush1.bf16.msra.mxu0 %v8619_v21  ;;  %4956 = vmatpush1.bf16.msra.mxu1 %v8621_v62  ;;  %v8624_v21 = vld [vmem:[#allocation88_spill] sm:$0xff]  ;;  %v8625_v62 = vld [vmem:[#allocation6_spill] sm:$0xff] }
  0xfc   :  { %4687 = vmatprep.subr.bf16.mxu0 %v8412_v17  ;;  %4957 = vmatprep.subr.bf16.mxu1 %v8412_v17 }
  0xff   :  { %4689 = vmatpush1.bf16.msra.mxu0 %v8622_v26  ;;  %4959 = vmatpush1.bf16.msra.mxu1 %v8623_v63  ;;  %v8627_v26 = vld [vmem:[#allocation98_spill] sm:$0xff]  ;;  %v8628_v63 = vld [vmem:[#allocation99_spill] sm:$0xff] }
 0x100   :  { %4690 = vmatprep.subr.bf16.mxu0 %v8412_v17  ;;  %4960 = vmatprep.subr.bf16.mxu1 %v8412_v17 }
 0x102   :  { %1747 = vmatmul.mubr.f32.vlgmr.msra.gmra.mrb[6].mxu0 %v8624_v21  ;;  %2725 = vmatmul.mubr.f32.vlgmr.msra.gmra.mrb[6].mxu1 %v8624_v21  ;;  %v8631_v21 = vld [vmem:[#allocation100_spill] sm:$0xff] }
 0x103   :  { %4692 = vmatpush1.bf16.msra.mxu0 %v8625_v62  ;;  %4962 = vmatpush1.bf16.msra.mxu1 %v8626_v15  ;;  %v8632_v15 = vld [vmem:[#allocation49_spill] sm:$0xff]  ;;  %v8634_v62 = vld [vmem:[#allocation24_spill] sm:$0xff] }
 0x104   :  { %4693 = vmatprep.subr.bf16.mxu0 %v8412_v17  ;;  %4963 = vmatprep.subr.bf16.mxu1 %v8412_v17 }
 0x105   :  { %1753 = vmatprep.mubr.f32.mxu0 %v8627_v26  ;;  %2731 = vmatprep.mubr.f32.mxu1 %v8627_v26  ;;  %v8633_v26 = vld [vmem:[#allocation20_spill] sm:$0xff] }
 0x106   :  { %1756 = vmatmul.mubr.f32.gmra.mrb[8].mxu0 %v8628_v63  ;;  %2734 = vmatmul.mubr.f32.gmra.mrb[8].mxu1 %v8628_v63  ;;  %v8635_v63 = vld [vmem:[#allocation18_spill] sm:$0xff] }
 0x107   :  { %4695 = vmatpush1.bf16.msra.mxu0 %v8629_v20  ;;  %4965 = vmatpush1.bf16.msra.mxu1 %v8630_v51  ;;  %v8636_v51 = vld [vmem:[#allocation25_spill] sm:$0xff]  ;;  %v8637_v20 = vld [vmem:[#allocation27_spill] sm:$0xff] }
 0x108   :  { %4696 = vmatprep.subr.bf16.mxu0 %v8412_v17  ;;  %4966 = vmatprep.subr.bf16.mxu1 %v8412_v17 }
 0x109   :  { %1762 = vmatprep.mubr.f32.mxu0 %v8631_v21  ;;  %2740 = vmatprep.mubr.f32.mxu1 %v8631_v21  ;;  %v8639_v21 = vld [vmem:[#allocation32_spill] sm:$0xff] }
 0x10a   :  { %1765 = vmatmul.mubr.f32.gmra.mrb[10].mxu0 %v8632_v15  ;;  %2743 = vmatmul.mubr.f32.gmra.mrb[10].mxu1 %v8632_v15  ;;  %v8638_v15 = vld [vmem:[#allocation29_spill] sm:$0xff] }
 0x10b   :  { %4698 = vmatpush1.bf16.msra.mxu0 %v8633_v26  ;;  %4968 = vmatpush1.bf16.msra.mxu1 %v8634_v62  ;;  %v8640_v62 = vld [vmem:[#allocation36_spill] sm:$0xff]  ;;  %v8641_v26 = vld [vmem:[#allocation39_spill] sm:$0xff] }
 0x10c   :  { %4699 = vmatprep.subr.bf16.mxu0 %v8412_v17  ;;  %4969 = vmatprep.subr.bf16.mxu1 %v8412_v17 }
 0x10d   :  { %1867 = vmatprep.mubr.f32.mxu0 %v8635_v63  ;;  %2845 = vmatprep.mubr.f32.mxu1 %v8635_v63  ;;  %v8642_v63 = vld [vmem:[#allocation42_spill] sm:$0xff] }
 0x10f   :  { %4701 = vmatpush1.bf16.msra.mxu0 %v8636_v51  ;;  %4971 = vmatpush1.bf16.msra.mxu1 %v8637_v20  ;;  %v8643_v20 = vld [vmem:[#allocation46_spill] sm:$0xff] }
 0x110   :  { %4702 = vmatprep.subr.bf16.mxu0 %v8412_v17  ;;  %4972 = vmatprep.subr.bf16.mxu1 %v8412_v17 }
 0x113   :  { %4704 = vmatpush1.bf16.msra.mxu0 %v8638_v15  ;;  %4974 = vmatpush1.bf16.msra.mxu1 %v8639_v21  ;;  %v8644_v21 = vld [vmem:[#allocation48_spill] sm:$0xff]  ;;  %v8645_v15 = vld [vmem:[#allocation51_spill] sm:$0xff] }
 0x114   :  { %4705 = vmatprep.subr.bf16.mxu0 %v8412_v17  ;;  %4975 = vmatprep.subr.bf16.mxu1 %v8412_v17 }
 0x117   :  { %4707 = vmatpush1.bf16.msra.mxu0 %v8640_v62  ;;  %4977 = vmatpush1.bf16.msra.mxu1 %v8641_v26 }
 0x118   :  { %4708 = vmatprep.subr.bf16.mxu0 %v8412_v17  ;;  %4978 = vmatprep.subr.bf16.mxu1 %v8412_v17 }
 0x11b   :  { %4710 = vmatpush1.bf16.msra.mxu0 %v8642_v63  ;;  %4980 = vmatpush1.bf16.msra.mxu1 %v8643_v20  ;;  %v8648_v20 = vld [vmem:[#allocation58_spill] sm:$0xff] }
 0x11c   :  { %4711 = vmatprep.subr.bf16.mxu0 %v8412_v17  ;;  %4981 = vmatprep.subr.bf16.mxu1 %v8412_v17 }
 0x11f   :  { %4713 = vmatpush1.bf16.msra.mxu0 %v8644_v21  ;;  %4983 = vmatpush1.bf16.msra.mxu1 %v8645_v15 }
 0x120   :  { %4714 = vmatprep.subr.bf16.mxu0 %v8412_v17  ;;  %4984 = vmatprep.subr.bf16.mxu1 %v8412_v17 }
 0x121   :  { %v611_v26 = vpop.f32.mrb[0].mxu0  ;;  %v1186_v62 = vpop.f32.mrb[0].mxu1 }
 0x122   :  { %v6925_v51 = vmul.f32 %v1186_v62, %v611_v26  ;;  %v4374_v32 = vpop.f32.mrb[1].mxu0  ;;  %v4476_v63 = vpop.f32.mrb[1].mxu1  ;;  %v8651_v62 = vld [vmem:[#allocation64_spill] sm:$0xff] }
 0x123   :  { %4716 = vmatpush1.bf16.msra.mxu0 %v8647_v58  ;;  %4986 = vmatpush1.bf16.msra.mxu1 %v8648_v20  ;;  %v8653_v58 = vld [vmem:[#allocation67_spill] sm:$0xff] }
 0x124   :  { %8646 = vst [vmem:[#allocation68_spill] sm:$0xff] %v6925_v51  ;;  %4717 = vmatprep.subr.bf16.mxu0 %v8412_v17  ;;  %4987 = vmatprep.subr.bf16.mxu1 %v8412_v17 }
 0x125   :  { %v617_v21 = vpop.f32.mrb[2].mxu0  ;;  %v1192_v15 = vpop.f32.mrb[2].mxu1 }
 0x126   :  { %v6931_v40 = vmul.f32 %v1192_v15, %v617_v21  ;;  %v4377_v48 = vpop.f32.mrb[3].mxu0  ;;  %v4479_v13 = vpop.f32.mrb[3].mxu1  ;;  %v8654_v15 = vld [vmem:[#allocation69_spill] sm:$0xff]  ;;  %v8657_v21 = vld [vmem:[#allocation75_spill] sm:$0xff] }
 0x127   :  { %4719 = vmatpush1.bf16.msra.mxu0 %v8650_v47  ;;  %4989 = vmatpush1.bf16.msra.mxu1 %v8651_v62  ;;  %v8655_v13 = vld [vmem:[#allocation72_spill] sm:$0xff]  ;;  %v8656_v48 = vld [vmem:[#allocation73_spill] sm:$0xff] }
 0x128   :  { %8649 = vst [vmem:[#allocation70_spill] sm:$0xff] %v6931_v40  ;;  %4720 = vmatprep.subr.bf16.mxu0 %v8412_v17  ;;  %4990 = vmatprep.subr.bf16.mxu1 %v8412_v17  ;;  %v8663_v40 = vand.u32 4294901760, %v8569_v37  ;;  %v8668_v37 = vand.u32 4294901760, %v8577_v60  ;;  %v8675_v60 = vand.u32 4294901760, %v8583_v4  ;;  %v8680_v4 = vand.u32 4294901760, %v5961_v35 }
 0x129   :  { %v623_v32 = vpop.f32.mrb[4].mxu0  ;;  %v1198_v26 = vpop.f32.mrb[4].mxu1  ;;  %v8685_v35 = vand.u32 4294901760, %v8593_v42  ;;  %v8691_v42 = vand.u32 4294901760, %v8533_v39  ;;  %v8697_v39 = vand.u32 4294901760, %v8485_v28  ;;  %v8703_v28 = vand.u32 4294901760, %v8607_v25 }
 0x12a   :  { %v6937_v63 = vmul.f32 %v1198_v26, %v623_v32  ;;  %v4380_v51 = vpop.f32.mrb[5].mxu0  ;;  %v4482_v20 = vpop.f32.mrb[5].mxu1  ;;  %v8660_v32 = vld [vmem:[#allocation84_spill] sm:$0xff]  ;;  %v8661_v26 = vld [vmem:[#allocation90_spill] sm:$0xff]  ;;  %v8710_v25 = vand.u32 4294901760, %v8498_v23 }
 0x12b   :  { %4722 = vmatpush1.bf16.msra.mxu0 %v8653_v58  ;;  %4992 = vmatpush1.bf16.msra.mxu1 %v8654_v15  ;;  %v8658_v51 = vld [vmem:[#allocation76_spill] sm:$0xff]  ;;  %v8659_v20 = vld [vmem:[#allocation79_spill] sm:$0xff]  ;;  %v8716_v23 = vld [vmem:[#allocation74_spill] sm:$0xff] }
 0x12c   :  { %8652 = vst [vmem:[#allocation71_spill] sm:$0xff] %v6937_v63  ;;  %4723 = vmatprep.subr.bf16.mxu0 %v8412_v17  ;;  %4993 = vmatprep.subr.bf16.mxu1 %v8412_v17  ;;  %v8662_v63 = vld [vmem:[#allocation45_spill] sm:$0xff] }
 0x12f   :  { %4725 = vmatpush1.bf16.msra.mxu0 %v8655_v13  ;;  %4995 = vmatpush1.bf16.msra.mxu1 %v8656_v48  ;;  %v8665_v48 = vand.u32 4294901760, %v8572_v5  ;;  %v8666_v13 = vand.u32 4294901760, %v8571_v29  ;;  %v8670_v5 = vand.u32 4294901760, %v8580_v1  ;;  %v8671_v29 = vand.u32 4294901760, %v8579_v43 }
 0x130   :  { %4726 = vmatprep.subr.bf16.mxu0 %v8412_v17  ;;  %4996 = vmatprep.subr.bf16.mxu1 %v8412_v17  ;;  %v8676_v1 = vand.u32 4294901760, %v8586_v24  ;;  %v8682_v24 = vand.u32 4294901760, %v8591_v52  ;;  %v8687_v52 = vand.u32 4294901760, %v8596_v49  ;;  %v8693_v49 = vand.u32 4294901760, %v8481_v30 }
 0x131   :  { %v8699_v30 = vand.u32 4294901760, %v8545_v45  ;;  %v8705_v45 = vand.u32 4294901760, %v8493_v11  ;;  %v8711_v11 = vand.u32 4294901760, %v8499_v61  ;;  %v8718_v61 = vand.u32 4294901760, %v6208_v31 }
 0x133   :  { %4728 = vmatpush1.bf16.msra.mxu0 %v8657_v21  ;;  %4998 = vmatpush1.bf16.msra.mxu1 %v8658_v51  ;;  %v8664_v51 = vand.u32 4294901760, %v8568_v41  ;;  %v8669_v41 = vand.u32 4294901760, %v8576_v9  ;;  %v8674_v9 = vand.u32 4294901760, %v8584_v46  ;;  %v8681_v46 = vand.u32 4294901760, %v5963_v16 }
 0x134   :  { %4729 = vmatprep.subr.bf16.mxu0 %v8412_v17  ;;  %4999 = vmatprep.subr.bf16.mxu1 %v8412_v17  ;;  %v8686_v16 = vand.u32 4294901760, %v8519_v56  ;;  %v8692_v56 = vand.u32 4294901760, %v8535_v50  ;;  %v8698_v50 = vand.u32 4294901760, %v8486_v55  ;;  %v8704_v55 = vand.u32 4294901760, %v8492_v7 }
 0x135   :  { %v4736_v21 = vpack.c.bf16 %v8664_v51, %v8663_v40  ;;  %v4739_v40 = vpack.c.bf16 %v8669_v41, %v8668_v37  ;;  %v4742_v43 = vpack.c.bf16 %v8675_v60, %v8674_v9  ;;  %v8677_v51 = vand.u32 4294901760, %v5945_v18  ;;  %v8678_v37 = vld [vmem:[#allocation59_spill] sm:$0xff]  ;;  %v8679_v41 = vld [vmem:[#allocation61_spill] sm:$0xff] }
 0x136   :  { %v4745_v18 = vpack.c.bf16 %v8681_v46, %v8680_v4  ;;  %v8689_v60 = vand.u32 4294901760, %v8529_v3  ;;  %v8695_v3 = vand.u32 4294901760, %v8483_v2  ;;  %v4757_v46 = vpack.c.bf16 %v8698_v50, %v8697_v39  ;;  %v7122_v50 = vld [vmem:[%s8055_s6 + $0x20] sm:$0xff] }
 0x137   :  { %4731 = vmatpush1.bf16.msra.mxu0 %v8659_v20  ;;  %5001 = vmatpush1.bf16.msra.mxu1 %v8660_v32  ;;  %v5006_v20 = vpack.c.bf16 %v8666_v13, %v8665_v48  ;;  %v8667_v32 = vld [vmem:[#allocation94_spill] sm:$0xff]  ;;  %v5009_v13 = vpack.c.bf16 %v8671_v29, %v8670_v5  ;;  %v8672_v48 = vld [vmem:[#allocation43_spill] sm:$0xff]  ;;  %v8684_v29 = vld [vmem:[#allocation5_spill] sm:$0xff]  ;;  %v8701_v2 = vand.u32 4294901760, %v8605_v36  ;;  %v8707_v36 = vand.u32 4294901760, %v8495_v10 }
 0x138   :  { %4732 = vmatprep.subr.bf16.mxu0 %v8412_v17  ;;  %5002 = vmatprep.subr.bf16.mxu1 %v8412_v17  ;;  %v8709_v7 = vand.u32 4294901760, %v8497_v14  ;;  %v8714_v10 = vand.u32 4294901760, %v6198_v54  ;;  %v8715_v14 = vand.u32 4294901760, %v6202_v27  ;;  %v8721_v54 = vld [vmem:[#allocation78_spill] sm:$0xff] }
 0x139   :  { %v7100_v27 = vld [vmem:[%s8055_s6 + $0x10] sm:$0xff] }
 0x13a   :  { %v8303_v31 = vand.u32 4294901760, %v7100_v27 }
 0x13b   :  { %4734 = vmatpush1.bf16.msra.mxu0 %v8661_v26  ;;  %5004 = vmatpush1.bf16.msra.mxu1 %v8662_v63 }
 0x13c   :  { %4735 = vmatprep.subr.bf16.mxu0 %v8412_v17  ;;  %5005 = vmatprep.subr.bf16.mxu1 %v8412_v17 }
 0x13e   :  { %1871 = vmatmul.mubr.f32.vlgmr.msra.gmra.mrb[6].mxu0 %v8667_v32  ;;  %2849 = vmatmul.mubr.f32.vlgmr.msra.gmra.mrb[6].mxu1 %v8667_v32 }
 0x13f   :  { %4737 = vmatpush1.bf16.msra.mxu0 %v4736_v21  ;;  %5007 = vmatpush1.bf16.msra.mxu1 %v5006_v20  ;;  %v8673_v21 = vld [vmem:[#allocation47_spill] sm:$0xff]  ;;  %v5012_v20 = vpack.c.bf16 %v8677_v51, %v8676_v1  ;;  %v5021_v51 = vpack.c.bf16 %v8692_v56, %v8691_v42 }
 0x140   :  { %4738 = vmatprep.subr.bf16.mxu0 %v8412_v17  ;;  %5008 = vmatprep.subr.bf16.mxu1 %v8412_v17  ;;  %v7105_v42 = vld [vmem:[%s8055_s6 + $0x18] sm:$0xff] }
 0x141   :  { %1878 = vmatprep.mubr.f32.mxu0 %v8672_v48  ;;  %2856 = vmatprep.mubr.f32.mxu1 %v8672_v48 }
 0x142   :  { %1882 = vmatmul.mubr.f32.gmra.mrb[8].mxu0 %v8673_v21  ;;  %2860 = vmatmul.mubr.f32.gmra.mrb[8].mxu1 %v8673_v21  ;;  %v8766_v21 = vld [vmem:[#allocation51_spill] sm:$0xff] }
 0x143   :  { %4740 = vmatpush1.bf16.msra.mxu0 %v4739_v40  ;;  %5010 = vmatpush1.bf16.msra.mxu1 %v5009_v13  ;;  %v8683_v40 = vand.u32 4294901760, %v8590_v12  ;;  %v4748_v13 = vpack.c.bf16 %v8686_v16, %v8685_v35  ;;  %v8688_v12 = vand.u32 4294901760, %v8595_v0  ;;  %v8694_v0 = vand.u32 4294901760, %v8541_v8 }
 0x144   :  { %4741 = vmatprep.subr.bf16.mxu0 %v8412_v17  ;;  %5011 = vmatprep.subr.bf16.mxu1 %v8412_v17  ;;  %v8700_v8 = vand.u32 4294901760, %v8546_v59  ;;  %v8706_v59 = vand.u32 4294901760, %v8494_v38  ;;  %v4766_v16 = vpack.c.bf16 %v8710_v25, %v8709_v7  ;;  %v8712_v38 = vand.u32 4294901760, %v8500_v6  ;;  %v7159_v7 = vld [vmem:[%s8055_s6 + $0x38] sm:$0xff] }
 0x145   :  { %1889 = vmatprep.mubr.f32.mxu0 %v8678_v37  ;;  %2867 = vmatprep.mubr.f32.mxu1 %v8678_v37  ;;  %v5015_v5 = vpack.c.bf16 %v8683_v40, %v8682_v24  ;;  %v5018_v9 = vpack.c.bf16 %v8688_v12, %v8687_v52  ;;  %v5030_v40 = vpack.c.bf16 %v8704_v55, %v8703_v28  ;;  %v8717_v12 = vand.u32 4294901760, %v8716_v23  ;;  %v8733_v28 = vld [vmem:[#allocation91_spill] sm:$0xff]  ;;  %v8765_v37 = vld [vmem:[#allocation48_spill] sm:$0xff] }
 0x146   :  { %1893 = vmatmul.mubr.f32.gmra.mrb[10].mxu0 %v8679_v41  ;;  %2871 = vmatmul.mubr.f32.gmra.mrb[10].mxu1 %v8679_v41  ;;  %v8719_v6 = vand.u32 4294901760, %v6212_v22  ;;  %v8300_v22 = vand.u32 4294901760, %v7105_v42  ;;  %v8734_v55 = vand.u32 4294901760, %v8733_v28 }
 0x147   :  { %4743 = vmatpush1.bf16.msra.mxu0 %v4742_v43  ;;  %5013 = vmatpush1.bf16.msra.mxu1 %v5012_v20  ;;  %v8690_v43 = vand.u32 4294901760, %v8530_v33  ;;  %v4754_v20 = vpack.c.bf16 %v8694_v0, %v8693_v49  ;;  %v8696_v33 = vand.u32 4294901760, %v8484_v44  ;;  %v8702_v44 = vand.u32 4294901760, %v8604_v19 }
 0x148   :  { %4744 = vmatprep.subr.bf16.mxu0 %v8412_v17  ;;  %5014 = vmatprep.subr.bf16.mxu1 %v8412_v17  ;;  %v8708_v19 = vand.u32 4294901760, %v8496_v53  ;;  %v8713_v53 = vand.u32 4294901760, %v6196_v34  ;;  %v8720_v34 = vand.u32 4294901760, %v8617_v57  ;;  %v8723_v57 = vld [vmem:[#allocation80_spill] sm:$0xff] }
 0x149   :  { %2053 = vmatprep.mubr.f32.mxu0 %v8684_v29  ;;  %3031 = vmatprep.mubr.f32.mxu1 %v8684_v29  ;;  %v4751_v1 = vpack.c.bf16 %v8690_v43, %v8689_v60  ;;  %v5024_v4 = vpack.c.bf16 %v8696_v33, %v8695_v3  ;;  %v4760_v24 = vpack.c.bf16 %v8702_v44, %v8701_v2  ;;  %v8722_v43 = vand.u32 4294901760, %v8721_v54  ;;  %v8729_v33 = vld [vmem:[#allocation85_spill] sm:$0xff]  ;;  %v8731_v44 = vld [vmem:[#allocation86_spill] sm:$0xff]  ;;  %v7215_v54 = vld [vmem:[%s8055_s6 + $0x58] sm:$0xff] }
 0x14a   :  { %v5033_v35 = vpack.c.bf16 %v8708_v19, %v8707_v36  ;;  %v4769_v52 = vpack.c.bf16 %v8714_v10, %v8713_v53  ;;  %v4772_v60 = vpack.c.bf16 %v8719_v6, %v8718_v61  ;;  %v8724_v56 = vand.u32 4294901760, %v8723_v57  ;;  %v7180_v53 = vld [vmem:[%s8055_s6 + $0x40] sm:$0xff]  ;;  %v7185_v10 = vld [vmem:[%s8055_s6 + $0x48] sm:$0xff]  ;;  %v8740_v6 = vld [vmem:[#allocation6_spill] sm:$0xff] }
 0x14b   :  { %4746 = vmatpush1.bf16.msra.mxu0 %v4745_v18  ;;  %5016 = vmatpush1.bf16.msra.mxu1 %v5015_v5  ;;  %v5027_v18 = vpack.c.bf16 %v8700_v8, %v8699_v30  ;;  %v4763_v5 = vpack.c.bf16 %v8706_v59, %v8705_v45  ;;  %v7134_v30 = vsub.f32 %v7100_v27, %v8303_v31  ;;  %v8735_v45 = vld [vmem:[#allocation92_spill] sm:$0xff]  ;;  %v8292_v61 = vand.u32 4294901760, %v7185_v10 }
 0x14c   :  { %4747 = vmatprep.subr.bf16.mxu0 %v8412_v17  ;;  %5017 = vmatprep.subr.bf16.mxu1 %v8412_v17  ;;  %v7139_v8 = vsub.f32 %v7105_v42, %v8300_v22  ;;  %v8736_v59 = vand.u32 4294901760, %v8735_v45  ;;  %v8743_v57 = vld [vmem:[#allocation96_spill] sm:$0xff]  ;;  %v8762_v22 = vld [vmem:[#allocation46_spill] sm:$0xff] }
 0x14f   :  { %4749 = vmatpush1.bf16.msra.mxu0 %v4748_v13  ;;  %5019 = vmatpush1.bf16.msra.mxu1 %v5018_v9  ;;  %v5036_v13 = vpack.c.bf16 %v8712_v38, %v8711_v11  ;;  %v5039_v9 = vpack.c.bf16 %v8717_v12, %v8715_v14  ;;  %v8739_v14 = vld [vmem:[#allocation83_spill] sm:$0xff] }
 0x150   :  { %4750 = vmatprep.subr.bf16.mxu0 %v8412_v17  ;;  %5020 = vmatprep.subr.bf16.mxu1 %v8412_v17 }
 0x153   :  { %4752 = vmatpush1.bf16.msra.mxu0 %v4751_v1  ;;  %5022 = vmatpush1.bf16.msra.mxu1 %v5021_v51  ;;  %v5042_v1 = vpack.c.bf16 %v8722_v43, %v8720_v34  ;;  %v8725_v51 = vld [vmem:[#allocation81_spill] sm:$0xff]  ;;  %v7210_v34 = vld [vmem:[%s8055_s6 + $0x50] sm:$0xff] }
 0x154   :  { %4753 = vmatprep.subr.bf16.mxu0 %v8412_v17  ;;  %5023 = vmatprep.subr.bf16.mxu1 %v8412_v17  ;;  %v8726_v49 = vand.u32 4294901760, %v8725_v51  ;;  %v7233_v51 = vsub.f32 %v7185_v10, %v8292_v61  ;;  %v7309_v43 = vld [vmem:[%s8055_s6 + $0x88] sm:$0xff] }
 0x155   :  { %8752 = vst [vmem:[#allocation87_spill] sm:$0xff] %v7309_v43 }
 0x156   :  { %v4775_v0 = vpack.c.bf16 %v8726_v49, %v8724_v56  ;;  %v8291_v49 = vand.u32 4294901760, %v7210_v34 }
 0x157   :  { %4755 = vmatpush1.bf16.msra.mxu0 %v4754_v20  ;;  %5025 = vmatpush1.bf16.msra.mxu1 %v5024_v4  ;;  %v8727_v20 = vld [vmem:[#allocation82_spill] sm:$0xff]  ;;  %v8730_v4 = vand.u32 4294901760, %v8729_v33  ;;  %v7242_v33 = vld [vmem:[%s8055_s6 + $0x60] sm:$0xff] }
 0x158   :  { %4756 = vmatprep.subr.bf16.mxu0 %v8412_v17  ;;  %5026 = vmatprep.subr.bf16.mxu1 %v8412_v17  ;;  %v8728_v3 = vand.u32 4294901760, %v8727_v20  ;;  %v8744_v20 = vld [vmem:[#allocation13_spill] sm:$0xff]  ;;  %v7260_v28 = vsub.f32 %v7210_v34, %v8291_v49 }
 0x15a   :  { %v5045_v39 = vpack.c.bf16 %v8730_v4, %v8728_v3  ;;  %v8745_v3 = vld [vmem:[#allocation17_spill] sm:$0xff] }
 0x15b   :  { %4758 = vmatpush1.bf16.msra.mxu0 %v4757_v46  ;;  %5028 = vmatpush1.bf16.msra.mxu1 %v5027_v18  ;;  %v7127_v46 = vld [vmem:[%s8055_s6 + $0x28] sm:$0xff]  ;;  %v8299_v18 = vand.u32 4294901760, %v7122_v50 }
 0x15c   :  { %4759 = vmatprep.subr.bf16.mxu0 %v8412_v17  ;;  %5029 = vmatprep.subr.bf16.mxu1 %v8412_v17  ;;  %v8298_v2 = vand.u32 4294901760, %v7127_v46  ;;  %v7247_v4 = vld [vmem:[%s8055_s6 + $0x68] sm:$0xff] }
 0x15d   :  { %v8286_v45 = vand.u32 4294901760, %v7247_v4 }
 0x15e   :  { %v7173_v11 = vsub.f32 %v7127_v46, %v8298_v2 }
 0x15f   :  { %4761 = vmatpush1.bf16.msra.mxu0 %v4760_v24  ;;  %5031 = vmatpush1.bf16.msra.mxu1 %v5030_v40  ;;  %v8732_v24 = vand.u32 4294901760, %v8731_v44  ;;  %v8746_v44 = vld [vmem:[#allocation97_spill] sm:$0xff] }
 0x160   :  { %4762 = vmatprep.subr.bf16.mxu0 %v8412_v17  ;;  %5032 = vmatprep.subr.bf16.mxu1 %v8412_v17 }
 0x161   :  { %v4778_v40 = vpack.c.bf16 %v8734_v55, %v8732_v24  ;;  %v8747_v24 = vld [vmem:[#allocation101_spill] sm:$0xff] }
 0x163   :  { %4764 = vmatpush1.bf16.msra.mxu0 %v4763_v5  ;;  %5034 = vmatpush1.bf16.msra.mxu1 %v5033_v35  ;;  %v8737_v5 = vld [vmem:[#allocation93_spill] sm:$0xff]  ;;  %v7154_v35 = vld [vmem:[%s8055_s6 + $0x30] sm:$0xff] }
 0x164   :  { %4765 = vmatprep.subr.bf16.mxu0 %v8412_v17  ;;  %5035 = vmatprep.subr.bf16.mxu1 %v8412_v17  ;;  %v8738_v36 = vand.u32 4294901760, %v8737_v5  ;;  %v8297_v38 = vand.u32 4294901760, %v7154_v35  ;;  %v8749_v5 = vld [vmem:[#allocation24_spill] sm:$0xff] }
 0x166   :  { %v5048_v19 = vpack.c.bf16 %v8738_v36, %v8736_v59  ;;  %v7196_v23 = vsub.f32 %v7154_v35, %v8297_v38  ;;  %v8748_v59 = vld [vmem:[#allocation20_spill] sm:$0xff]  ;;  %v7274_v36 = vld [vmem:[%s8055_s6 + $0x70] sm:$0xff] }
 0x167   :  { %4767 = vmatpush1.bf16.msra.mxu0 %v4766_v16  ;;  %5037 = vmatpush1.bf16.msra.mxu1 %v5036_v13  ;;  %v7168_v16 = vsub.f32 %v7122_v50, %v8299_v18  ;;  %v8294_v13 = vand.u32 4294901760, %v7159_v7  ;;  %v8761_v18 = vld [vmem:[#allocation42_spill] sm:$0xff] }
 0x168   :  { %4768 = vmatprep.subr.bf16.mxu0 %v8412_v17  ;;  %5038 = vmatprep.subr.bf16.mxu1 %v8412_v17 }
 0x169   :  { %v7201_v12 = vsub.f32 %v7159_v7, %v8294_v13  ;;  %v8758_v13 = vld [vmem:[#allocation39_spill] sm:$0xff] }
 0x16b   :  { %4770 = vmatpush1.bf16.msra.mxu0 %v4769_v52  ;;  %5040 = vmatpush1.bf16.msra.mxu1 %v5039_v9  ;;  %v8293_v9 = vand.u32 4294901760, %v7180_v53  ;;  %v7332_v52 = vld [vmem:[%s8055_s6 + $0x90] sm:$0xff] }
 0x16c   :  { %4771 = vmatprep.subr.bf16.mxu0 %v8412_v17  ;;  %5041 = vmatprep.subr.bf16.mxu1 %v8412_v17  ;;  %8755 = vst [vmem:[#allocation89_spill] sm:$0xff] %v7332_v52  ;;  %v8301_v49 = vand.u32 4294901760, %v7332_v52 }
 0x16d   :  { %v7228_v56 = vsub.f32 %v7180_v53, %v8293_v9  ;;  %v8757_v9 = vld [vmem:[#allocation36_spill] sm:$0xff] }
 0x16f   :  { %4773 = vmatpush1.bf16.msra.mxu0 %v4772_v60  ;;  %5043 = vmatpush1.bf16.msra.mxu1 %v5042_v1  ;;  %v8741_v60 = vld [vmem:[#allocation10_spill] sm:$0xff]  ;;  %v8742_v1 = vld [vmem:[#allocation95_spill] sm:$0xff] }
 0x170   :  { %4774 = vmatprep.subr.bf16.mxu0 %v8412_v17  ;;  %5044 = vmatprep.subr.bf16.mxu1 %v8412_v17 }
 0x173   :  { %4776 = vmatpush1.bf16.msra.mxu0 %v4775_v0  ;;  %5046 = vmatpush1.bf16.msra.mxu1 %v5045_v39  ;;  %v8288_v0 = vand.u32 4294901760, %v7215_v54  ;;  %v7304_v39 = vld [vmem:[%s8055_s6 + $0x80] sm:$0xff] }
 0x174   :  { %4777 = vmatprep.subr.bf16.mxu0 %v8412_v17  ;;  %5047 = vmatprep.subr.bf16.mxu1 %v8412_v17  ;;  %v8295_v25 = vand.u32 4294901760, %v7304_v39 }
 0x175   :  { %v7265_v55 = vsub.f32 %v7215_v54, %v8288_v0  ;;  %v8754_v0 = vld [vmem:[#allocation32_spill] sm:$0xff] }
 0x177   :  { %4779 = vmatpush1.bf16.msra.mxu0 %v4778_v40  ;;  %5049 = vmatpush1.bf16.msra.mxu1 %v5048_v19  ;;  %v8287_v40 = vand.u32 4294901760, %v7242_v33  ;;  %v7279_v19 = vld [vmem:[%s8055_s6 + $0x78] sm:$0xff] }
 0x178   :  { %4780 = vmatprep.subr.bf16.mxu0 %v8412_v17  ;;  %5050 = vmatprep.subr.bf16.mxu1 %v8412_v17 }
 0x17a   :  { %2055 = vmatmul.mubr.f32.vlgmr.msra.gmra.mrb[6].mxu0 %v8739_v14  ;;  %3033 = vmatmul.mubr.f32.vlgmr.msra.gmra.mrb[6].mxu1 %v8739_v14 }
 0x17b   :  { %4782 = vmatpush1.bf16.msra.mxu0 %v8740_v6  ;;  %5052 = vmatpush1.bf16.msra.mxu1 %v8741_v60  ;;  %v7290_v60 = vsub.f32 %v7242_v33, %v8287_v40  ;;  %v8751_v6 = vld [vmem:[#allocation27_spill] sm:$0xff]  ;;  %v8753_v40 = vld [vmem:[#allocation29_spill] sm:$0xff] }
 0x17c   :  { %4783 = vmatprep.subr.bf16.mxu0 %v8412_v17  ;;  %5053 = vmatprep.subr.bf16.mxu1 %v8412_v17 }
 0x17d   :  { %2060 = vmatprep.mubr.f32.mxu0 %v8742_v1  ;;  %3038 = vmatprep.mubr.f32.mxu1 %v8742_v1 }
 0x17e   :  { %2062 = vmatmul.mubr.f32.gmra.mrb[8].mxu0 %v8743_v57  ;;  %3040 = vmatmul.mubr.f32.gmra.mrb[8].mxu1 %v8743_v57 }
 0x17f   :  { %4785 = vmatpush1.bf16.msra.mxu0 %v8744_v20  ;;  %5055 = vmatpush1.bf16.msra.mxu1 %v8745_v3  ;;  %v7295_v20 = vsub.f32 %v7247_v4, %v8286_v45  ;;  %v8289_v3 = vand.u32 4294901760, %v7274_v36  ;;  %v8296_v45 = vand.u32 4294901760, %v7309_v43 }
 0x180   :  { %4786 = vmatprep.subr.bf16.mxu0 %v8412_v17  ;;  %5056 = vmatprep.subr.bf16.mxu1 %v8412_v17 }
 0x181   :  { %2067 = vmatprep.mubr.f32.mxu0 %v8746_v44  ;;  %3045 = vmatprep.mubr.f32.mxu1 %v8746_v44 }
 0x182   :  { %2069 = vmatmul.mubr.f32.gmra.mrb[10].mxu0 %v8747_v24  ;;  %3047 = vmatmul.mubr.f32.gmra.mrb[10].mxu1 %v8747_v24 }
 0x183   :  { %4788 = vmatpush1.bf16.msra.mxu0 %v8748_v59  ;;  %5058 = vmatpush1.bf16.msra.mxu1 %v8749_v5  ;;  %v8290_v59 = vand.u32 4294901760, %v7279_v19  ;;  %v8750_v5 = vld [vmem:[#allocation25_spill] sm:$0xff] }
 0x184   :  { %4789 = vmatprep.subr.bf16.mxu0 %v8412_v17  ;;  %5059 = vmatprep.subr.bf16.mxu1 %v8412_v17 }
 0x185   :  { %2169 = vmatprep.mubr.f32.mxu0 %v8684_v29  ;;  %3147 = vmatprep.mubr.f32.mxu1 %v8684_v29 }
 0x187   :  { %4791 = vmatpush1.bf16.msra.mxu0 %v8750_v5  ;;  %5061 = vmatpush1.bf16.msra.mxu1 %v8751_v6  ;;  %v7318_v6 = vsub.f32 %v7274_v36, %v8289_v3  ;;  %v7323_v5 = vsub.f32 %v7279_v19, %v8290_v59  ;;  %v7337_v3 = vld [vmem:[%s8055_s6 + $0x98] sm:$0xff]  ;;  %v7360_v59 = vld [vmem:[%s8055_s6 + $0xa0] sm:$0xff] }
 0x188   :  { %4792 = vmatprep.subr.bf16.mxu0 %v8412_v17  ;;  %5062 = vmatprep.subr.bf16.mxu1 %v8412_v17  ;;  %8756 = vst [vmem:[#allocation31_spill] sm:$0xff] %v7337_v3  ;;  %v8302_v61 = vand.u32 4294901760, %v7337_v3  ;;  %8759 = vst [vmem:[#allocation37_spill] sm:$0xff] %v7360_v59  ;;  %v8307_v38 = vand.u32 4294901760, %v7360_v59 }
 0x18b   :  { %4794 = vmatpush1.bf16.msra.mxu0 %v8753_v40  ;;  %5064 = vmatpush1.bf16.msra.mxu1 %v8754_v0  ;;  %v7346_v0 = vsub.f32 %v7304_v39, %v8295_v25  ;;  %v7351_v40 = vsub.f32 %v7309_v43, %v8296_v45  ;;  %v7365_v25 = vld [vmem:[%s8055_s6 + $0xa8] sm:$0xff]  ;;  %v7388_v45 = vld [vmem:[%s8055_s6 + $0xb0] sm:$0xff] }
 0x18c   :  { %4795 = vmatprep.subr.bf16.mxu0 %v8412_v17  ;;  %5065 = vmatprep.subr.bf16.mxu1 %v8412_v17  ;;  %8760 = vst [vmem:[#allocation38_spill] sm:$0xff] %v7365_v25  ;;  %v8308_v2 = vand.u32 4294901760, %v7365_v25  ;;  %8763 = vst [vmem:[#allocation40_spill] sm:$0xff] %v7388_v45  ;;  %v8313_v31 = vand.u32 4294901760, %v7388_v45 }
 0x18f   :  { %4797 = vmatpush1.bf16.msra.mxu0 %v8757_v9  ;;  %5067 = vmatpush1.bf16.msra.mxu1 %v8758_v13  ;;  %v7374_v13 = vsub.f32 %v7332_v52, %v8301_v49  ;;  %v7379_v9 = vsub.f32 %v7337_v3, %v8302_v61  ;;  %v7393_v49 = vld [vmem:[%s8055_s6 + $0xb8] sm:$0xff]  ;;  %v7416_v61 = vld [vmem:[%s8055_s6 + $0xc0] sm:$0xff] }
 0x190   :  { %4798 = vmatprep.subr.bf16.mxu0 %v8412_v17  ;;  %5068 = vmatprep.subr.bf16.mxu1 %v8412_v17  ;;  %8764 = vst [vmem:[#allocation41_spill] sm:$0xff] %v7393_v49  ;;  %v8314_v41 = vand.u32 4294901760, %v7393_v49  ;;  %8767 = vst [vmem:[#allocation44_spill] sm:$0xff] %v7416_v61  ;;  %v8320_v48 = vand.u32 4294901760, %v7416_v61 }
 0x192   :  { %v7464_v32 = vsub.f32 %v7416_v61, %v8320_v48  ;;  %v7478_v48 = vld [vmem:[%s8055_s6 + $0xe0] sm:$0xff] }
 0x193   :  { %4800 = vmatpush1.bf16.msra.mxu0 %v8761_v18  ;;  %5070 = vmatpush1.bf16.msra.mxu1 %v8762_v22  ;;  %v7402_v22 = vsub.f32 %v7360_v59, %v8307_v38  ;;  %v7407_v18 = vsub.f32 %v7365_v25, %v8308_v2  ;;  %v7421_v38 = vld [vmem:[%s8055_s6 + $0xc8] sm:$0xff]  ;;  %v8771_v25 = vld [vmem:[#allocation54_spill] sm:$0xff]  ;;  %8776 = vst [vmem:[#allocation11_spill] sm:$0xff] %v7478_v48  ;;  %v8330_v61 = vand.u32 4294901760, %v7478_v48 }
 0x194   :  { %4801 = vmatprep.subr.bf16.mxu0 %v8412_v17  ;;  %5071 = vmatprep.subr.bf16.mxu1 %v8412_v17  ;;  %8768 = vst [vmem:[#allocation52_spill] sm:$0xff] %v7421_v38  ;;  %v8772_v59 = vld [vmem:[#allocation58_spill] sm:$0xff] }
 0x195   :  { %v7444_v2 = vld [vmem:[%s8055_s6 + $0xd0] sm:$0xff] }
 0x196   :  { %8773 = vst [vmem:[#allocation7_spill] sm:$0xff] %v7444_v2  ;;  %v8328_v3 = vand.u32 4294901760, %v7444_v2 }
 0x197   :  { %4803 = vmatpush1.bf16.msra.mxu0 %v8765_v37  ;;  %5073 = vmatpush1.bf16.msra.mxu1 %v8766_v21  ;;  %v7430_v21 = vsub.f32 %v7388_v45, %v8313_v31  ;;  %v7435_v37 = vsub.f32 %v7393_v49, %v8314_v41  ;;  %v7449_v31 = vld [vmem:[%s8055_s6 + $0xd8] sm:$0xff]  ;;  %v8775_v49 = vand.u32 4294901760, %v7421_v38 }
 0x198   :  { %4804 = vmatprep.subr.bf16.mxu0 %v8412_v17  ;;  %5074 = vmatprep.subr.bf16.mxu1 %v8412_v17  ;;  %8774 = vst [vmem:[#allocation12_spill] sm:$0xff] %v7449_v31  ;;  %v8327_v52 = vand.u32 4294901760, %v7449_v31 }
 0x199   :  { %8769 = vst [vmem:[#allocation53_spill] sm:$0xff] %v7430_v21  ;;  %8770 = vst [vmem:[#allocation8_spill] sm:$0xff] %v7435_v37  ;;  %v7469_v45 = vsub.f32 %v7421_v38, %v8775_v49  ;;  %v7483_v49 = vld [vmem:[%s8055_s6 + $0xe8] sm:$0xff] }
 0x19a   :  { %8777 = vst [vmem:[#allocation15_spill] sm:$0xff] %v7483_v49  ;;  %v7497_v38 = vsub.f32 %v7449_v31, %v8327_v52  ;;  %v8332_v37 = vand.u32 4294901760, %v7483_v49  ;;  %v8341_v52 = vand.u32 4294901760, %v7139_v8 }
 0x19b   :  { %4806 = vmatpush1.bf16.msra.mxu0 %v8771_v25  ;;  %5076 = vmatpush1.bf16.msra.mxu1 %v8772_v59  ;;  %v3168_v25 = vld [vmem:[%s8055_s6] sm:$0xff]  ;;  %v3169_v59 = vld [vmem:[%s8055_s6 + $0x8] sm:$0xff]  ;;  %s5518_s6 = smov [#allocation2]  }
 0x19c   :  { %4807 = vmatprep.subr.bf16.mxu0 %v8412_v17  ;;  %5077 = vmatprep.subr.bf16.mxu1 %v8412_v17  ;;  %v3199_v43 = vand.u32 4294901760, %v3168_v25  ;;  %v3202_v41 = vand.u32 4294901760, %v3169_v59  ;;  %s4187_s21 = sshll.u32 %s5518_s6, 4  ;;  %s4188_s21 = int_to_ptr.vmem [resolvable:$true] %s4187_s21 }
 0x19d   :  { %s5491_s23 = scalar_lea.vmem %s4188_s21, 128  ;;  %p5496_p1 = scmp.lt.s32.totalorder %s4188_s21, %s4188_s21 }
 0x19e   :  { %v7503_v21 = vsub.f32 %v3168_v25, %v3199_v43  ;;  %v8782_v25 = vld [vmem:[#allocation73_spill] sm:$0xff]  ;;  %p5492_p0 = scmp.ne.s32.totalorder %s4188_s21, %s5491_s23  ;;  %p5497_p2 = scmp.lt.s32.totalorder %s5491_s23, %s5491_s23 }
 0x19f   :  { %4809 = vmatpush1.bf16.msra.mxu0 %v8650_v47  ;;  %5079 = vmatpush1.bf16.msra.mxu1 %v8651_v62  ;;  %v7492_v62 = vsub.f32 %v7444_v2, %v8328_v3  ;;  %v7505_v47 = vsub.f32 %v3169_v59, %v3202_v41  ;;  %v7514_v3 = vsub.f32 %v7478_v48, %v8330_v61  ;;  %v8783_v61 = vld [vmem:[#allocation75_spill] sm:$0xff]  ;;  %v8784_v48 = vld [vmem:[#allocation76_spill] sm:$0xff] }
 0x1a0   :  { %4810 = vmatprep.subr.bf16.mxu0 %v8412_v17  ;;  %5080 = vmatprep.subr.bf16.mxu1 %v8412_v17  ;;  %8778 = vst [vmem:[#allocation14_spill] sm:$0xff] %v7503_v21  ;;  %v8336_v59 = vand.u32 4294901760, %v7503_v21  ;;  %p5498_p3 = por %p5497_p2, %p5496_p1 }
 0x1a1   :  { %8779 = vst [vmem:[#allocation19_spill] sm:$0xff] %v7505_v47  ;;  %8780 = vst [vmem:[#allocation16_spill] sm:$0xff] %v7514_v3  ;;  %v8335_v31 = vand.u32 4294901760, %v7505_v47 }
 0x1a2   :  { %p5499_p4 = pnand %p5498_p3, %p5492_p0 }
 0x1a3   :  { %4812 = vmatpush1.bf16.msra.mxu0 %v8653_v58  ;;  %5082 = vmatpush1.bf16.msra.mxu1 %v8654_v15  ;;  %v7519_v58 = vsub.f32 %v7483_v49, %v8332_v37  ;;  %v8781_v15 = vld [vmem:[#allocation72_spill] sm:$0xff]  ;;  %v8342_v37 = vand.u32 4294901760, %v7134_v30  ;;  %v8785_v49 = vld [vmem:[#allocation79_spill] sm:$0xff] }
 0x1a4   :  { %4813 = vmatprep.subr.bf16.mxu0 %v8412_v17  ;;  %5083 = vmatprep.subr.bf16.mxu1 %v8412_v17 }
 0x1a7   :  { %4815 = vmatpush1.bf16.msra.mxu0 %v8781_v15  ;;  %5085 = vmatpush1.bf16.msra.mxu1 %v8782_v25  ;;  %v3342_v15 = vsub.f32 %v7503_v21, %v8336_v59  ;;  %v3349_v25 = vsub.f32 %v7505_v47, %v8335_v31  ;;  %v3356_v31 = vsub.f32 %v7134_v30, %v8342_v37  ;;  %v8361_v47 = vand.u32 4294901760, %v7168_v16 }
 0x1a8   :  { %4816 = vmatprep.subr.bf16.mxu0 %v8412_v17  ;;  %5086 = vmatprep.subr.bf16.mxu1 %v8412_v17  ;;  %v3363_v59 = vsub.f32 %v7139_v8, %v8341_v52  ;;  %v8343_v21 = vand.u32 4294901760, %v7201_v12 }
 0x1a9   :  { %v3350_v2 = vand.u32 4294901760, %v3349_v25  ;;  %v3357_v52 = vand.u32 4294901760, %v3356_v31 }
 0x1aa   :  { %v3364_v37 = vand.u32 4294901760, %v3363_v59  ;;  %v3391_v59 = vsub.f32 %v7201_v12, %v8343_v21  ;;  %v8791_v21 = vand.u32 4294901760, %v7127_v46  ;;  %v8347_v46 = vand.u32 4294901760, %v7260_v28 }
 0x1ab   :  { %4818 = vmatpush1.bf16.msra.mxu0 %v8783_v61  ;;  %5088 = vmatpush1.bf16.msra.mxu1 %v8784_v48  ;;  %v8786_v61 = vld [vmem:[#allocation84_spill] sm:$0xff]  ;;  %v3343_v48 = vand.u32 4294901760, %v3342_v15  ;;  %v7555_v15 = vpack.c.bf16 %v3202_v41, %v3199_v43  ;;  %v8788_v41 = vand.u32 4294901760, %v7100_v27  ;;  %v8345_v27 = vand.u32 4294901760, %v7233_v51 }
 0x1ac   :  { %4819 = vmatprep.subr.bf16.mxu0 %v8412_v17  ;;  %5089 = vmatprep.subr.bf16.mxu1 %v8412_v17 }
 0x1ad   :  { %v5141_v25 = vpack.c.bf16 %v3350_v2, %v3343_v48  ;;  %v8789_v2 = vand.u32 4294901760, %v7105_v42  ;;  %v8359_v48 = vand.u32 4294901760, %v7228_v56  ;;  %v5144_v42 = vpack.c.bf16 %v3364_v37, %v3357_v52 }
 0x1ae   :  { %v3392_v37 = vand.u32 4294901760, %v3391_v59 }
 0x1af   :  { %4821 = vmatpush1.bf16.msra.mxu0 %v8785_v49  ;;  %5091 = vmatpush1.bf16.msra.mxu1 %v8786_v61  ;;  %v8344_v61 = vand.u32 4294901760, %v7196_v23  ;;  %v3370_v49 = vsub.f32 %v7168_v16, %v8361_v47  ;;  %v7573_v43 = vpack.c.bf16 %v8789_v2, %v8788_v41  ;;  %v8790_v2 = vand.u32 4294901760, %v7122_v50 }
 0x1b0   :  { %4822 = vmatprep.subr.bf16.mxu0 %v8412_v17  ;;  %5092 = vmatprep.subr.bf16.mxu1 %v8412_v17 }
 0x1b1   :  { %v3384_v31 = vsub.f32 %v7196_v23, %v8344_v61  ;;  %v7594_v61 = vpack.c.bf16 %v8791_v21, %v8790_v2  ;;  %v8346_v21 = vand.u32 4294901760, %v7265_v55  ;;  %v8794_v2 = vld [vmem:[#allocation33_spill] sm:$0xff] }
 0x1b3   :  { %4824 = vmatpush1.bf16.msra.mxu0 %v8661_v26  ;;  %5094 = vmatpush1.bf16.msra.mxu1 %v8662_v63  ;;  %v8787_v26 = vand.u32 4294901760, %v7173_v11  ;;  %v3385_v52 = vand.u32 4294901760, %v3384_v31  ;;  %v8793_v31 = vand.u32 4294901760, %v7159_v7  ;;  %v8357_v7 = vand.u32 4294901760, %v7290_v60 }
 0x1b4   :  { %5095 = vmatprep.subr.bf16.mxu0 %v8412_v17  ;;  %5140 = vmatprep.subr.bf16.mxu1 %v8412_v17 }
 0x1b5   :  { %v3377_v63 = vsub.f32 %v7173_v11, %v8787_v26  ;;  %v3371_v26 = vand.u32 4294901760, %v3370_v49  ;;  %v3398_v49 = vsub.f32 %v7228_v56, %v8359_v48 }
 0x1b6   :  { %2171 = vmatmul.mubr.f32.vlgmr.msra.gmra.mrb[6].mxu0 %v8739_v14  ;;  %3149 = vmatmul.mubr.f32.vlgmr.msra.gmra.mrb[6].mxu1 %v8739_v14 }
 0x1b7   :  { %5097 = vmatpush1.bf16.msra.mxu0 %v7555_v15  ;;  %2176 = vmatprep.mubr.f32.mxu0 %v8742_v1  ;;  %v3378_v41 = vand.u32 4294901760, %v3377_v63  ;;  %v8792_v63 = vand.u32 4294901760, %v7154_v35  ;;  %v3419_v35 = vsub.f32 %v7265_v55, %v8346_v21 }
 0x1b8   :  { %3154 = vmatprep.mubr.f32.mxu1 %v8742_v1  ;;  %5142 = vmatpush1.bf16.msra.mxu1 %v5141_v25  ;;  %v3405_v25 = vsub.f32 %v7233_v51, %v8345_v27  ;;  %v3412_v27 = vsub.f32 %v7260_v28, %v8347_v46  ;;  %v3426_v46 = vsub.f32 %v7290_v60, %v8357_v7  ;;  %v8814_v7 = vld [vmem:[#allocation38_spill] sm:$0xff] }
 0x1b9   :  { %5098 = vmatprep.subr.bf16.mxu0 %v8412_v17  ;;  %5143 = vmatprep.subr.bf16.mxu1 %v8412_v17  ;;  %v5147_v50 = vpack.c.bf16 %v3378_v41, %v3371_v26  ;;  %v7616_v59 = vpack.c.bf16 %v8793_v31, %v8792_v63  ;;  %v3399_v26 = vand.u32 4294901760, %v3398_v49  ;;  %v8350_v63 = vand.u32 4294901760, %v7295_v20 }
 0x1ba   :  { %2178 = vmatmul.mubr.f32.gmra.mrb[8].mxu0 %v8743_v57  ;;  %3156 = vmatmul.mubr.f32.gmra.mrb[8].mxu1 %v8743_v57  ;;  %v3406_v41 = vand.u32 4294901760, %v3405_v25  ;;  %v8349_v31 = vand.u32 4294901760, %v7323_v5  ;;  %v3420_v21 = vand.u32 4294901760, %v3419_v35  ;;  %v8354_v35 = vand.u32 4294901760, %v7346_v0 }
 0x1bb   :  { %5100 = vmatpush1.bf16.msra.mxu0 %v7573_v43  ;;  %2183 = vmatprep.mubr.f32.mxu0 %v8746_v44 }
 0x1bc   :  { %3161 = vmatprep.mubr.f32.mxu1 %v8746_v44  ;;  %5145 = vmatpush1.bf16.msra.mxu1 %v5144_v42  ;;  %v5150_v42 = vpack.c.bf16 %v3392_v37, %v3385_v52  ;;  %v8795_v52 = vand.u32 4294901760, %v7180_v53  ;;  %v8796_v37 = vand.u32 4294901760, %v7185_v10  ;;  %v5153_v25 = vpack.c.bf16 %v3406_v41, %v3399_v26 }
 0x1bd   :  { %5101 = vmatprep.subr.bf16.mxu0 %v8412_v17  ;;  %5146 = vmatprep.subr.bf16.mxu1 %v8412_v17  ;;  %v3433_v53 = vsub.f32 %v7295_v20, %v8350_v63  ;;  %v8797_v10 = vand.u32 4294901760, %v7210_v34  ;;  %v8798_v26 = vand.u32 4294901760, %v7215_v54  ;;  %v3427_v54 = vand.u32 4294901760, %v3426_v46 }
 0x1be   :  { %2185 = vmatmul.mubr.f32.gmra.mrb[10].mxu0 %v8747_v24  ;;  %3163 = vmatmul.mubr.f32.gmra.mrb[10].mxu1 %v8747_v24  ;;  %v7635_v49 = vpack.c.bf16 %v8796_v37, %v8795_v52  ;;  %v8353_v52 = vand.u32 4294901760, %v7351_v40 }
 0x1bf   :  { %5103 = vmatpush1.bf16.msra.mxu0 %v7594_v61  ;;  %3297 = vmatprep.mubr.f32.mxu0 %v8794_v2  ;;  %v3413_v2 = vand.u32 4294901760, %v3412_v27  ;;  %v7651_v41 = vpack.c.bf16 %v8798_v26, %v8797_v10  ;;  %v3434_v37 = vand.u32 4294901760, %v3433_v53  ;;  %v8799_v10 = vand.u32 4294901760, %v7242_v33 }
 0x1c0   :  { %5148 = vmatpush1.bf16.msra.mxu1 %v5147_v50  ;;  %5104 = vmatprep.subr.bf16.mxu0 %v8412_v17  ;;  %v8348_v50 = vand.u32 4294901760, %v7318_v6  ;;  %v8800_v26 = vand.u32 4294901760, %v7247_v4  ;;  %v3461_v46 = vsub.f32 %v7351_v40, %v8353_v52  ;;  %v8351_v4 = vand.u32 4294901760, %v7374_v13 }
 0x1c1   :  { %5149 = vmatprep.subr.bf16.mxu1 %v8412_v17  ;;  %3553 = vmatprep.mubr.f32.mxu1 %v8684_v29  ;;  %v5156_v34 = vpack.c.bf16 %v3420_v21, %v3413_v2  ;;  %v5159_v33 = vpack.c.bf16 %v3434_v37, %v3427_v54  ;;  %v8352_v21 = vand.u32 4294901760, %v7379_v9  ;;  %v8801_v2 = vand.u32 4294901760, %v7274_v36 }
 0x1c2   :  { %v3440_v27 = vsub.f32 %v7318_v6, %v8348_v50  ;;  %v7668_v50 = vpack.c.bf16 %v8800_v26, %v8799_v10  ;;  %v8802_v53 = vand.u32 4294901760, %v7279_v19  ;;  %v3468_v54 = vsub.f32 %v7374_v13, %v8351_v4 }
 0x1c3   :  { %5106 = vmatpush1.bf16.msra.mxu0 %v7616_v59  ;;  %v3475_v37 = vsub.f32 %v7379_v9, %v8352_v21  ;;  %v8356_v36 = vand.u32 4294901760, %v7402_v22  ;;  %v8355_v19 = vand.u32 4294901760, %v7407_v18 }
 0x1c4   :  { %5151 = vmatpush1.bf16.msra.mxu1 %v5150_v42  ;;  %5107 = vmatprep.subr.bf16.mxu0 %v8412_v17  ;;  %v3447_v42 = vsub.f32 %v7323_v5, %v8349_v31  ;;  %v3441_v31 = vand.u32 4294901760, %v3440_v27  ;;  %v7686_v27 = vpack.c.bf16 %v8802_v53, %v8801_v2  ;;  %v8807_v53 = vld [vmem:[#allocation8_spill] sm:$0xff]  ;;  %v3469_v21 = vand.u32 4294901760, %v3468_v54 }
 0x1c5   :  { %5152 = vmatprep.subr.bf16.mxu1 %v8412_v17  ;;  %v8360_v4 = vand.u32 4294901760, %v8807_v53  ;;  %v3476_v52 = vand.u32 4294901760, %v3475_v37  ;;  %v8365_v37 = vand.u32 4294901760, %v7464_v32 }
 0x1c6   :  { %v3448_v63 = vand.u32 4294901760, %v3447_v42 }
 0x1c7   :  { %5109 = vmatpush1.bf16.msra.mxu0 %v7635_v49  ;;  %v3503_v54 = vsub.f32 %v8807_v53, %v8360_v4 }
 0x1c8   :  { %5154 = vmatpush1.bf16.msra.mxu1 %v5153_v25  ;;  %5110 = vmatprep.subr.bf16.mxu0 %v8412_v17  ;;  %v3454_v25 = vsub.f32 %v7346_v0, %v8354_v35  ;;  %v5162_v42 = vpack.c.bf16 %v3448_v63, %v3441_v31  ;;  %v8803_v63 = vand.u32 4294901760, %v7304_v39  ;;  %v8804_v31 = vld [vmem:[#allocation87_spill] sm:$0xff]  ;;  %v3482_v35 = vsub.f32 %v7402_v22, %v8356_v36 }
 0x1c9   :  { %5155 = vmatprep.subr.bf16.mxu1 %v8412_v17  ;;  %v8805_v26 = vand.u32 4294901760, %v8804_v31  ;;  %v3489_v39 = vsub.f32 %v7407_v18, %v8355_v19  ;;  %v8362_v19 = vand.u32 4294901760, %v7469_v45  ;;  %v3504_v47 = vand.u32 4294901760, %v3503_v54 }
 0x1ca   :  { %v3455_v10 = vand.u32 4294901760, %v3454_v25 }
 0x1cb   :  { %5112 = vmatpush1.bf16.msra.mxu0 %v7651_v41  ;;  %v7703_v25 = vpack.c.bf16 %v8805_v26, %v8803_v63  ;;  %v8810_v63 = vld [vmem:[#allocation31_spill] sm:$0xff] }
 0x1cc   :  { %5157 = vmatpush1.bf16.msra.mxu1 %v5156_v34  ;;  %5113 = vmatprep.subr.bf16.mxu0 %v8412_v17  ;;  %v3462_v34 = vand.u32 4294901760, %v3461_v46  ;;  %v8811_v31 = vand.u32 4294901760, %v8810_v63  ;;  %v3490_v63 = vand.u32 4294901760, %v3489_v39  ;;  %v8818_v39 = vld [vmem:[#allocation41_spill] sm:$0xff] }
 0x1cd   :  { %5158 = vmatprep.subr.bf16.mxu1 %v8412_v17 }
 0x1ce   :  { %v5165_v46 = vpack.c.bf16 %v3462_v34, %v3455_v10  ;;  %v8808_v10 = vld [vmem:[#allocation89_spill] sm:$0xff] }
 0x1cf   :  { %5115 = vmatpush1.bf16.msra.mxu0 %v7668_v50  ;;  %v8809_v34 = vand.u32 4294901760, %v8808_v10  ;;  %v5168_v10 = vpack.c.bf16 %v3476_v52, %v3469_v21  ;;  %v8363_v21 = vand.u32 4294901760, %v7497_v38 }
 0x1d0   :  { %5160 = vmatpush1.bf16.msra.mxu1 %v5159_v33  ;;  %5116 = vmatprep.subr.bf16.mxu0 %v8412_v17  ;;  %v8806_v33 = vld [vmem:[#allocation53_spill] sm:$0xff] }
 0x1d1   :  { %5161 = vmatprep.subr.bf16.mxu1 %v8412_v17  ;;  %v8358_v2 = vand.u32 4294901760, %v8806_v33  ;;  %v7719_v26 = vpack.c.bf16 %v8811_v31, %v8809_v34  ;;  %v3483_v34 = vand.u32 4294901760, %v3482_v35  ;;  %v8812_v31 = vld [vmem:[#allocation37_spill] sm:$0xff]  ;;  %v3517_v35 = vsub.f32 %v7469_v45, %v8362_v19 }
 0x1d2   :  { %v8813_v36 = vand.u32 4294901760, %v8812_v31 }
 0x1d3   :  { %5118 = vmatpush1.bf16.msra.mxu0 %v7686_v27  ;;  %v5171_v52 = vpack.c.bf16 %v3490_v63, %v3483_v34  ;;  %v3531_v63 = vsub.f32 %v7497_v38, %v8363_v21 }
 0x1d4   :  { %5163 = vmatpush1.bf16.msra.mxu1 %v5162_v42  ;;  %5119 = vmatprep.subr.bf16.mxu0 %v8412_v17  ;;  %v3496_v42 = vsub.f32 %v8806_v33, %v8358_v2  ;;  %v8815_v2 = vand.u32 4294901760, %v8814_v7  ;;  %v8364_v7 = vand.u32 4294901760, %v7492_v62 }
 0x1d5   :  { %5164 = vmatprep.subr.bf16.mxu1 %v8412_v17  ;;  %v3532_v21 = vand.u32 4294901760, %v3531_v63 }
 0x1d6   :  { %v7736_v48 = vpack.c.bf16 %v8815_v2, %v8813_v36  ;;  %v3497_v4 = vand.u32 4294901760, %v3496_v42  ;;  %v8816_v36 = vld [vmem:[#allocation40_spill] sm:$0xff]  ;;  %v8819_v42 = vand.u32 4294901760, %v8818_v39  ;;  %v3524_v34 = vsub.f32 %v7492_v62, %v8364_v7 }
 0x1d7   :  { %5121 = vmatpush1.bf16.msra.mxu0 %v7703_v25  ;;  %v8817_v2 = vand.u32 4294901760, %v8816_v36  ;;  %v8367_v36 = vand.u32 4294901760, %v7514_v3  ;;  %v8366_v39 = vand.u32 4294901760, %v7519_v58 }
 0x1d8   :  { %5166 = vmatpush1.bf16.msra.mxu1 %v5165_v46  ;;  %5122 = vmatprep.subr.bf16.mxu0 %v8412_v17  ;;  %v3510_v46 = vsub.f32 %v7464_v32, %v8365_v37  ;;  %v5174_v31 = vpack.c.bf16 %v3504_v47, %v3497_v4  ;;  %v8820_v47 = vld [vmem:[#allocation44_spill] sm:$0xff] }
 0x1d9   :  { %5167 = vmatprep.subr.bf16.mxu1 %v8412_v17  ;;  %v7754_v54 = vpack.c.bf16 %v8819_v42, %v8817_v2  ;;  %v8821_v4 = vand.u32 4294901760, %v8820_v47  ;;  %v3525_v42 = vand.u32 4294901760, %v3524_v34  ;;  %v3538_v7 = vsub.f32 %v7514_v3, %v8367_v36  ;;  %v8824_v47 = vld [vmem:[#allocation7_spill] sm:$0xff] }
 0x1da   :  { %v3511_v19 = vand.u32 4294901760, %v3510_v46  ;;  %v8822_v46 = vld [vmem:[#allocation52_spill] sm:$0xff]  ;;  %v3545_v37 = vsub.f32 %v7519_v58, %v8366_v39  ;;  %v8830_v36 = vld [vmem:[#allocation15_spill] sm:$0xff] }
 0x1db   :  { %5124 = vmatpush1.bf16.msra.mxu0 %v7719_v26  ;;  %v5180_v34 = vpack.c.bf16 %v3532_v21, %v3525_v42  ;;  %v3539_v63 = vand.u32 4294901760, %v3538_v7  ;;  %v8831_v29 = vand.u32 4294901760, %v8830_v36  ;;  %v8832_v7 = vld [vmem:[#allocation14_spill] sm:$0xff]  ;;  %v8836_v36 = vld [vmem:[#allocation63_spill] sm:$0xff]  ;;  %v8838_v42 = vld [vmem:[#allocation65_spill] sm:$0xff] }
 0x1dc   :  { %5169 = vmatpush1.bf16.msra.mxu1 %v5168_v10  ;;  %5125 = vmatprep.subr.bf16.mxu0 %v8412_v17  ;;  %v3518_v10 = vand.u32 4294901760, %v3517_v35  ;;  %v8823_v35 = vand.u32 4294901760, %v8822_v46  ;;  %v3546_v46 = vand.u32 4294901760, %v3545_v37  ;;  %v8833_v37 = vld [vmem:[#allocation19_spill] sm:$0xff] }
 0x1dd   :  { %5170 = vmatprep.subr.bf16.mxu1 %v8412_v17  ;;  %v5186_v21 = vpack.c.bf16 %v8833_v37, %v8832_v7 }
 0x1de   :  { %v5177_v2 = vpack.c.bf16 %v3518_v10, %v3511_v19  ;;  %v8826_v19 = vld [vmem:[#allocation12_spill] sm:$0xff] }
 0x1df   :  { %5127 = vmatpush1.bf16.msra.mxu0 %v7736_v48 }
 0x1e0   :  { %5172 = vmatpush1.bf16.msra.mxu1 %v5171_v52  ;;  %5128 = vmatprep.subr.bf16.mxu0 %v8412_v17  ;;  %v7771_v52 = vpack.c.bf16 %v8823_v35, %v8821_v4  ;;  %v8825_v4 = vand.u32 4294901760, %v8824_v47  ;;  %v8828_v35 = vld [vmem:[#allocation11_spill] sm:$0xff]  ;;  %v5183_v47 = vpack.c.bf16 %v3546_v46, %v3539_v63  ;;  %v8843_v63 = vpack.c.bf16 %v7201_v12, %v7196_v23 }
 0x1e1   :  { %5173 = vmatprep.subr.bf16.mxu1 %v8412_v17  ;;  %v8829_v39 = vand.u32 4294901760, %v8828_v35  ;;  %v8844_v46 = vpack.c.bf16 %v7233_v51, %v7228_v56  ;;  %v8845_v35 = vpack.c.bf16 %v7265_v55, %v7260_v28 }
 0x1e3   :  { %5130 = vmatpush1.bf16.msra.mxu0 %v7754_v54  ;;  %v7795_v3 = vpack.c.bf16 %v8831_v29, %v8829_v39  ;;  %v8835_v29 = vld [vmem:[#allocation62_spill] sm:$0xff]  ;;  %v8837_v39 = vpack.c.bf16 %v7139_v8, %v7134_v30 }
 0x1e4   :  { %5175 = vmatpush1.bf16.msra.mxu1 %v5174_v31  ;;  %5131 = vmatprep.subr.bf16.mxu0 %v8412_v17  ;;  %v8827_v31 = vand.u32 4294901760, %v8826_v19  ;;  %v8840_v19 = vpack.c.bf16 %v7173_v11, %v7168_v16 }
 0x1e5   :  { %5176 = vmatprep.subr.bf16.mxu1 %v8412_v17 }
 0x1e6   :  { %v7786_v10 = vpack.c.bf16 %v8827_v31, %v8825_v4  ;;  %v8839_v4 = vld [vmem:[#allocation66_spill] sm:$0xff]  ;;  %v8841_v31 = vld [vmem:[#allocation9_spill] sm:$0xff] }
 0x1e7   :  { %5133 = vmatpush1.bf16.msra.mxu0 %v7771_v52 }
 0x1e8   :  { %5178 = vmatpush1.bf16.msra.mxu1 %v5177_v2  ;;  %5134 = vmatprep.subr.bf16.mxu0 %v8412_v17  ;;  %v8834_v2 = vld [vmem:[#allocation50_spill] sm:$0xff] }
 0x1e9   :  { %5179 = vmatprep.subr.bf16.mxu1 %v8412_v17 }
 0x1eb   :  { %5136 = vmatpush1.bf16.msra.mxu0 %v7786_v10 }
 0x1ec   :  { %5181 = vmatpush1.bf16.msra.mxu1 %v5180_v34  ;;  %5137 = vmatprep.subr.bf16.mxu0 %v8412_v17  ;;  %v8842_v34 = vld [vmem:[#allocation18_spill] sm:$0xff] }
 0x1ed   :  { %5182 = vmatprep.subr.bf16.mxu1 %v8412_v17 }
 0x1ef   :  { %5139 = vmatpush1.bf16.msra.mxu0 %v7795_v3 }
 0x1f0   :  { %5184 = vmatpush1.bf16.msra.mxu1 %v5183_v47  ;;  %5185 = vmatprep.subr.bf16.mxu0 %v8412_v17  ;;  %v8846_v47 = vpack.c.bf16 %v7295_v20, %v7290_v60 }
 0x1f1   :  { %5230 = vmatprep.subr.bf16.mxu1 %v8412_v17 }
 0x1f2   :  { %3303 = vmatmul.mubr.f32.vlgmr.msra.gmra.mrb[12].mxu0 %v8834_v2  ;;  %v8848_v2 = vpack.c.bf16 %v7351_v40, %v7346_v0 }
 0x1f3   :  { %5187 = vmatpush1.bf16.msra.mxu0 %v5186_v21  ;;  %3555 = vmatmul.mubr.f32.vlgmr.msra.gmra.mrb[12].mxu1 %v8739_v14  ;;  %v8847_v21 = vpack.c.bf16 %v7323_v5, %v7318_v6 }
 0x1f4   :  { %5232 = vmatpush1.bf16.msra.mxu1 %v7555_v15  ;;  %5188 = vmatprep.subr.bf16.mxu0 %v8412_v17 }
 0x1f5   :  { %5233 = vmatprep.subr.bf16.mxu1 %v8412_v17  ;;  %3312 = vmatprep.mubr.f32.mxu0 %v8835_v29  ;;  %v8849_v29 = vpack.c.bf16 %v7379_v9, %v7374_v13 }
 0x1f6   :  { %3318 = vmatmul.mubr.f32.gmra.mrb[14].mxu0 %v8836_v36  ;;  %3560 = vmatprep.mubr.f32.mxu1 %v8742_v1  ;;  %v8850_v36 = vpack.c.bf16 %v7407_v18, %v7402_v22 }
 0x1f7   :  { %5190 = vmatpush1.bf16.msra.mxu0 %v8837_v39  ;;  %3562 = vmatmul.mubr.f32.gmra.mrb[14].mxu1 %v8743_v57  ;;  %v8851_v39 = vpack.c.bf16 %v8807_v53, %v8806_v33 }
 0x1f8   :  { %5235 = vmatpush1.bf16.msra.mxu1 %v7573_v43  ;;  %5191 = vmatprep.subr.bf16.mxu0 %v8412_v17 }
 0x1f9   :  { %5236 = vmatprep.subr.bf16.mxu1 %v8412_v17  ;;  %3327 = vmatprep.mubr.f32.mxu0 %v8838_v42  ;;  %v8852_v42 = vpack.c.bf16 %v7469_v45, %v7464_v32 }
 0x1fa   :  { %3333 = vmatmul.mubr.f32.gmra.mrb[16].mxu0 %v8839_v4  ;;  %3567 = vmatprep.mubr.f32.mxu1 %v8746_v44  ;;  %v8853_v4 = vpack.c.bf16 %v7497_v38, %v7492_v62 }
 0x1fb   :  { %5193 = vmatpush1.bf16.msra.mxu0 %v8840_v19  ;;  %3569 = vmatmul.mubr.f32.gmra.mrb[16].mxu1 %v8747_v24  ;;  %v8854_v19 = vld [vmem:[#allocation16_spill] sm:$0xff] }
 0x1fc   :  { %5238 = vmatpush1.bf16.msra.mxu1 %v7594_v61  ;;  %5194 = vmatprep.subr.bf16.mxu0 %v8412_v17 }
 0x1fd   :  { %5239 = vmatprep.subr.bf16.mxu1 %v8412_v17  ;;  %3700 = vmatprep.mubr.f32.mxu0 %v8841_v31  ;;  %v8855_v31 = vpack.c.bf16 %v7519_v58, %v8854_v19 }
 0x1fe   :  { %3823 = vmatprep.mubr.f32.mxu1 %v8842_v34  ;;  %v8856_v34 = vand.u32 4294901760, %v8832_v7  ;;  %v8862_v7 = vld [vmem:[#allocation98_spill] sm:$0xff] }
 0x1ff   :  { %5196 = vmatpush1.bf16.msra.mxu0 %v8843_v63  ;;  %v8857_v63 = vand.u32 4294901760, %v8833_v37  ;;  %v8863_v37 = vld [vmem:[#allocation43_spill] sm:$0xff] }
 0x200   :  { %5241 = vmatpush1.bf16.msra.mxu1 %v7616_v59  ;;  %5197 = vmatprep.subr.bf16.mxu0 %v8412_v17 }
 0x201   :  { %5242 = vmatprep.subr.bf16.mxu1 %v8412_v17 }
 0x203   :  { %5199 = vmatpush1.bf16.msra.mxu0 %v8844_v46  ;;  %v5276_v46 = vpack.c.bf16 %v8857_v63, %v8856_v34  ;;  %v8871_v34 = vld [vmem:[#allocation61_spill] sm:$0xff] }
 0x204   :  { %5244 = vmatpush1.bf16.msra.mxu1 %v7635_v49  ;;  %5200 = vmatprep.subr.bf16.mxu0 %v8412_v17 }
 0x205   :  { %5245 = vmatprep.subr.bf16.mxu1 %v8412_v17 }
 0x207   :  { %5202 = vmatpush1.bf16.msra.mxu0 %v8845_v35  ;;  %v8858_v35 = vld [vmem:[#allocation88_spill] sm:$0xff] }
 0x208   :  { %5247 = vmatpush1.bf16.msra.mxu1 %v7651_v41  ;;  %5203 = vmatprep.subr.bf16.mxu0 %v8412_v17 }
 0x209   :  { %5248 = vmatprep.subr.bf16.mxu1 %v8412_v17 }
 0x20b   :  { %5205 = vmatpush1.bf16.msra.mxu0 %v8846_v47  ;;  %v8859_v47 = vld [vmem:[#allocation94_spill] sm:$0xff] }
 0x20c   :  { %5250 = vmatpush1.bf16.msra.mxu1 %v7668_v50  ;;  %5206 = vmatprep.subr.bf16.mxu0 %v8412_v17 }
 0x20d   :  { %5251 = vmatprep.subr.bf16.mxu1 %v8412_v17 }
 0x20f   :  { %5208 = vmatpush1.bf16.msra.mxu0 %v8847_v21  ;;  %v8860_v21 = vand.u32 4294901760, %v7134_v30  ;;  %v8866_v30 = vand.u32 4294901760, %v7168_v16  ;;  %v8872_v16 = vand.u32 4294901760, %v7196_v23  ;;  %v8877_v23 = vand.u32 4294901760, %v7260_v28 }
 0x210   :  { %5253 = vmatpush1.bf16.msra.mxu1 %v7686_v27  ;;  %5209 = vmatprep.subr.bf16.mxu0 %v8412_v17  ;;  %v8881_v28 = vand.u32 4294901760, %v7318_v6  ;;  %v8885_v6 = vand.u32 4294901760, %v7374_v13  ;;  %v8889_v13 = vand.u32 4294901760, %v8806_v33  ;;  %v8893_v33 = vand.u32 4294901760, %v7492_v62 }
 0x211   :  { %5254 = vmatprep.subr.bf16.mxu1 %v8412_v17 }
 0x213   :  { %5211 = vmatpush1.bf16.msra.mxu0 %v8848_v2  ;;  %v8861_v2 = vand.u32 4294901760, %v7139_v8  ;;  %v8867_v8 = vand.u32 4294901760, %v7173_v11  ;;  %v8873_v11 = vand.u32 4294901760, %v7201_v12  ;;  %v8878_v12 = vand.u32 4294901760, %v7265_v55 }
 0x214   :  { %5256 = vmatpush1.bf16.msra.mxu1 %v7703_v25  ;;  %5212 = vmatprep.subr.bf16.mxu0 %v8412_v17  ;;  %v8882_v55 = vand.u32 4294901760, %v7323_v5  ;;  %v8886_v5 = vand.u32 4294901760, %v7379_v9  ;;  %v8890_v9 = vand.u32 4294901760, %v8807_v53 }
 0x215   :  { %5257 = vmatprep.subr.bf16.mxu1 %v8412_v17  ;;  %v5285_v63 = vpack.c.bf16 %v8873_v11, %v8872_v16 }
 0x217   :  { %5214 = vmatpush1.bf16.msra.mxu0 %v8849_v29  ;;  %v5279_v29 = vpack.c.bf16 %v8861_v2, %v8860_v21 }
 0x218   :  { %5259 = vmatpush1.bf16.msra.mxu1 %v7719_v26  ;;  %5215 = vmatprep.subr.bf16.mxu0 %v8412_v17 }
 0x219   :  { %5260 = vmatprep.subr.bf16.mxu1 %v8412_v17 }
 0x21b   :  { %5217 = vmatpush1.bf16.msra.mxu0 %v8850_v36  ;;  %v8864_v36 = vld [vmem:[#allocation99_spill] sm:$0xff] }
 0x21c   :  { %5262 = vmatpush1.bf16.msra.mxu1 %v7736_v48  ;;  %5218 = vmatprep.subr.bf16.mxu0 %v8412_v17 }
 0x21d   :  { %5263 = vmatprep.subr.bf16.mxu1 %v8412_v17 }
 0x21f   :  { %5220 = vmatpush1.bf16.msra.mxu0 %v8851_v39  ;;  %v8865_v39 = vld [vmem:[#allocation47_spill] sm:$0xff] }
 0x220   :  { %5265 = vmatpush1.bf16.msra.mxu1 %v7754_v54  ;;  %5221 = vmatprep.subr.bf16.mxu0 %v8412_v17 }
 0x221   :  { %5266 = vmatprep.subr.bf16.mxu1 %v8412_v17 }
 0x223   :  { %5223 = vmatpush1.bf16.msra.mxu0 %v8852_v42  ;;  %v5282_v42 = vpack.c.bf16 %v8867_v8, %v8866_v30 }
 0x224   :  { %5268 = vmatpush1.bf16.msra.mxu1 %v7771_v52  ;;  %5224 = vmatprep.subr.bf16.mxu0 %v8412_v17 }
 0x225   :  { %5269 = vmatprep.subr.bf16.mxu1 %v8412_v17 }
 0x227   :  { %5226 = vmatpush1.bf16.msra.mxu0 %v8853_v4  ;;  %v8868_v4 = vld [vmem:[#allocation100_spill] sm:$0xff] }
 0x228   :  { %5271 = vmatpush1.bf16.msra.mxu1 %v7786_v10  ;;  %5227 = vmatprep.subr.bf16.mxu0 %v8412_v17 }
 0x229   :  { %5272 = vmatprep.subr.bf16.mxu1 %v8412_v17 }
 0x22b   :  { %5229 = vmatpush1.bf16.msra.mxu0 %v8855_v31  ;;  %v8870_v31 = vld [vmem:[#allocation49_spill] sm:$0xff] }
 0x22c   :  { %5274 = vmatpush1.bf16.msra.mxu1 %v7795_v3  ;;  %5275 = vmatprep.subr.bf16.mxu0 %v8412_v17 }
 0x22d   :  { %5320 = vmatprep.subr.bf16.mxu1 %v8412_v17 }
 0x22e   :  { %3703 = vmatmul.mubr.f32.vlgmr.msra.gmra.mrb[18].mxu0 %v8858_v35  ;;  %v8876_v35 = vand.u32 4294901760, %v7233_v51  ;;  %v8880_v51 = vand.u32 4294901760, %v7295_v20  ;;  %v8884_v20 = vand.u32 4294901760, %v7351_v40  ;;  %v8888_v40 = vand.u32 4294901760, %v7407_v18 }
 0x22f   :  { %5277 = vmatpush1.bf16.msra.mxu0 %v5276_v46  ;;  %3827 = vmatmul.mubr.f32.vlgmr.msra.gmra.mrb[18].mxu1 %v8859_v47  ;;  %v8875_v46 = vand.u32 4294901760, %v7228_v56  ;;  %v8879_v56 = vand.u32 4294901760, %v7290_v60  ;;  %v8883_v60 = vand.u32 4294901760, %v7346_v0  ;;  %v8887_v0 = vand.u32 4294901760, %v7402_v22 }
 0x230   :  { %3709 = vmatprep.mubr.f32.mxu0 %v8862_v7  ;;  %5322 = vmatpush1.bf16.msra.mxu1 %v7555_v15  ;;  %v8869_v15 = vld [vmem:[#allocation59_spill] sm:$0xff]  ;;  %v8891_v22 = vand.u32 4294901760, %v7464_v32  ;;  %v8892_v18 = vand.u32 4294901760, %v7469_v45  ;;  %v8895_v32 = vand.u32 4294901760, %v8854_v19  ;;  %v8896_v45 = vand.u32 4294901760, %v7519_v58 }
 0x231   :  { %5278 = vmatprep.subr.bf16.mxu0 %v8412_v17  ;;  %3834 = vmatprep.mubr.f32.mxu1 %v8863_v37  ;;  %v5288_v47 = vpack.c.bf16 %v8876_v35, %v8875_v46 }
 0x232   :  { %3712 = vmatmul.mubr.f32.gmra.mrb[20].mxu0 %v8864_v36  ;;  %5323 = vmatprep.subr.bf16.mxu1 %v8412_v17  ;;  %v8899_v36 = vld [vmem:[#allocation71_spill] sm:$0xff] }
 0x233   :  { %5280 = vmatpush1.bf16.msra.mxu0 %v5279_v29  ;;  %3838 = vmatmul.mubr.f32.gmra.mrb[20].mxu1 %v8865_v39  ;;  %v4151_v39 = vmul.f32 %v8899_v36, %v8899_v36 }
 0x234   :  { %3718 = vmatprep.mubr.f32.mxu0 %v8868_v4  ;;  %5325 = vmatpush1.bf16.msra.mxu1 %v7573_v43  ;;  %v8874_v43 = vld [vmem:[#allocation5_spill] sm:$0xff] }
 0x235   :  { %5281 = vmatprep.subr.bf16.mxu0 %v8412_v17  ;;  %3845 = vmatprep.mubr.f32.mxu1 %v8869_v15 }
 0x236   :  { %3721 = vmatmul.mubr.f32.gmra.mrb[22].mxu0 %v8870_v31  ;;  %5326 = vmatprep.subr.bf16.mxu1 %v8412_v17 }
 0x237   :  { %5283 = vmatpush1.bf16.msra.mxu0 %v5282_v42  ;;  %3849 = vmatmul.mubr.f32.gmra.mrb[22].mxu1 %v8871_v34 }
 0x238   :  { %5328 = vmatpush1.bf16.msra.mxu1 %v7594_v61  ;;  %5284 = vmatprep.subr.bf16.mxu0 %v8412_v17  ;;  %v5291_v61 = vpack.c.bf16 %v8878_v12, %v8877_v23 }
 0x239   :  { %5329 = vmatprep.subr.bf16.mxu1 %v8412_v17  ;;  %4009 = vmatprep.mubr.f32.mxu0 %v8874_v43 }
 0x23a   :  { %4125 = vmatprep.mubr.f32.mxu1 %v8874_v43 }
 0x23b   :  { %5286 = vmatpush1.bf16.msra.mxu0 %v5285_v63 }
 0x23c   :  { %5331 = vmatpush1.bf16.msra.mxu1 %v7616_v59  ;;  %5287 = vmatprep.subr.bf16.mxu0 %v8412_v17  ;;  %v5294_v59 = vpack.c.bf16 %v8880_v51, %v8879_v56 }
 0x23d   :  { %5332 = vmatprep.subr.bf16.mxu1 %v8412_v17 }
 0x23f   :  { %5289 = vmatpush1.bf16.msra.mxu0 %v5288_v47 }
 0x240   :  { %5334 = vmatpush1.bf16.msra.mxu1 %v7635_v49  ;;  %5290 = vmatprep.subr.bf16.mxu0 %v8412_v17  ;;  %v5297_v49 = vpack.c.bf16 %v8882_v55, %v8881_v28 }
 0x241   :  { %5335 = vmatprep.subr.bf16.mxu1 %v8412_v17 }
 0x243   :  { %5292 = vmatpush1.bf16.msra.mxu0 %v5291_v61 }
 0x244   :  { %5337 = vmatpush1.bf16.msra.mxu1 %v7651_v41  ;;  %5293 = vmatprep.subr.bf16.mxu0 %v8412_v17  ;;  %v5300_v41 = vpack.c.bf16 %v8884_v20, %v8883_v60 }
 0x245   :  { %5338 = vmatprep.subr.bf16.mxu1 %v8412_v17 }
 0x247   :  { %5295 = vmatpush1.bf16.msra.mxu0 %v5294_v59 }
 0x248   :  { %5340 = vmatpush1.bf16.msra.mxu1 %v7668_v50  ;;  %5296 = vmatprep.subr.bf16.mxu0 %v8412_v17  ;;  %v5303_v50 = vpack.c.bf16 %v8886_v5, %v8885_v6 }
 0x249   :  { %5341 = vmatprep.subr.bf16.mxu1 %v8412_v17 }
 0x24b   :  { %5298 = vmatpush1.bf16.msra.mxu0 %v5297_v49 }
 0x24c   :  { %5343 = vmatpush1.bf16.msra.mxu1 %v7686_v27  ;;  %5299 = vmatprep.subr.bf16.mxu0 %v8412_v17  ;;  %v5306_v27 = vpack.c.bf16 %v8888_v40, %v8887_v0 }
 0x24d   :  { %5344 = vmatprep.subr.bf16.mxu1 %v8412_v17 }
 0x24f   :  { %5301 = vmatpush1.bf16.msra.mxu0 %v5300_v41 }
 0x250   :  { %5346 = vmatpush1.bf16.msra.mxu1 %v7703_v25  ;;  %5302 = vmatprep.subr.bf16.mxu0 %v8412_v17  ;;  %v5309_v25 = vpack.c.bf16 %v8890_v9, %v8889_v13 }
 0x251   :  { %5347 = vmatprep.subr.bf16.mxu1 %v8412_v17 }
 0x253   :  { %5304 = vmatpush1.bf16.msra.mxu0 %v5303_v50 }
 0x254   :  { %5349 = vmatpush1.bf16.msra.mxu1 %v7719_v26  ;;  %5305 = vmatprep.subr.bf16.mxu0 %v8412_v17  ;;  %v5312_v26 = vpack.c.bf16 %v8892_v18, %v8891_v22 }
 0x255   :  { %5350 = vmatprep.subr.bf16.mxu1 %v8412_v17 }
 0x257   :  { %5307 = vmatpush1.bf16.msra.mxu0 %v5306_v27 }
 0x258   :  { %5352 = vmatpush1.bf16.msra.mxu1 %v7736_v48  ;;  %5308 = vmatprep.subr.bf16.mxu0 %v8412_v17  ;;  %v8894_v48 = vand.u32 4294901760, %v7497_v38 }
 0x259   :  { %5353 = vmatprep.subr.bf16.mxu1 %v8412_v17 }
 0x25a   :  { %v5315_v53 = vpack.c.bf16 %v8894_v48, %v8893_v33 }
 0x25b   :  { %5310 = vmatpush1.bf16.msra.mxu0 %v5309_v25 }
 0x25c   :  { %5355 = vmatpush1.bf16.msra.mxu1 %v7754_v54  ;;  %5311 = vmatprep.subr.bf16.mxu0 %v8412_v17  ;;  %v5318_v54 = vpack.c.bf16 %v8896_v45, %v8895_v32 }
 0x25d   :  { %5356 = vmatprep.subr.bf16.mxu1 %v8412_v17 }
 0x25f   :  { %5313 = vmatpush1.bf16.msra.mxu0 %v5312_v26 }
 0x260   :  { %5358 = vmatpush1.bf16.msra.mxu1 %v7771_v52  ;;  %5314 = vmatprep.subr.bf16.mxu0 %v8412_v17 }
 0x261   :  { %5359 = vmatprep.subr.bf16.mxu1 %v8412_v17 }
 0x263   :  { %5316 = vmatpush1.bf16.msra.mxu0 %v5315_v53 }
 0x264   :  { %5361 = vmatpush1.bf16.msra.mxu1 %v7786_v10  ;;  %5317 = vmatprep.subr.bf16.mxu0 %v8412_v17 }
 0x265   :  { %5362 = vmatprep.subr.bf16.mxu1 %v8412_v17  ;;  %v8897_v17 = vld [vmem:[#allocation68_spill] sm:$0xff] }
 0x266   :  { %v4149_v38 = vmul.f32 %v8897_v17, %v8897_v17 }
 0x267   :  { %5319 = vmatpush1.bf16.msra.mxu0 %v5318_v54 }
 0x268   :  { %5364 = vmatpush1.bf16.msra.mxu1 %v7795_v3 }
 0x26a   :  { %4011 = vmatmul.mubr.f32.vlgmr.msra.gmra.mrb[24].mxu0 %v8739_v14 }
 0x26b   :  { %4127 = vmatmul.mubr.f32.vlgmr.msra.gmra.mrb[24].mxu1 %v8739_v14  ;;  %4016 = vmatprep.mubr.f32.mxu0 %v8742_v1 }
 0x26c   :  { %4132 = vmatprep.mubr.f32.mxu1 %v8742_v1 }
 0x26e   :  { %4018 = vmatmul.mubr.f32.gmra.mrb[26].mxu0 %v8743_v57 }
 0x26f   :  { %4134 = vmatmul.mubr.f32.gmra.mrb[26].mxu1 %v8743_v57  ;;  %4023 = vmatprep.mubr.f32.mxu0 %v8746_v44  ;;  %v8898_v57 = vld [vmem:[#allocation70_spill] sm:$0xff] }
 0x270   :  { %4139 = vmatprep.mubr.f32.mxu1 %v8746_v44  ;;  %v4150_v19 = vmul.f32 %v8898_v57, %v8898_v57 }
 0x272   :  { %4025 = vmatmul.mubr.f32.gmra.mrb[28].mxu0 %v8747_v24 }
 0x273   :  { %4141 = vmatmul.mubr.f32.gmra.mrb[28].mxu1 %v8747_v24 }
 0x289   :  { %v2172_v14 = vpop.f32.mrb[6].mxu0  ;;  %v3150_v3 = vpop.f32.mrb[6].mxu1 }
 0x28a   :  { %v4152_v62 = vmul.f32 %v4149_v38, %v2172_v14  ;;  %v4155_v1 = vmul.f32 %v8897_v17, %v3150_v3  ;;  %v2174_v58 = vpop.f32.mrb[7].mxu0  ;;  %v3152_v52 = vpop.f32.mrb[7].mxu1 }
 0x28c   :  { %v4158_v10 = vadd.f32 %v4155_v1, %v4152_v62 }
 0x28d   :  { %v2179_v21 = vpop.f32.mrb[8].mxu0  ;;  %v3157_v44 = vpop.f32.mrb[8].mxu1 }
 0x28e   :  { %v4153_v2 = vmul.f32 %v4150_v19, %v2179_v21  ;;  %v4156_v29 = vmul.f32 %v8898_v57, %v3157_v44  ;;  %v2181_v24 = vpop.f32.mrb[9].mxu0  ;;  %v3159_v7 = vpop.f32.mrb[9].mxu1 }
 0x290   :  { %v4159_v37 = vadd.f32 %v4156_v29, %v4153_v2 }
 0x291   :  { %v2186_v30 = vpop.f32.mrb[10].mxu0  ;;  %v3164_v8 = vpop.f32.mrb[10].mxu1 }
 0x292   :  { %v4154_v42 = vmul.f32 %v4151_v39, %v2186_v30  ;;  %v4157_v4 = vmul.f32 %v8899_v36, %v3164_v8  ;;  %v2188_v15 = vpop.f32.mrb[11].mxu0  ;;  %v3166_v31 = vpop.f32.mrb[11].mxu1 }
 0x294   :  { %v4160_v34 = vadd.f32 %v4157_v4, %v4154_v42 }
 0x2c5   :  { %v3304_v16 = vpop.f32.mrb[12].mxu0 }
 0x2c6   :  { %v3306_v11 = vpop.f32.mrb[13].mxu0  ;;  %v3556_v63 = vpop.f32.mrb[12].mxu1 }
 0x2c7   :  { %v3557_v43 = vadd.f32 %v3556_v63, %v3304_v16  ;;  %v3558_v46 = vpop.f32.mrb[13].mxu1 }
 0x2c9   :  { %v3319_v35 = vpop.f32.mrb[14].mxu0 }
 0x2ca   :  { %v3321_v47 = vpop.f32.mrb[15].mxu0  ;;  %v3563_v23 = vpop.f32.mrb[14].mxu1 }
 0x2cb   :  { %v3564_v12 = vadd.f32 %v3563_v23, %v3319_v35  ;;  %v3565_v61 = vpop.f32.mrb[15].mxu1 }
 0x2cd   :  { %v3334_v56 = vpop.f32.mrb[16].mxu0 }
 0x2ce   :  { %v3336_v51 = vpop.f32.mrb[17].mxu0  ;;  %v3570_v59 = vpop.f32.mrb[16].mxu1 }
 0x2cf   :  { %v3571_v28 = vadd.f32 %v3570_v59, %v3334_v56  ;;  %v3572_v55 = vpop.f32.mrb[17].mxu1 }
 0x301   :  { %v3704_v49 = vpop.f32.mrb[18].mxu0 }
 0x302   :  { %v3705_v60 = vadd.f32 %v3704_v49, %v3557_v43  ;;  %v3706_v20 = vpop.f32.mrb[19].mxu0  ;;  %v3828_v41 = vpop.f32.mrb[18].mxu1 }
 0x303   :  { %v3830_v6 = vpop.f32.mrb[19].mxu1 }
 0x304   :  { %v3829_v5 = vadd.f32 %v3828_v41, %v3705_v60 }
 0x305   :  { %v3713_v50 = vpop.f32.mrb[20].mxu0 }
 0x306   :  { %v3714_v0 = vadd.f32 %v3713_v50, %v3564_v12  ;;  %v3839_v40 = vpop.f32.mrb[20].mxu1  ;;  %v3715_v27 = vpop.f32.mrb[21].mxu0 }
 0x307   :  { %v3841_v13 = vpop.f32.mrb[21].mxu1 }
 0x308   :  { %v3840_v9 = vadd.f32 %v3839_v40, %v3714_v0 }
 0x309   :  { %v3722_v25 = vpop.f32.mrb[22].mxu0 }
 0x30a   :  { %v3723_v22 = vadd.f32 %v3722_v25, %v3571_v28  ;;  %v3850_v18 = vpop.f32.mrb[22].mxu1  ;;  %v3724_v26 = vpop.f32.mrb[23].mxu0 }
 0x30b   :  { %v3852_v33 = vpop.f32.mrb[23].mxu1 }
 0x30c   :  { %v3851_v48 = vadd.f32 %v3850_v18, %v3723_v22 }
 0x33d   :  { %v4012_v53 = vpop.f32.mrb[24].mxu0 }
 0x33e   :  { %v4013_v32 = vadd.f32 %v4012_v53, %v3829_v5  ;;  %v4014_v45 = vpop.f32.mrb[25].mxu0  ;;  %v4128_v54 = vpop.f32.mrb[24].mxu1 }
 0x33f   :  { %v4130_v17 = vpop.f32.mrb[25].mxu1 }
 0x340   :  { %v4129_v38 = vadd.f32 %v4128_v54, %v4013_v32 }
 0x341   :  { %v4019_v14 = vpop.f32.mrb[26].mxu0 }
 0x342   :  { %v4161_v3 = vadd.f32 %v4158_v10, %v4129_v38  ;;  %v4020_v62 = vadd.f32 %v4019_v14, %v3840_v9  ;;  %v4021_v1 = vpop.f32.mrb[27].mxu0  ;;  %v4135_v58 = vpop.f32.mrb[26].mxu1 }
 0x343   :  { %v4137_v52 = vpop.f32.mrb[27].mxu1 }
 0x344   :  { %v4136_v57 = vadd.f32 %v4135_v58, %v4020_v62  ;;  %v4165_v36 = vsel %vm4164_vm3, %v4161_v3, 0.0 }
 0x345   :  { %v4026_v19 = vpop.f32.mrb[28].mxu0 }
 0x346   :  { %v4162_v21 = vadd.f32 %v4159_v37, %v4136_v57  ;;  %v4027_v44 = vadd.f32 %v4026_v19, %v3851_v48  ;;  %v4028_v2 = vpop.f32.mrb[29].mxu0  ;;  %v4142_v29 = vpop.f32.mrb[28].mxu1 }
 0x347   :  { %v4144_v24 = vpop.f32.mrb[29].mxu1 }
 0x348   :  { %v4143_v7 = vadd.f32 %v4142_v29, %v4027_v44  ;;  %v4166_v39 = vsel %vm4164_vm3, %v4162_v21, 0.0 }
 0x349   :  { %v4167_v30 = vadd.f32 %v4166_v39, %v4165_v36 }
 0x34a   :  { %v4163_v8 = vadd.f32 %v4160_v34, %v4143_v7 }
 0x34c   :  { %v4168_v42 = vsel %vm4164_vm3, %v4163_v8, 0.0 }
 0x34d   :  { %v4169_v4 = vadd.f32 %v4168_v42, %v4167_v30 }
 0x34f   :  { %4170 = vadd.xlane.f32.xlu0 %v4169_v4 }
 0x3dc   :  { %v4171_v10 = vpop.xlane.xlu0 %4170 }
 0x3dd   :  { %v4172_v15 = vrot.slane %v4171_v10, 4 }
 0x3df   :  { %v4173_v31 = vadd.f32 %v4172_v15, %v4171_v10 }
 0x3e1   :  { %v4174_v16 = vrot.slane %v4173_v31, 2 }
 0x3e3   :  { %v4175_v11 = vadd.f32 %v4174_v16, %v4173_v31 }
 0x3e5   :  { %v4176_v63 = vrot.slane %v4175_v11, 1 }
 0x3e7   :  { %v4177_v43 = vadd.f32 %v4176_v63, %v4175_v11 }
 0x3e9   :  { %5485 = vpush %v4177_v43 }
 0x41a   :  { %s5486_s22 = spop %5485 }
 0x41b   :  { %v4179_v37 = vstv %s5486_s22 }
 0x41c   :  { %4180 = vst [vmem:[#allocation2] sm:$0xff] %v4179_v37 }
 0x41d   :  { %5502 = shalt.err (!%p5499_p4)
}
 0x41e   :  { %s5503_s26 = scalar_lea.hbm %s8056_s7, 128 }
 0x41f   :  { %p5504_p5 = scmp.ne.s32.totalorder %s8056_s7, %s5503_s26  ;;  %p5507_p6 = scmp.lt.u32.totalorder %s5503_s26, %s8056_s7 }
 0x421   :  { %p5509_p7 = pnand %p5507_p6, %p5504_p5 }
 0x423   :  { %5512 = shalt.err (!%p5509_p7)
}
 0x424   :  { %4190 = dma.vmem_to_hbm [thread:$0]  %s4188_s21, 128, %s8056_s7, [#allocation3]  }
 0x425   :  { %5513 = dma.done.wait [#allocation3], 128  }
 0x426   :  { %5514 = vsyncadd [#allocation3], 4294967168 }
 0x427   :  { %4194 = vsyncpa [#allocation3], 1 }

</bundles_post_ra>
